<compile_context>
chip_gen: v6e
topology: v6e:2x2x1
jax: 0.10.0
libtpu: 0.0.40
codegen_flags: <defaults>
</compile_context>

<pallas_src>
import functools

import jax
import jax.numpy as jnp
from jax.experimental import pallas as pl
from jax.experimental.pallas import tpu as pltpu


def _cc_attention_kernel(xh_ref, xw_ref, w_ref, b_ref,
                         out_ref, statr_ref, statc_ref,
                         *, H, W, C, Cq):
    """Per-batch factored criss-cross attention.

    xh_ref   : (1, H*W, C)    x, channels last, h-major pixel order (p = h*W + w)
    xw_ref   : (1, W*H, C)    x, channels last, w-major pixel order (p = w*H + h)
    w_ref    : (C, C+2*Cq)    fused 1x1-conv weights, columns = [Wv | Wq | Wk]^T
    b_ref    : (1, C+2*Cq)    fused biases
    out_ref  : (1, H*W, 2*C)  packed *unnormalized* branch outputs:
               lanes [0:C)   row branch ("att_W"), h-major pixel order
               lanes [C:2C)  col branch ("att_H"), w-major pixel order
    statr_ref: (1, 2*H, W, 1) row-branch stats: rows [0:H) max, [H:2H) sum-exp
    statc_ref: (1, 2*W, H, 1) col-branch stats: rows [0:W) max, [W:2W) sum-exp
    """
    f32 = jnp.float32
    w_all = w_ref[...]
    b_all = b_ref[...]

    def project(xf):
        # fused 1x1 convolutions == one channel matmul; slice q / k / v lanes.
        p = jnp.dot(xf, w_all, preferred_element_type=f32) + b_all
        return p[:, C:C + Cq], p[:, C + Cq:C + 2 * Cq], p[:, :C]

    # ---- row branch ("energy_W"): keys share the row h (batch dim = h) ----
    q, k, v = project(xh_ref[0])
    q3 = q.reshape(H, W, Cq)
    k3 = k.reshape(H, W, Cq)
    v3 = v.reshape(H, W, C)
    e_row = jax.lax.dot_general(q3, k3, (((2,), (2,)), ((0,), (0,))),
                                preferred_element_type=f32)         # (H, W, Wk)
    m_row = jnp.max(e_row, axis=-1, keepdims=True)                  # (H, W, 1)
    p_row = jnp.exp(e_row - m_row)
    s_row = jnp.sum(p_row, axis=-1, keepdims=True)                  # (H, W, 1)
    o_row = jax.lax.dot_general(p_row, v3, (((2,), (1,)), ((0,), (0,))),
                                preferred_element_type=f32)         # (H, W, C)

    # ---- column branch ("energy_H"): keys share the column w (batch = w) ----
    q, k, v = project(xw_ref[0])
    q3 = q.reshape(W, H, Cq)
    k3 = k.reshape(W, H, Cq)
    v3 = v.reshape(W, H, C)
    e_col = jax.lax.dot_general(q3, k3, (((2,), (2,)), ((0,), (0,))),
                                preferred_element_type=f32)         # (W, H, Hk)
    hq = jax.lax.broadcasted_iota(jnp.int32, (W, H, H), 1)
    hk = jax.lax.broadcasted_iota(jnp.int32, (W, H, H), 2)
    # the module's INF() diagonal mask (-1e30 == exact 0 weight after exp)
    e_col = jnp.where(hq == hk, jnp.float32(-1e30), e_col)
    m_col = jnp.max(e_col, axis=-1, keepdims=True)                  # (W, H, 1)
    p_col = jnp.exp(e_col - m_col)
    s_col = jnp.sum(p_col, axis=-1, keepdims=True)                  # (W, H, 1)
    o_col = jax.lax.dot_general(p_col, v3, (((2,), (1,)), ((0,), (0,))),
                                preferred_element_type=f32)         # (W, H, C)

    # lane-dense packed store (2*C lanes) + packed per-branch softmax stats.
    out_ref[0] = jnp.concatenate(
        [o_row.reshape(H * W, C), o_col.reshape(W * H, C)], axis=-1)
    statr_ref[0, :H] = m_row
    statr_ref[0, H:] = s_row
    statc_ref[0, :W] = m_col
    statc_ref[0, W:] = s_col


def criss_cross_attention(x, wq, bq, wk, bk, wv, bv, gamma):
    """x: (B, C, H, W) NCHW; wq/wk: (C//8, C); wv: (C, C); gamma: (1,)."""
    B, C, H, W = x.shape
    Cq = wq.shape[0]
    HW = H * W

    # channels-last views of x in both pixel orders (so all batched matmuls in
    # the kernel are batch-leading and need no in-kernel transposes).
    xh = jnp.transpose(x, (0, 2, 3, 1)).reshape(B, HW, C).astype(jnp.float32)
    xw = jnp.transpose(x, (0, 3, 2, 1)).reshape(B, HW, C).astype(jnp.float32)

    # fused projection weights: [Wv | Wq | Wk] transposed, one bias row.
    w_cat = jnp.concatenate([wv.T, wq.T, wk.T], axis=1).astype(jnp.float32)
    b_cat = jnp.concatenate([bv, bq, bk]).reshape(1, C + 2 * Cq).astype(jnp.float32)

    kernel = functools.partial(_cc_attention_kernel, H=H, W=W, C=C, Cq=Cq)

    packed, stat_r, stat_c = pl.pallas_call(
        kernel,
        out_shape=(
            jax.ShapeDtypeStruct((B, HW, 2 * C), jnp.float32),
            jax.ShapeDtypeStruct((B, 2 * H, W, 1), jnp.float32),
            jax.ShapeDtypeStruct((B, 2 * W, H, 1), jnp.float32),
        ),
        grid_spec=pltpu.PrefetchScalarGridSpec(
            num_scalar_prefetch=0,
            grid=(B,),
            in_specs=[
                pl.BlockSpec((1, HW, C), lambda b: (b, 0, 0)),
                pl.BlockSpec((1, HW, C), lambda b: (b, 0, 0)),
                pl.BlockSpec((C, C + 2 * Cq), lambda b: (0, 0)),
                pl.BlockSpec((1, C + 2 * Cq), lambda b: (0, 0)),
            ],
            out_specs=[
                pl.BlockSpec((1, HW, 2 * C), lambda b: (b, 0, 0)),
                pl.BlockSpec((1, 2 * H, W, 1), lambda b: (b, 0, 0, 0)),
                pl.BlockSpec((1, 2 * W, H, 1), lambda b: (b, 0, 0, 0)),
            ],
        ),
        compiler_params=pltpu.CompilerParams(
            dimension_semantics=("parallel",)),
    )(xh, xw, w_cat, b_cat)

    # ---- joint softmax renormalization across the two branches (per pixel) ----
    m_r2 = stat_r[:, :H, :, 0]                           # (B, H, W)
    s_r2 = stat_r[:, H:, :, 0]
    m_c2 = jnp.transpose(stat_c[:, :W, :, 0], (0, 2, 1))  # (B, H, W)
    s_c2 = jnp.transpose(stat_c[:, W:, :, 0], (0, 2, 1))
    m_all = jnp.maximum(m_r2, m_c2)
    a_r = jnp.exp(m_r2 - m_all)
    a_c = jnp.exp(m_c2 - m_all)
    denom = a_r * s_r2 + a_c * s_c2
    scale_r = a_r / denom                                # (B, H, W)
    scale_c = a_c / denom                                # (B, H, W)

    o_row_u = packed[..., :C].reshape(B, H, W, C)        # [b, h, w, c]
    o_col_u = packed[..., C:].reshape(B, W, H, C)        # [b, w, h, c]
    ow = o_row_u * scale_r[..., None]                    # normalized "att_W" out
    oc = o_col_u * jnp.transpose(scale_c, (0, 2, 1))[..., None]  # "att_H" out

    # reproduce the module's bmm/.view()/.permute() epilogue exactly, including
    # its contiguous-.view() reinterpretation of the trailing (C,H)/(C,W) dims
    # (as written in ccnet_cifar.py).  This channel<->spatial element
    # permutation has no clean in-kernel relayout, so it stays as XLA glue that
    # fuses with the residual add.
    r_h = jnp.transpose(oc, (0, 1, 3, 2))                          # (B, W, C, H)
    out_h = jnp.transpose(r_h.reshape(B, W, H, C), (0, 3, 2, 1))   # (B, C, H, W)
    r_w = jnp.transpose(ow, (0, 1, 3, 2))                          # (B, H, C, W)
    out_w = jnp.transpose(r_w.reshape(B, H, W, C), (0, 3, 1, 2))   # (B, C, H, W)

    g = jnp.asarray(gamma, jnp.float32).reshape(())
    return (g * (out_h + out_w) + x).astype(x.dtype)


def criss_cross_attention_reference(x, wq, bq, wk, bk, wv, bv, gamma):
    """Line-by-line JAX mirror of the PyTorch forward, for validation."""
    B, C, H, W = x.shape
    Cq = wq.shape[0]
    conv = lambda w, b: jnp.einsum('oc,bchw->bohw', w, x) + b[None, :, None, None]
    pq, pk, pv = conv(wq, bq), conv(wk, bk), conv(wv, bv)
    q_h = jnp.transpose(pq, (0, 3, 1, 2)).reshape(B * W, Cq, H).transpose(0, 2, 1)
    q_w = jnp.transpose(pq, (0, 2, 1, 3)).reshape(B * H, Cq, W).transpose(0, 2, 1)
    k_h = jnp.transpose(pk, (0, 3, 1, 2)).reshape(B * W, Cq, H)
    k_w = jnp.transpose(pk, (0, 2, 1, 3)).reshape(B * H, Cq, W)
    v_h = jnp.transpose(pv, (0, 3, 1, 2)).reshape(B * W, C, H)
    v_w = jnp.transpose(pv, (0, 2, 1, 3)).reshape(B * H, C, W)
    inf_mask = jnp.where(jnp.eye(H, dtype=bool), -jnp.inf, 0.0)[None]
    e_h = (jnp.einsum('bhc,bcg->bhg', q_h, k_h) + inf_mask
           ).reshape(B, W, H, H).transpose(0, 2, 1, 3)
    e_w = jnp.einsum('bwc,bcg->bwg', q_w, k_w).reshape(B, H, W, W)
    concate = jax.nn.softmax(jnp.concatenate([e_h, e_w], axis=3), axis=3)
    att_h = jnp.transpose(concate[:, :, :, 0:H], (0, 2, 1, 3)).reshape(B * W, H, H)
    att_w = concate[:, :, :, H:H + W].reshape(B * H, W, W)
    out_h = jnp.einsum('bcg,bhg->bch', v_h, att_h).reshape(B, W, H, C).transpose(0, 3, 2, 1)
    out_w = jnp.einsum('bcg,bwg->bcw', v_w, att_w).reshape(B, H, W, C).transpose(0, 3, 1, 2)
    return gamma * (out_h + out_w) + x


if __name__ == "__main__":
    B, C, H, W = 2, 64, 16, 16
    Cq = C // 8

    key = jax.random.PRNGKey(0)
    kx, k1, k2, k3, k4, k5, k6 = jax.random.split(key, 7)
    x = jax.random.normal(kx, (B, C, H, W), jnp.float32)
    # nn.Conv2d(in_dim, out, kernel_size=1) weights with the 1x1 spatial dims
    # squeezed to (out, in); deterministic synthetic init.
    wq = 0.1 * jax.random.normal(k1, (Cq, C), jnp.float32)
    bq = 0.1 * jax.random.normal(k2, (Cq,), jnp.float32)
    wk = 0.1 * jax.random.normal(k3, (Cq, C), jnp.float32)
    bk = 0.1 * jax.random.normal(k4, (Cq,), jnp.float32)
    wv = 0.1 * jax.random.normal(k5, (C, C), jnp.float32)
    bv = 0.1 * jax.random.normal(k6, (C,), jnp.float32)
    # The module initializes gamma to 0 (output == x); use a nonzero value so
    # the attention path is actually exercised.
    gamma = jnp.full((1,), 0.5, jnp.float32)

    out = jax.jit(criss_cross_attention)(x, wq, bq, wk, bk, wv, bv, gamma)
    out = jax.block_until_ready(out)

    ref = criss_cross_attention_reference(x, wq, bq, wk, bk, wv, bv, gamma)
    assert out.shape == (B, C, H, W)
    max_err = float(jnp.max(jnp.abs(out - ref)))
    assert max_err < 2e-2, f"kernel/reference mismatch, max abs err = {max_err}"
    print("KERNEL_OK")
</pallas_src>

<mosaic_0001>
module attributes {stable_mosaic.version = 11 : i64} {
  func.func @_cc_attention_kernel(%arg0: i32, %arg1: memref<1x256x64xf32, #tpu.memory_space<vmem>>, %arg2: memref<1x256x64xf32, #tpu.memory_space<vmem>>, %arg3: memref<64x80xf32, #tpu.memory_space<vmem>>, %arg4: memref<1x80xf32, #tpu.memory_space<vmem>>, %arg5: memref<1x256x128xf32, #tpu.memory_space<vmem>>, %arg6: memref<1x32x16x1xf32, #tpu.memory_space<vmem>>, %arg7: memref<1x32x16x1xf32, #tpu.memory_space<vmem>>) attributes {dimension_semantics = [#tpu.dimension_semantics<parallel>], iteration_bounds = array<i64: 2>, scalar_prefetch = 0 : i64, scratch_operands = 0 : i64, tpu.core_type = #tpu.core_type<tc>, window_params = [{transform_indices = @transform_0, window_bounds = array<i64: 1, 256, 64>}, {transform_indices = @transform_1, window_bounds = array<i64: 1, 256, 64>}, {pipeline_mode = #tpu.pipeline_mode<synchronous>, transform_indices = @transform_2, window_bounds = array<i64: 64, 80>}, {pipeline_mode = #tpu.pipeline_mode<synchronous>, transform_indices = @transform_3, window_bounds = array<i64: 1, 80>}, {transform_indices = @transform_4, window_bounds = array<i64: 1, 256, 128>}, {transform_indices = @transform_5, window_bounds = array<i64: 1, 32, 16, 1>}, {transform_indices = @transform_6, window_bounds = array<i64: 1, 32, 16, 1>}]} {
    %c0 = arith.constant 0 : index
    %c0_0 = arith.constant 0 : index
    %0 = vector.load %arg3[%c0, %c0_0] : memref<64x80xf32, #tpu.memory_space<vmem>>, vector<64x80xf32>
    %c0_1 = arith.constant 0 : index
    %c0_2 = arith.constant 0 : index
    %1 = vector.load %arg4[%c0_1, %c0_2] : memref<1x80xf32, #tpu.memory_space<vmem>>, vector<1x80xf32>
    %c0_3 = arith.constant 0 : index
    %c0_4 = arith.constant 0 : index
    %c0_5 = arith.constant 0 : index
    %2 = vector.load %arg1[%c0_3, %c0_4, %c0_5] : memref<1x256x64xf32, #tpu.memory_space<vmem>>, vector<1x256x64xf32>
    %3 = vector.shape_cast %2 : vector<1x256x64xf32> to vector<256x64xf32>
    %cst = arith.constant dense<0.000000e+00> : vector<256x80xf32>
    %4 = tpu.matmul %3, %0, %cst {dimension_numbers = #tpu.dot_dimension_numbers<[1], [0], [0], [1], [0, 0, 1, 1], [], []>} : vector<256x64xf32>, vector<64x80xf32>, vector<256x80xf32> -> vector<256x80xf32>
    %5 = vector.broadcast %1 : vector<1x80xf32> to vector<256x80xf32>
    %6 = arith.addf %4, %5 : vector<256x80xf32>
    %7 = vector.extract_strided_slice %6 {offsets = [0, 64], sizes = [256, 8], strides = [1, 1]} : vector<256x80xf32> to vector<256x8xf32>
    %8 = vector.extract_strided_slice %6 {offsets = [0, 72], sizes = [256, 8], strides = [1, 1]} : vector<256x80xf32> to vector<256x8xf32>
    %9 = vector.extract_strided_slice %6 {offsets = [0, 0], sizes = [256, 64], strides = [1, 1]} : vector<256x80xf32> to vector<256x64xf32>
    %10 = vector.shape_cast %7 : vector<256x8xf32> to vector<16x16x8xf32>
    %11 = vector.shape_cast %8 : vector<256x8xf32> to vector<16x16x8xf32>
    %12 = vector.shape_cast %9 : vector<256x64xf32> to vector<16x16x64xf32>
    %cst_6 = arith.constant dense<0.000000e+00> : vector<16x16x16xf32>
    %13 = tpu.matmul %10, %11, %cst_6 {dimension_numbers = #tpu.dot_dimension_numbers<[2], [2], [1], [1], [0, 0, 0, 1, 1, 1], [0], [0]>} : vector<16x16x8xf32>, vector<16x16x8xf32>, vector<16x16x16xf32> -> vector<16x16x16xf32>
    %cst_7 = arith.constant dense<0xFF800000> : vector<16x16xf32>
    %14 = vector.multi_reduction <maximumf>, %13, %cst_7 [2] : vector<16x16x16xf32> to vector<16x16xf32>
    %15 = vector.shape_cast %14 : vector<16x16xf32> to vector<16x16x1xf32>
    %16 = vector.broadcast %15 : vector<16x16x1xf32> to vector<16x16x16xf32>
    %17 = arith.subf %13, %16 : vector<16x16x16xf32>
    %18 = math.exp %17 : vector<16x16x16xf32>
    %cst_8 = arith.constant dense<0.000000e+00> : vector<16x16xf32>
    %19 = vector.multi_reduction <add>, %18, %cst_8 [2] : vector<16x16x16xf32> to vector<16x16xf32>
    %20 = vector.shape_cast %19 : vector<16x16xf32> to vector<16x16x1xf32>
    %cst_9 = arith.constant dense<0.000000e+00> : vector<16x16x64xf32>
    %21 = tpu.matmul %18, %12, %cst_9 {dimension_numbers = #tpu.dot_dimension_numbers<[2], [1], [1], [2], [0, 0, 0, 1, 1, 2], [0], [0]>} : vector<16x16x16xf32>, vector<16x16x64xf32>, vector<16x16x64xf32> -> vector<16x16x64xf32>
    %c0_10 = arith.constant 0 : index
    %c0_11 = arith.constant 0 : index
    %c0_12 = arith.constant 0 : index
    %22 = vector.load %arg2[%c0_10, %c0_11, %c0_12] : memref<1x256x64xf32, #tpu.memory_space<vmem>>, vector<1x256x64xf32>
    %23 = vector.shape_cast %22 : vector<1x256x64xf32> to vector<256x64xf32>
    %cst_13 = arith.constant dense<0.000000e+00> : vector<256x80xf32>
    %24 = tpu.matmul %23, %0, %cst_13 {dimension_numbers = #tpu.dot_dimension_numbers<[1], [0], [0], [1], [0, 0, 1, 1], [], []>} : vector<256x64xf32>, vector<64x80xf32>, vector<256x80xf32> -> vector<256x80xf32>
    %25 = vector.broadcast %1 : vector<1x80xf32> to vector<256x80xf32>
    %26 = arith.addf %24, %25 : vector<256x80xf32>
    %27 = vector.extract_strided_slice %26 {offsets = [0, 64], sizes = [256, 8], strides = [1, 1]} : vector<256x80xf32> to vector<256x8xf32>
    %28 = vector.extract_strided_slice %26 {offsets = [0, 72], sizes = [256, 8], strides = [1, 1]} : vector<256x80xf32> to vector<256x8xf32>
    %29 = vector.extract_strided_slice %26 {offsets = [0, 0], sizes = [256, 64], strides = [1, 1]} : vector<256x80xf32> to vector<256x64xf32>
    %30 = vector.shape_cast %27 : vector<256x8xf32> to vector<16x16x8xf32>
    %31 = vector.shape_cast %28 : vector<256x8xf32> to vector<16x16x8xf32>
    %32 = vector.shape_cast %29 : vector<256x64xf32> to vector<16x16x64xf32>
    %cst_14 = arith.constant dense<0.000000e+00> : vector<16x16x16xf32>
    %33 = tpu.matmul %30, %31, %cst_14 {dimension_numbers = #tpu.dot_dimension_numbers<[2], [2], [1], [1], [0, 0, 0, 1, 1, 1], [0], [0]>} : vector<16x16x8xf32>, vector<16x16x8xf32>, vector<16x16x16xf32> -> vector<16x16x16xf32>
    %34 = tpu.iota {dimensions = array<i32: 1>} : vector<16x16x16xi32>
    %35 = tpu.iota {dimensions = array<i32: 2>} : vector<16x16x16xi32>
    %36 = arith.cmpi eq, %34, %35 : vector<16x16x16xi32>
    %cst_15 = arith.constant -1.000000e+30 : f32
    %37 = vector.broadcast %cst_15 : f32 to vector<16x16x16xf32>
    %38 = arith.select %36, %37, %33 : vector<16x16x16xi1>, vector<16x16x16xf32>
    %cst_16 = arith.constant dense<0xFF800000> : vector<16x16xf32>
    %39 = vector.multi_reduction <maximumf>, %38, %cst_16 [2] : vector<16x16x16xf32> to vector<16x16xf32>
    %40 = vector.shape_cast %39 : vector<16x16xf32> to vector<16x16x1xf32>
    %41 = vector.broadcast %40 : vector<16x16x1xf32> to vector<16x16x16xf32>
    %42 = arith.subf %38, %41 : vector<16x16x16xf32>
    %43 = math.exp %42 : vector<16x16x16xf32>
    %cst_17 = arith.constant dense<0.000000e+00> : vector<16x16xf32>
    %44 = vector.multi_reduction <add>, %43, %cst_17 [2] : vector<16x16x16xf32> to vector<16x16xf32>
    %45 = vector.shape_cast %44 : vector<16x16xf32> to vector<16x16x1xf32>
    %cst_18 = arith.constant dense<0.000000e+00> : vector<16x16x64xf32>
    %46 = tpu.matmul %43, %32, %cst_18 {dimension_numbers = #tpu.dot_dimension_numbers<[2], [1], [1], [2], [0, 0, 0, 1, 1, 2], [0], [0]>} : vector<16x16x16xf32>, vector<16x16x64xf32>, vector<16x16x64xf32> -> vector<16x16x64xf32>
    %47 = vector.shape_cast %21 : vector<16x16x64xf32> to vector<256x64xf32>
    %48 = vector.shape_cast %46 : vector<16x16x64xf32> to vector<256x64xf32>
    %49 = tpu.concatenate %47, %48 in 1 : vector<256x64xf32>, vector<256x64xf32> -> vector<256x128xf32>
    %c0_19 = arith.constant 0 : index
    %c0_20 = arith.constant 0 : index
    %c0_21 = arith.constant 0 : index
    %50 = vector.load %arg5[%c0_19, %c0_20, %c0_21] : memref<1x256x128xf32, #tpu.memory_space<vmem>>, vector<1x256x128xf32>
    %51 = vector.shape_cast %50 : vector<1x256x128xf32> to vector<256x128xf32>
    %52 = vector.shape_cast %49 : vector<256x128xf32> to vector<1x256x128xf32>
    tpu.vector_store %arg5[%c0_19, %c0_20, %c0_21], %52 {strides = array<i32>} : memref<1x256x128xf32, #tpu.memory_space<vmem>>, vector<1x256x128xf32>,
    %c0_22 = arith.constant 0 : index
    %c0_23 = arith.constant 0 : index
    %c0_24 = arith.constant 0 : index
    %c0_25 = arith.constant 0 : index
    %53 = vector.load %arg6[%c0_22, %c0_23, %c0_24, %c0_25] : memref<1x32x16x1xf32, #tpu.memory_space<vmem>>, vector<1x16x16x1xf32>
    %54 = vector.shape_cast %53 : vector<1x16x16x1xf32> to vector<16x16x1xf32>
    %55 = vector.shape_cast %15 : vector<16x16x1xf32> to vector<1x16x16x1xf32>
    tpu.vector_store %arg6[%c0_22, %c0_23, %c0_24, %c0_25], %55 {strides = array<i32>} : memref<1x32x16x1xf32, #tpu.memory_space<vmem>>, vector<1x16x16x1xf32>,
    %c0_26 = arith.constant 0 : index
    %c16 = arith.constant 16 : index
    %c0_27 = arith.constant 0 : index
    %c0_28 = arith.constant 0 : index
    %56 = vector.load %arg6[%c0_26, %c16, %c0_27, %c0_28] : memref<1x32x16x1xf32, #tpu.memory_space<vmem>>, vector<1x16x16x1xf32>
    %57 = vector.shape_cast %56 : vector<1x16x16x1xf32> to vector<16x16x1xf32>
    %58 = vector.shape_cast %20 : vector<16x16x1xf32> to vector<1x16x16x1xf32>
    tpu.vector_store %arg6[%c0_26, %c16, %c0_27, %c0_28], %58 {strides = array<i32>} : memref<1x32x16x1xf32, #tpu.memory_space<vmem>>, vector<1x16x16x1xf32>,
    %c0_29 = arith.constant 0 : index
    %c0_30 = arith.constant 0 : index
    %c0_31 = arith.constant 0 : index
    %c0_32 = arith.constant 0 : index
    %59 = vector.load %arg7[%c0_29, %c0_30, %c0_31, %c0_32] : memref<1x32x16x1xf32, #tpu.memory_space<vmem>>, vector<1x16x16x1xf32>
    %60 = vector.shape_cast %59 : vector<1x16x16x1xf32> to vector<16x16x1xf32>
    %61 = vector.shape_cast %40 : vector<16x16x1xf32> to vector<1x16x16x1xf32>
    tpu.vector_store %arg7[%c0_29, %c0_30, %c0_31, %c0_32], %61 {strides = array<i32>} : memref<1x32x16x1xf32, #tpu.memory_space<vmem>>, vector<1x16x16x1xf32>,
    %c0_33 = arith.constant 0 : index
    %c16_34 = arith.constant 16 : index
    %c0_35 = arith.constant 0 : index
    %c0_36 = arith.constant 0 : index
    %62 = vector.load %arg7[%c0_33, %c16_34, %c0_35, %c0_36] : memref<1x32x16x1xf32, #tpu.memory_space<vmem>>, vector<1x16x16x1xf32>
    %63 = vector.shape_cast %62 : vector<1x16x16x1xf32> to vector<16x16x1xf32>
    %64 = vector.shape_cast %45 : vector<16x16x1xf32> to vector<1x16x16x1xf32>
    tpu.vector_store %arg7[%c0_33, %c16_34, %c0_35, %c0_36], %64 {strides = array<i32>} : memref<1x32x16x1xf32, #tpu.memory_space<vmem>>, vector<1x16x16x1xf32>,
    return
  }
  func.func @transform_0(%arg0: i32) -> (i32, i32, i32) {
    %c0_i32 = arith.constant 0 : i32
    %c0_i32_0 = arith.constant 0 : i32
    %c0_i32_1 = arith.constant 0 : i32
    return %arg0, %c0_i32, %c0_i32_0 : i32, i32, i32
  }
  func.func @transform_1(%arg0: i32) -> (i32, i32, i32) {
    %c0_i32 = arith.constant 0 : i32
    %c0_i32_0 = arith.constant 0 : i32
    %c0_i32_1 = arith.constant 0 : i32
    return %arg0, %c0_i32, %c0_i32_0 : i32, i32, i32
  }
  func.func @transform_2(%arg0: i32) -> (i32, i32) {
    %c0_i32 = arith.constant 0 : i32
    %c0_i32_0 = arith.constant 0 : i32
    %c0_i32_1 = arith.constant 0 : i32
    return %c0_i32, %c0_i32_0 : i32, i32
  }
  func.func @transform_3(%arg0: i32) -> (i32, i32) {
    %c0_i32 = arith.constant 0 : i32
    %c0_i32_0 = arith.constant 0 : i32
    %c0_i32_1 = arith.constant 0 : i32
    return %c0_i32, %c0_i32_0 : i32, i32
  }
  func.func @transform_4(%arg0: i32) -> (i32, i32, i32) {
    %c0_i32 = arith.constant 0 : i32
    %c0_i32_0 = arith.constant 0 : i32
    %c0_i32_1 = arith.constant 0 : i32
    return %arg0, %c0_i32, %c0_i32_0 : i32, i32, i32
  }
  func.func @transform_5(%arg0: i32) -> (i32, i32, i32, i32) {
    %c0_i32 = arith.constant 0 : i32
    %c0_i32_0 = arith.constant 0 : i32
    %c0_i32_1 = arith.constant 0 : i32
    %c0_i32_2 = arith.constant 0 : i32
    return %arg0, %c0_i32, %c0_i32_0, %c0_i32_1 : i32, i32, i32, i32
  }
  func.func @transform_6(%arg0: i32) -> (i32, i32, i32, i32) {
    %c0_i32 = arith.constant 0 : i32
    %c0_i32_0 = arith.constant 0 : i32
    %c0_i32_1 = arith.constant 0 : i32
    %c0_i32_2 = arith.constant 0 : i32
    return %arg0, %c0_i32, %c0_i32_0, %c0_i32_1 : i32, i32, i32, i32
  }
}

</mosaic_0001>

<bundles_post_ra>
// kernel: criss_cross_attention.1
= control target key start
LH: loop header
LB: loop body
LE: loop exit
PB: predicated region body
PF: predicated region fallthrough
CT: control target
= control target key end

     0   :  { %s9107_s21 = smov 0   ;;  %s11270_s0 = inlined_call_operand.vmem [shape: f32[2,256,64], index: 0, kind: input, shape index: {}]   ;;  %s11271_s1 = inlined_call_operand.vmem [shape: f32[2,256,64], index: 1, kind: input, shape index: {}]   ;;  %s11272_s2 = inlined_call_operand.vmem [shape: f32[64,80], index: 2, kind: input, shape index: {}]   ;;  %s11273_s3 = inlined_call_operand.vmem [shape: f32[1,80], index: 3, kind: input, shape index: {}]   ;;  %s11274_s4 = inlined_call_operand.vmem [shape: f32[2,256,128], index: 4, kind: output, shape index: {0}]   ;;  %s11275_s5 = inlined_call_operand.vmem [shape: f32[2,32,16,1], index: 5, kind: output, shape index: {1}]   ;;  %s11276_s6 = inlined_call_operand.vmem [shape: f32[2,32,16,1], index: 6, kind: output, shape index: {2}]  }
   0x1 LB: > { %s7660_s22 = sadd.s32 4294967295, %s9068_s21   ;;  %p7664_p0 = scmp.ge.s32.totalorder %s9068_s21, 1  ;;  %s9068_s21 = sphi %s9107_s21, %s17_s21  }
   0x2   : > { %p227_p1 = scmp.lt.s32.totalorder %s9068_s21, 3 }
   0x4   : > { %p228_p2 = pnand %p7664_p0, %p227_p1 }
   0x6   : > { %231 = sbr.rel (%p228_p2) target bundleno = 1933 (0x78d), region = 36 }
   0xb   : > { %v304_v0 = vld [vmem:[%s11272_s2 + $0x38] sm:$0xff]  ;;  %v303_v1 = vld [vmem:[%s11272_s2 + $0x30] sm:$0xff]  ;;  %p272_p3 = scmp.lt.s32.totalorder %s7660_s22, 1  ;;  %v302_v2 = vld [vmem:[%s11272_s2 + $0x28] sm:$0xff]  ;;  %vm344_vm0 = vcmask 523264   ;;  %s9070_s23 = smov 56  }
   0xc   : > { %8339 = vmatprep.subr.mxu0 %v304_v0  ;;  %v301_v3 = vld [vmem:[%s11272_s2 + $0x20] sm:$0xff]  ;;  %v300_v4 = vld [vmem:[%s11272_s2 + $0x18] sm:$0xff]  ;;  %v299_v6 = vld [vmem:[%s11272_s2 + $0x10] sm:$0xff]  ;;  %s9071_s24 = smov 64   ;;  %vm676_vm1 = vcmask 64512   ;;  %vm2155_vm2 = vcmask 130048  }
   0xd   : > { %8340 = vmatpush3.msra.mxu0 %v304_v0  ;;  %s11532_s22 = smov (!%p272_p3, %s7660_s22), 1  ;;  %v298_v7 = vld [vmem:[%s11272_s2 + $0x8] sm:$0xff]  ;;  %v297_v8 = vld [vmem:[%s11272_s2] sm:$0xff]  ;;  %vm7396_vm3 = vcmask 7168  }
   0xe   : > { %8341 = vmatprep.subr.mxu0 %v303_v1  ;;  %s9130_s7 = sshll.u32 %s11532_s22, 8  ;;  %v9217_v40 = vld [vmem:[%s11273_s3] ss:$0 sm:$0xff]  ;;  %s8001_s25 = sshll.u32 %s11532_s22, 9 }
   0xf   : > { %8342 = vmatpush3.msra.mxu0 %v303_v1  ;;  %s9136_s10 = scalar_lea.vmem %s11270_s0, %s9130_s7  ;;  %s9641_s28 = scalar_lea.vmem %s11275_s5, %s8001_s25 }
  0x10   : > { %8343 = vmatprep.subr.mxu0 %v302_v2  ;;  %v306_v5 = vld [vmem:[%s9136_s10] sm:$0xff]  ;;  %v307_v9 = vld [vmem:[%s9136_s10 + $0x8] sm:$0xff]  ;;  %v308_v10 = vld [vmem:[%s9136_s10 + $0x10] sm:$0xff]  ;;  %s9788_s8 = scalar_lea.vmem %s11271_s1, %s9130_s7  ;;  %s10673_s11 = scalar_lea.vmem %s11276_s6, %s8001_s25 }
  0x11   : > { %8344 = vmatpush3.msra.mxu0 %v302_v2  ;;  %8355 = vmatprep.mubr.msk.f32.mxu0 %vm344_vm0, %v306_v5  ;;  %v309_v11 = vld [vmem:[%s9136_s10 + $0x18] sm:$0xff]  ;;  %v310_v12 = vld [vmem:[%s9136_s10 + $0x20] sm:$0xff]  ;;  %v311_v13 = vld [vmem:[%s9136_s10 + $0x28] sm:$0xff] }
  0x12   : > { %8345 = vmatprep.subr.mxu0 %v301_v3  ;;  %v312_v14 = vld [vmem:[%s9136_s10 + $0x30] sm:$0xff]  ;;  %v313_v15 = vld [vmem:[%s9136_s10 + $0x38] sm:$0xff]  ;;  %v314_v16 = vld [vmem:[%s9136_s10 + $0x40] sm:$0xff] }
  0x13   : > { %8346 = vmatpush3.msra.mxu0 %v301_v3  ;;  %v315_v17 = vld [vmem:[%s9136_s10 + $0x48] sm:$0xff]  ;;  %v316_v18 = vld [vmem:[%s9136_s10 + $0x50] sm:$0xff]  ;;  %v317_v19 = vld [vmem:[%s9136_s10 + $0x58] sm:$0xff] }
  0x14   : > { %8347 = vmatprep.subr.mxu0 %v300_v4  ;;  %v318_v20 = vld [vmem:[%s9136_s10 + $0x60] sm:$0xff]  ;;  %v319_v21 = vld [vmem:[%s9136_s10 + $0x68] sm:$0xff]  ;;  %v320_v22 = vld [vmem:[%s9136_s10 + $0x70] sm:$0xff] }
  0x15   : > { %8348 = vmatpush3.msra.mxu0 %v300_v4  ;;  %v321_v23 = vld [vmem:[%s9136_s10 + $0x78] sm:$0xff]  ;;  %v322_v24 = vld [vmem:[%s9136_s10 + $0x80] sm:$0xff]  ;;  %v323_v25 = vld [vmem:[%s9136_s10 + $0x88] sm:$0xff] }
  0x16   : > { %8349 = vmatprep.subr.mxu0 %v299_v6  ;;  %v324_v26 = vld [vmem:[%s9136_s10 + $0x90] sm:$0xff]  ;;  %v325_v27 = vld [vmem:[%s9136_s10 + $0x98] sm:$0xff]  ;;  %v326_v28 = vld [vmem:[%s9136_s10 + $0xa0] sm:$0xff] }
  0x17   : > { %8350 = vmatpush3.msra.mxu0 %v299_v6  ;;  %v327_v29 = vld [vmem:[%s9136_s10 + $0xa8] sm:$0xff]  ;;  %v328_v30 = vld [vmem:[%s9136_s10 + $0xb0] sm:$0xff]  ;;  %v329_v31 = vld [vmem:[%s9136_s10 + $0xb8] sm:$0xff] }
  0x18   : > { %8351 = vmatprep.subr.mxu0 %v298_v7  ;;  %v330_v32 = vld [vmem:[%s9136_s10 + $0xc0] sm:$0xff]  ;;  %v331_v33 = vld [vmem:[%s9136_s10 + $0xc8] sm:$0xff]  ;;  %v332_v34 = vld [vmem:[%s9136_s10 + $0xd0] sm:$0xff] }
  0x19   : > { %8352 = vmatpush3.msra.mxu0 %v298_v7  ;;  %v333_v35 = vld [vmem:[%s9136_s10 + $0xd8] sm:$0xff]  ;;  %v334_v36 = vld [vmem:[%s9136_s10 + $0xe0] sm:$0xff]  ;;  %v335_v37 = vld [vmem:[%s9136_s10 + $0xe8] sm:$0xff] }
  0x1a   : > { %8353 = vmatprep.subr.mxu0 %v297_v8  ;;  %v336_v38 = vld [vmem:[%s9136_s10 + $0xf0] sm:$0xff]  ;;  %v337_v39 = vld [vmem:[%s9136_s10 + $0xf8] sm:$0xff] }
  0x1b   : > { %8354 = vmatpush3.msra.mxu0 %v297_v8 }
  0x1c   : > { %8356 = vmatmul.mubr.msk.f32.vlgmr.msra.gmra.mxu0 %vm344_vm0, %v307_v9 }
  0x1d   : > { %8358 = vmatprep.mubr.msk.f32.mxu0 %vm344_vm0, %v308_v10 }
  0x20   : > { %8359 = vmatmul.mubr.msk.f32.gmra.mxu0 %vm344_vm0, %v309_v11 }
  0x21   : > { %8361 = vmatprep.mubr.msk.f32.mxu0 %vm344_vm0, %v310_v12 }
  0x24   : > { %8362 = vmatmul.mubr.msk.f32.gmra.mxu0 %vm344_vm0, %v311_v13 }
  0x25   : > { %8364 = vmatprep.mubr.msk.f32.mxu0 %vm344_vm0, %v312_v14 }
  0x28   : > { %8365 = vmatmul.mubr.msk.f32.gmra.mxu0 %vm344_vm0, %v313_v15 }
  0x29   : > { %8367 = vmatprep.mubr.msk.f32.mxu0 %vm344_vm0, %v314_v16 }
  0x2c   : > { %8368 = vmatmul.mubr.msk.f32.gmra.mxu0 %vm344_vm0, %v315_v17 }
  0x2d   : > { %8370 = vmatprep.mubr.msk.f32.mxu0 %vm344_vm0, %v316_v18 }
  0x30   : > { %8371 = vmatmul.mubr.msk.f32.gmra.mxu0 %vm344_vm0, %v317_v19 }
  0x31   : > { %8373 = vmatprep.mubr.msk.f32.mxu0 %vm344_vm0, %v318_v20 }
  0x34   : > { %8374 = vmatmul.mubr.msk.f32.gmra.mxu0 %vm344_vm0, %v319_v21 }
  0x35   : > { %8376 = vmatprep.mubr.msk.f32.mxu0 %vm344_vm0, %v320_v22 }
  0x38   : > { %8377 = vmatmul.mubr.msk.f32.gmra.mxu0 %vm344_vm0, %v321_v23 }
  0x39   : > { %8379 = vmatprep.mubr.msk.f32.mxu0 %vm344_vm0, %v322_v24 }
  0x3c   : > { %8380 = vmatmul.mubr.msk.f32.gmra.mxu0 %vm344_vm0, %v323_v25 }
  0x3d   : > { %8382 = vmatprep.mubr.msk.f32.mxu0 %vm344_vm0, %v324_v26 }
  0x40   : > { %8383 = vmatmul.mubr.msk.f32.gmra.mxu0 %vm344_vm0, %v325_v27 }
  0x41   : > { %8385 = vmatprep.mubr.msk.f32.mxu0 %vm344_vm0, %v326_v28 }
  0x44   : > { %8386 = vmatmul.mubr.msk.f32.gmra.mxu0 %vm344_vm0, %v327_v29 }
  0x45   : > { %8388 = vmatprep.mubr.msk.f32.mxu0 %vm344_vm0, %v328_v30 }
  0x48   : > { %8389 = vmatmul.mubr.msk.f32.gmra.mxu0 %vm344_vm0, %v329_v31 }
  0x49   : > { %8391 = vmatprep.mubr.msk.f32.mxu0 %vm344_vm0, %v330_v32 }
  0x4c   : > { %8392 = vmatmul.mubr.msk.f32.gmra.mxu0 %vm344_vm0, %v331_v33 }
  0x4d   : > { %8394 = vmatprep.mubr.msk.f32.mxu0 %vm344_vm0, %v332_v34 }
  0x50   : > { %8395 = vmatmul.mubr.msk.f32.gmra.mxu0 %vm344_vm0, %v333_v35 }
  0x51   : > { %8397 = vmatprep.mubr.msk.f32.mxu0 %vm344_vm0, %v334_v36 }
  0x54   : > { %8398 = vmatmul.mubr.msk.f32.gmra.mxu0 %vm344_vm0, %v335_v37 }
  0x55   : > { %8400 = vmatprep.mubr.msk.f32.mxu0 %vm344_vm0, %v336_v38 }
  0x58   : > { %8401 = vmatmul.mubr.msk.f32.gmra.mxu0 %vm344_vm0, %v337_v39 }
  0xdc   : > { %v8357_v41 = vpop.f32.mrf.mxu0 }
  0xdd   : > { %v9220_v42 = vadd.f32 %v8357_v41, %v9217_v40 }
  0xde   : > { %v507_v43 = vpop.f32.mrf.mxu0 }
  0xdf   : > { %v9223_v44 = vadd.f32 %v9217_v40, %v507_v43  ;;  %674 = vrot.lane.b32.xlu0 %v9220_v42, %s9070_s23 }
  0xe0   : > { %v8360_v45 = vpop.f32.mrf.mxu0 }
  0xe1   : > { %668 = vrot.lane.b32.xlu1 %v9223_v44, %s9071_s24  ;;  %v9230_v46 = vadd.f32 %v8360_v45, %v9217_v40 }
  0xe2   : > { %v517_v47 = vpop.f32.mrf.mxu0 }
  0xe3   : > { %672 = vrot.lane.b32.xlu0 %v9223_v44, %s9070_s23  ;;  %v9237_v50 = vadd.f32 %v9217_v40, %v517_v47 }
  0xe4   : > { %v8363_v48 = vpop.f32.mrf.mxu0 }
  0xe5   : > { %768 = vrot.lane.b32.xlu1 %v9230_v46, %s9070_s23  ;;  %v9244_v52 = vadd.f32 %v8363_v48, %v9217_v40 }
  0xe6   : > { %v527_v49 = vpop.f32.mrf.mxu0 }
  0xe7   : > { %670 = vrot.lane.b32.xlu0 %v9220_v42, %s9071_s24  ;;  %v9251_v56 = vadd.f32 %v9217_v40, %v527_v49 }
  0xe8   : > { %v8366_v51 = vpop.f32.mrf.mxu0 }
  0xe9   : > { %766 = vrot.lane.b32.xlu1 %v9237_v50, %s9070_s23  ;;  %v9258_v58 = vadd.f32 %v8366_v51, %v9217_v40 }
  0xea   : > { %v537_v53 = vpop.f32.mrf.mxu0 }
  0xeb   : > { %762 = vrot.lane.b32.xlu0 %v9237_v50, %s9071_s24  ;;  %v9265_v62 = vadd.f32 %v9217_v40, %v537_v53 }
  0xec   : > { %v8369_v54 = vpop.f32.mrf.mxu0 }
  0xed   : > { %861 = vrot.lane.b32.xlu1 %v9244_v52, %s9070_s23  ;;  %11361 = vst [vmem:[#allocation2_spill] sm:$0xff] %v9265_v62  ;;  %v9272_v0 = vadd.f32 %v8369_v54, %v9217_v40 }
  0xee   : > { %v547_v55 = vpop.f32.mrf.mxu0 }
  0xef   : > { %764 = vrot.lane.b32.xlu0 %v9230_v46, %s9071_s24  ;;  %v9279_v3 = vadd.f32 %v9217_v40, %v547_v55 }
  0xf0   : > { %v8372_v57 = vpop.f32.mrf.mxu0 }
  0xf1   : > { %859 = vrot.lane.b32.xlu1 %v9251_v56, %s9070_s23  ;;  %v9286_v4 = vadd.f32 %v8372_v57, %v9217_v40 }
  0xf2   : > { %v557_v59 = vpop.f32.mrf.mxu0 }
  0xf3   : > { %855 = vrot.lane.b32.xlu0 %v9251_v56, %s9071_s24  ;;  %11362 = vst [vmem:[#allocation3_spill] sm:$0xff] %v9286_v4  ;;  %v9293_v7 = vadd.f32 %v9217_v40, %v557_v59 }
  0xf4   : > { %v8375_v60 = vpop.f32.mrf.mxu0 }
  0xf5   : > { %954 = vrot.lane.b32.xlu1 %v9258_v58, %s9070_s23  ;;  %11363 = vst [vmem:[#allocation4_spill] sm:$0xff] %v9293_v7  ;;  %v9300_v8 = vadd.f32 %v8375_v60, %v9217_v40 }
  0xf6   : > { %v567_v61 = vpop.f32.mrf.mxu0 }
  0xf7   : > { %857 = vrot.lane.b32.xlu0 %v9244_v52, %s9071_s24  ;;  %v9307_v11 = vadd.f32 %v9217_v40, %v567_v61 }
  0xf8   : > { %v8378_v63 = vpop.f32.mrf.mxu0 }
  0xf9   : > { %952 = vrot.lane.b32.xlu1 %v9265_v62, %s9070_s23  ;;  %v9314_v12 = vadd.f32 %v8378_v63, %v9217_v40 }
  0xfa   : > { %v577_v1 = vpop.f32.mrf.mxu0 }
  0xfb   : > { %948 = vrot.lane.b32.xlu0 %v9265_v62, %s9071_s24  ;;  %11364 = vst [vmem:[#allocation5_spill] sm:$0xff] %v9314_v12  ;;  %v9321_v15 = vadd.f32 %v9217_v40, %v577_v1 }
  0xfc   : > { %v8381_v2 = vpop.f32.mrf.mxu0 }
  0xfd   : > { %1047 = vrot.lane.b32.xlu1 %v9272_v0, %s9070_s23  ;;  %11365 = vst [vmem:[#allocation6_spill] sm:$0xff] %v9321_v15  ;;  %v9328_v16 = vadd.f32 %v8381_v2, %v9217_v40 }
  0xfe   : > { %v587_v5 = vpop.f32.mrf.mxu0 }
  0xff   : > { %950 = vrot.lane.b32.xlu0 %v9258_v58, %s9071_s24  ;;  %v9335_v19 = vadd.f32 %v9217_v40, %v587_v5 }
 0x100   : > { %v8384_v6 = vpop.f32.mrf.mxu0 }
 0x101   : > { %1045 = vrot.lane.b32.xlu1 %v9279_v3, %s9070_s23  ;;  %v9386_v31 = vadd.f32 %v8384_v6, %v9217_v40 }
 0x102   : > { %v597_v9 = vpop.f32.mrf.mxu0 }
 0x103   : > { %1041 = vrot.lane.b32.xlu0 %v9279_v3, %s9071_s24  ;;  %11366 = vst [vmem:[#allocation7_spill] sm:$0xff] %v9386_v31  ;;  %v9391_v32 = vadd.f32 %v9217_v40, %v597_v9 }
 0x104   : > { %v8387_v10 = vpop.f32.mrf.mxu0 }
 0x105   : > { %1140 = vrot.lane.b32.xlu1 %v9286_v4, %s9070_s23  ;;  %v9342_v20 = vadd.f32 %v8387_v10, %v9217_v40  ;;  %11367 = vst [vmem:[#allocation8_spill] sm:$0xff] %v9391_v32 }
 0x106   : > { %v607_v13 = vpop.f32.mrf.mxu0 }
 0x107   : > { %1043 = vrot.lane.b32.xlu0 %v9272_v0, %s9071_s24  ;;  %v9349_v23 = vadd.f32 %v9217_v40, %v607_v13 }
 0x108   : > { %v8390_v14 = vpop.f32.mrf.mxu0 }
 0x109   : > { %1138 = vrot.lane.b32.xlu1 %v9293_v7, %s9070_s23  ;;  %v9398_v33 = vadd.f32 %v8390_v14, %v9217_v40 }
 0x10a   : > { %v617_v17 = vpop.f32.mrf.mxu0 }
 0x10b   : > { %1134 = vrot.lane.b32.xlu0 %v9293_v7, %s9071_s24  ;;  %11368 = vst [vmem:[#allocation9_spill] sm:$0xff] %v9398_v33  ;;  %v9405_v34 = vadd.f32 %v9217_v40, %v617_v17 }
 0x10c   : > { %v8393_v18 = vpop.f32.mrf.mxu0 }
 0x10d   : > { %1233 = vrot.lane.b32.xlu1 %v9300_v8, %s9070_s23  ;;  %v9356_v24 = vadd.f32 %v8393_v18, %v9217_v40  ;;  %11369 = vst [vmem:[#allocation10_spill] sm:$0xff] %v9405_v34 }
 0x10e   : > { %v627_v21 = vpop.f32.mrf.mxu0 }
 0x10f   : > { %1136 = vrot.lane.b32.xlu0 %v9286_v4, %s9071_s24  ;;  %v9363_v27 = vadd.f32 %v9217_v40, %v627_v21 }
 0x110   : > { %v8396_v22 = vpop.f32.mrf.mxu0 }
 0x111   : > { %1231 = vrot.lane.b32.xlu1 %v9307_v11, %s9070_s23  ;;  %v9417_v36 = vadd.f32 %v8396_v22, %v9217_v40 }
 0x112   : > { %v637_v25 = vpop.f32.mrf.mxu0 }
 0x113   : > { %1227 = vrot.lane.b32.xlu0 %v9307_v11, %s9071_s24  ;;  %v9412_v35 = vadd.f32 %v9217_v40, %v637_v25  ;;  %11371 = vst [vmem:[#allocation12_spill] sm:$0xff] %v9417_v36 }
 0x114   : > { %v8399_v26 = vpop.f32.mrf.mxu0 }
 0x115   : > { %1326 = vrot.lane.b32.xlu1 %v9314_v12, %s9070_s23  ;;  %v9370_v28 = vadd.f32 %v8399_v26, %v9217_v40  ;;  %11370 = vst [vmem:[#allocation11_spill] sm:$0xff] %v9412_v35 }
 0x116   : > { %v647_v29 = vpop.f32.mrf.mxu0 }
 0x117   : > { %1229 = vrot.lane.b32.xlu0 %v9300_v8, %s9071_s24  ;;  %v9377_v30 = vadd.f32 %v9217_v40, %v647_v29 }
 0x118   : > { %v8402_v43 = vpop.f32.mrf.mxu0 }
 0x119   : > { %1324 = vrot.lane.b32.xlu1 %v9321_v15, %s9070_s23  ;;  %v9438_v48 = vadd.f32 %v8402_v43, %v9217_v40 }
 0x11a   : > { %v657_v49 = vpop.f32.mrf.mxu0 }
 0x11b   : > { %1320 = vrot.lane.b32.xlu0 %v9321_v15, %s9071_s24  ;;  %11372 = vst [vmem:[#allocation13_spill] sm:$0xff] %v9438_v48  ;;  %v9446_v54 = vadd.f32 %v9217_v40, %v657_v49 }
 0x11d   : > { %1419 = vrot.lane.b32.xlu1 %v9328_v16, %s9070_s23  ;;  %11373 = vst [vmem:[#allocation14_spill] sm:$0xff] %v9446_v54 }
 0x11f   : > { %1322 = vrot.lane.b32.xlu0 %v9314_v12, %s9071_s24 }
 0x121   : > { %1417 = vrot.lane.b32.xlu1 %v9335_v19, %s9070_s23 }
 0x123   : > { %1413 = vrot.lane.b32.xlu0 %v9335_v19, %s9071_s24 }
 0x125   : > { %1605 = vrot.lane.b32.xlu1 %v9342_v20, %s9070_s23 }
 0x127   : > { %1415 = vrot.lane.b32.xlu0 %v9328_v16, %s9071_s24 }
 0x129   : > { %1603 = vrot.lane.b32.xlu1 %v9349_v23, %s9070_s23 }
 0x12b   : > { %1599 = vrot.lane.b32.xlu0 %v9349_v23, %s9071_s24 }
 0x12d   : > { %1791 = vrot.lane.b32.xlu1 %v9356_v24, %s9070_s23 }
 0x12f   : > { %1601 = vrot.lane.b32.xlu0 %v9342_v20, %s9071_s24 }
 0x131   : > { %1789 = vrot.lane.b32.xlu1 %v9363_v27, %s9070_s23 }
 0x133   : > { %1785 = vrot.lane.b32.xlu0 %v9363_v27, %s9071_s24 }
 0x135   : > { %1977 = vrot.lane.b32.xlu1 %v9370_v28, %s9070_s23 }
 0x137   : > { %1787 = vrot.lane.b32.xlu0 %v9356_v24, %s9071_s24 }
 0x139   : > { %1975 = vrot.lane.b32.xlu1 %v9377_v30, %s9070_s23 }
 0x13b   : > { %1971 = vrot.lane.b32.xlu0 %v9377_v30, %s9071_s24 }
 0x13d   : > { %1973 = vrot.lane.b32.xlu1 %v9370_v28, %s9071_s24 }
 0x13f   : > { %1512 = vrot.lane.b32.xlu0 %v9386_v31, %s9070_s23 }
 0x141   : > { %1510 = vrot.lane.b32.xlu1 %v9391_v32, %s9070_s23 }
 0x143   : > { %1506 = vrot.lane.b32.xlu0 %v9391_v32, %s9071_s24 }
 0x145   : > { %1698 = vrot.lane.b32.xlu1 %v9398_v33, %s9070_s23 }
 0x147   : > { %1508 = vrot.lane.b32.xlu0 %v9386_v31, %s9071_s24 }
 0x149   : > { %1692 = vrot.lane.b32.xlu1 %v9405_v34, %s9071_s24 }
 0x14b   : > { %1696 = vrot.lane.b32.xlu0 %v9405_v34, %s9070_s23 }
 0x14d   : > { %1878 = vrot.lane.b32.xlu1 %v9412_v35, %s9071_s24 }
 0x14f   : > { %1884 = vrot.lane.b32.xlu0 %v9417_v36, %s9070_s23 }
 0x151   : > { %v675_v37 = vpop.permute.xlu0 %674 }
 0x152   : > { %8403 = vmatprep.subr.msk.mxu1 %vm676_vm1, %v675_v37 }
 0x153   : > { %8404 = vmatpush3.xpose.msk.msra.mxu1 %vm676_vm1, %v675_v37  ;;  %v669_v38 = vpop.permute.xlu1 %668  ;;  %1694 = vrot.lane.b32.xlu0 %v9398_v33, %s9071_s24 }
 0x154   : > { %8407 = vmatprep.mubr.msk.f32.mxu1 %vm676_vm1, %v669_v38 }
 0x155   : > { %v673_v39 = vpop.permute.xlu0 %672 }
 0x156   : > { %8405 = vmatprep.subr.msk.mxu1 %vm676_vm1, %v673_v39 }
 0x157   : > { %v769_v41 = vpop.permute.xlu1 %768  ;;  %1882 = vrot.lane.b32.xlu0 %v9412_v35, %s9070_s23  ;;  %8406 = vmatpush3.xpose.msk.msra.mxu1 %vm676_vm1, %v673_v39 }
 0x158   : > { %8410 = vmatprep.subr.msk.mxu1 %vm676_vm1, %v769_v41 }
 0x159   : > { %v671_v45 = vpop.permute.xlu0 %670 }
 0x15a   : > { %8408 = vmatmul.mubr.msk.f32.vlgmr.msra.gmra.mxu1 %vm676_vm1, %v671_v45 }
 0x15b   : > { %v767_v47 = vpop.permute.xlu1 %766  ;;  %1880 = vrot.lane.b32.xlu0 %v9417_v36, %s9071_s24  ;;  %8411 = vmatpush3.xpose.msk.msra.mxu1 %vm676_vm1, %v769_v41 }
 0x15c   : > { %8412 = vmatprep.subr.msk.mxu1 %vm676_vm1, %v767_v47 }
 0x15d   : > { %v763_v51 = vpop.permute.xlu0 %762 }
 0x15e   : > { %8414 = vmatprep.mubr.msk.f32.mxu1 %vm676_vm1, %v763_v51 }
 0x15f   : > { %v862_v53 = vpop.permute.xlu1 %861  ;;  %2070 = vrot.lane.b32.xlu0 %v9438_v48, %s9070_s23  ;;  %8413 = vmatpush3.xpose.msk.msra.mxu1 %vm676_vm1, %v767_v47 }
 0x160   : > { %8417 = vmatprep.subr.msk.mxu1 %vm676_vm1, %v862_v53 }
 0x161   : > { %v765_v55 = vpop.permute.xlu0 %764 }
 0x162   : > { %8415 = vmatmul.mubr.msk.f32.vlgmr.msra.gmra.mxu1 %vm676_vm1, %v765_v55 }
 0x163   : > { %v860_v57 = vpop.permute.xlu1 %859  ;;  %2068 = vrot.lane.b32.xlu0 %v9446_v54, %s9070_s23  ;;  %8418 = vmatpush3.xpose.msk.msra.mxu1 %vm676_vm1, %v862_v53 }
 0x164   : > { %8419 = vmatprep.subr.msk.mxu1 %vm676_vm1, %v860_v57 }
 0x165   : > { %v856_v59 = vpop.permute.xlu0 %855 }
 0x166   : > { %8421 = vmatprep.mubr.msk.f32.mxu1 %vm676_vm1, %v856_v59 }
 0x167   : > { %v955_v60 = vpop.permute.xlu1 %954  ;;  %8420 = vmatpush3.xpose.msk.msra.mxu1 %vm676_vm1, %v860_v57 }
 0x168   : > { %8424 = vmatprep.subr.msk.mxu1 %vm676_vm1, %v955_v60 }
 0x169   : > { %v858_v40 = vpop.permute.xlu0 %857 }
 0x16a   : > { %8422 = vmatmul.mubr.msk.f32.vlgmr.msra.gmra.mxu1 %vm676_vm1, %v858_v40 }
 0x16b   : > { %v953_v61 = vpop.permute.xlu1 %952  ;;  %8425 = vmatpush3.xpose.msk.msra.mxu1 %vm676_vm1, %v955_v60 }
 0x16c   : > { %8426 = vmatprep.subr.msk.mxu1 %vm676_vm1, %v953_v61 }
 0x16d   : > { %v949_v63 = vpop.permute.xlu0 %948 }
 0x16e   : > { %8428 = vmatprep.mubr.msk.f32.mxu1 %vm676_vm1, %v949_v63 }
 0x16f   : > { %v1048_v1 = vpop.permute.xlu1 %1047  ;;  %8427 = vmatpush3.xpose.msk.msra.mxu1 %vm676_vm1, %v953_v61 }
 0x170   : > { %8431 = vmatprep.subr.msk.mxu1 %vm676_vm1, %v1048_v1 }
 0x171   : > { %v951_v2 = vpop.permute.xlu0 %950 }
 0x172   : > { %8429 = vmatmul.mubr.msk.f32.vlgmr.msra.gmra.mxu1 %vm676_vm1, %v951_v2 }
 0x173   : > { %v1046_v5 = vpop.permute.xlu1 %1045  ;;  %8432 = vmatpush3.xpose.msk.msra.mxu1 %vm676_vm1, %v1048_v1 }
 0x174   : > { %8433 = vmatprep.subr.msk.mxu1 %vm676_vm1, %v1046_v5 }
 0x175   : > { %v1042_v6 = vpop.permute.xlu0 %1041 }
 0x176   : > { %8435 = vmatprep.mubr.msk.f32.mxu1 %vm676_vm1, %v1042_v6 }
 0x177   : > { %v1141_v9 = vpop.permute.xlu1 %1140  ;;  %8434 = vmatpush3.xpose.msk.msra.mxu1 %vm676_vm1, %v1046_v5 }
 0x178   : > { %8438 = vmatprep.subr.msk.mxu1 %vm676_vm1, %v1141_v9 }
 0x179   : > { %v1044_v10 = vpop.permute.xlu0 %1043 }
 0x17a   : > { %8436 = vmatmul.mubr.msk.f32.vlgmr.msra.gmra.mxu1 %vm676_vm1, %v1044_v10 }
 0x17b   : > { %v1139_v13 = vpop.permute.xlu1 %1138  ;;  %8439 = vmatpush3.xpose.msk.msra.mxu1 %vm676_vm1, %v1141_v9 }
 0x17c   : > { %8440 = vmatprep.subr.msk.mxu1 %vm676_vm1, %v1139_v13 }
 0x17d   : > { %v1135_v14 = vpop.permute.xlu0 %1134 }
 0x17e   : > { %8442 = vmatprep.mubr.msk.f32.mxu1 %vm676_vm1, %v1135_v14 }
 0x17f   : > { %v1234_v17 = vpop.permute.xlu1 %1233  ;;  %8441 = vmatpush3.xpose.msk.msra.mxu1 %vm676_vm1, %v1139_v13 }
 0x180   : > { %8445 = vmatprep.subr.msk.mxu1 %vm676_vm1, %v1234_v17 }
 0x181   : > { %v1137_v18 = vpop.permute.xlu0 %1136 }
 0x182   : > { %8443 = vmatmul.mubr.msk.f32.vlgmr.msra.gmra.mxu1 %vm676_vm1, %v1137_v18 }
 0x183   : > { %v1232_v21 = vpop.permute.xlu1 %1231  ;;  %8446 = vmatpush3.xpose.msk.msra.mxu1 %vm676_vm1, %v1234_v17 }
 0x184   : > { %8447 = vmatprep.subr.msk.mxu1 %vm676_vm1, %v1232_v21 }
 0x185   : > { %v1228_v22 = vpop.permute.xlu0 %1227 }
 0x186   : > { %8449 = vmatprep.mubr.msk.f32.mxu1 %vm676_vm1, %v1228_v22 }
 0x187   : > { %v1327_v25 = vpop.permute.xlu1 %1326  ;;  %8448 = vmatpush3.xpose.msk.msra.mxu1 %vm676_vm1, %v1232_v21 }
 0x188   : > { %8452 = vmatprep.subr.msk.mxu1 %vm676_vm1, %v1327_v25 }
 0x189   : > { %v1230_v26 = vpop.permute.xlu0 %1229 }
 0x18a   : > { %8450 = vmatmul.mubr.msk.f32.vlgmr.msra.gmra.mxu1 %vm676_vm1, %v1230_v26 }
 0x18b   : > { %v1325_v29 = vpop.permute.xlu1 %1324  ;;  %8453 = vmatpush3.xpose.msk.msra.mxu1 %vm676_vm1, %v1327_v25 }
 0x18c   : > { %8454 = vmatprep.subr.msk.mxu1 %vm676_vm1, %v1325_v29 }
 0x18d   : > { %v1321_v37 = vpop.permute.xlu0 %1320 }
 0x18e   : > { %8456 = vmatprep.mubr.msk.f32.mxu1 %vm676_vm1, %v1321_v37 }
 0x18f   : > { %v1420_v38 = vpop.permute.xlu1 %1419  ;;  %8455 = vmatpush3.xpose.msk.msra.mxu1 %vm676_vm1, %v1325_v29 }
 0x190   : > { %8459 = vmatprep.subr.msk.mxu1 %vm676_vm1, %v1420_v38 }
 0x191   : > { %v1323_v39 = vpop.permute.xlu0 %1322 }
 0x192   : > { %8457 = vmatmul.mubr.msk.f32.vlgmr.msra.gmra.mxu1 %vm676_vm1, %v1323_v39 }
 0x193   : > { %v1418_v41 = vpop.permute.xlu1 %1417  ;;  %8460 = vmatpush3.xpose.msk.msra.mxu1 %vm676_vm1, %v1420_v38 }
 0x194   : > { %8461 = vmatprep.subr.msk.mxu1 %vm676_vm1, %v1418_v41 }
 0x195   : > { %v1414_v43 = vpop.permute.xlu0 %1413 }
 0x196   : > { %8463 = vmatprep.mubr.msk.f32.mxu1 %vm676_vm1, %v1414_v43 }
 0x197   : > { %v1606_v45 = vpop.permute.xlu1 %1605  ;;  %8462 = vmatpush3.xpose.msk.msra.mxu1 %vm676_vm1, %v1418_v41 }
 0x198   : > { %8473 = vmatprep.subr.msk.mxu1 %vm676_vm1, %v1606_v45 }
 0x199   : > { %v1416_v47 = vpop.permute.xlu0 %1415 }
 0x19a   : > { %8464 = vmatmul.mubr.msk.f32.vlgmr.msra.gmra.mxu1 %vm676_vm1, %v1416_v47 }
 0x19b   : > { %v1604_v49 = vpop.permute.xlu1 %1603  ;;  %8474 = vmatpush3.xpose.msk.msra.mxu1 %vm676_vm1, %v1606_v45 }
 0x19c   : > { %8475 = vmatprep.subr.msk.mxu1 %vm676_vm1, %v1604_v49 }
 0x19d   : > { %v1600_v51 = vpop.permute.xlu0 %1599 }
 0x19e   : > { %8477 = vmatprep.mubr.msk.f32.mxu1 %vm676_vm1, %v1600_v51 }
 0x19f   : > { %v1792_v53 = vpop.permute.xlu1 %1791  ;;  %8476 = vmatpush3.xpose.msk.msra.mxu1 %vm676_vm1, %v1604_v49 }
 0x1a0   : > { %8487 = vmatprep.subr.msk.mxu1 %vm676_vm1, %v1792_v53 }
 0x1a1   : > { %v1602_v55 = vpop.permute.xlu0 %1601 }
 0x1a2   : > { %8478 = vmatmul.mubr.msk.f32.vlgmr.msra.gmra.mxu1 %vm676_vm1, %v1602_v55 }
 0x1a3   : > { %v1790_v57 = vpop.permute.xlu1 %1789  ;;  %8488 = vmatpush3.xpose.msk.msra.mxu1 %vm676_vm1, %v1792_v53 }
 0x1a4   : > { %8489 = vmatprep.subr.msk.mxu1 %vm676_vm1, %v1790_v57 }
 0x1a5   : > { %v1786_v59 = vpop.permute.xlu0 %1785 }
 0x1a6   : > { %8491 = vmatprep.mubr.msk.f32.mxu1 %vm676_vm1, %v1786_v59 }
 0x1a7   : > { %v1978_v60 = vpop.permute.xlu1 %1977  ;;  %8490 = vmatpush3.xpose.msk.msra.mxu1 %vm676_vm1, %v1790_v57 }
 0x1a8   : > { %8501 = vmatprep.subr.msk.mxu1 %vm676_vm1, %v1978_v60 }
 0x1a9   : > { %v1788_v40 = vpop.permute.xlu0 %1787 }
 0x1aa   : > { %8492 = vmatmul.mubr.msk.f32.vlgmr.msra.gmra.mxu1 %vm676_vm1, %v1788_v40 }
 0x1ab   : > { %v1976_v61 = vpop.permute.xlu1 %1975  ;;  %8502 = vmatpush3.xpose.msk.msra.mxu1 %vm676_vm1, %v1978_v60 }
 0x1ac   : > { %8503 = vmatprep.subr.msk.mxu1 %vm676_vm1, %v1976_v61 }
 0x1ad   : > { %v1972_v63 = vpop.permute.xlu0 %1971 }
 0x1ae   : > { %8505 = vmatprep.mubr.msk.f32.mxu1 %vm676_vm1, %v1972_v63 }
 0x1af   : > { %v1974_v1 = vpop.permute.xlu1 %1973  ;;  %8504 = vmatpush3.xpose.msk.msra.mxu1 %vm676_vm1, %v1976_v61 }
 0x1b0   : > { %8515 = vmatprep.subr.mxu1 %v9220_v42 }
 0x1b1   : > { %v1513_v2 = vpop.permute.xlu0 %1512 }
 0x1b2   : > { %8466 = vmatprep.subr.msk.mxu0 %vm676_vm1, %v1513_v2  ;;  %8506 = vmatmul.mubr.msk.f32.vlgmr.msra.gmra.mxu1 %vm676_vm1, %v1974_v1 }
 0x1b3   : > { %v1511_v5 = vpop.permute.xlu1 %1510  ;;  %8467 = vmatpush3.xpose.msk.msra.mxu0 %vm676_vm1, %v1513_v2  ;;  %8516 = vmatpush3.msra.mxu1 %v9220_v42 }
 0x1b4   : > { %8468 = vmatprep.subr.msk.mxu0 %vm676_vm1, %v1511_v5  ;;  %8517 = vmatprep.subr.mxu1 %v9223_v44 }
 0x1b5   : > { %8518 = vmatpush3.msra.mxu1 %v9223_v44  ;;  %v1507_v6 = vpop.permute.xlu0 %1506 }
 0x1b6   : > { %8470 = vmatprep.mubr.msk.f32.mxu0 %vm676_vm1, %v1507_v6  ;;  %8522 = vmatprep.subr.mxu1 %v9230_v46 }
 0x1b7   : > { %v1699_v9 = vpop.permute.xlu1 %1698  ;;  %8469 = vmatpush3.xpose.msk.msra.mxu0 %vm676_vm1, %v1511_v5 }
 0x1b8   : > { %8480 = vmatprep.subr.msk.mxu0 %vm676_vm1, %v1699_v9 }
 0x1b9   : > { %v1509_v10 = vpop.permute.xlu0 %1508 }
 0x1ba   : > { %8471 = vmatmul.mubr.msk.f32.vlgmr.msra.gmra.mxu0 %vm676_vm1, %v1509_v10 }
 0x1bb   : > { %v1693_v42 = vpop.permute.xlu1 %1692  ;;  %8481 = vmatpush3.xpose.msk.msra.mxu0 %vm676_vm1, %v1699_v9 }
 0x1bc   : > { %8484 = vmatprep.mubr.msk.f32.mxu0 %vm676_vm1, %v1693_v42 }
 0x1bd   : > { %v1697_v13 = vpop.permute.xlu0 %1696 }
 0x1be   : > { %8482 = vmatprep.subr.msk.mxu0 %vm676_vm1, %v1697_v13 }
 0x1bf   : > { %8483 = vmatpush3.xpose.msk.msra.mxu0 %vm676_vm1, %v1697_v13  ;;  %v1879_v17 = vpop.permute.xlu1 %1878 }
 0x1c1   : > { %v1885_v44 = vpop.permute.xlu0 %1884 }
 0x1c2   : > { %8494 = vmatprep.subr.msk.mxu0 %vm676_vm1, %v1885_v44 }
 0x1c5   : > { %v1695_v14 = vpop.permute.xlu0 %1694 }
 0x1c6   : > { %8485 = vmatmul.mubr.msk.f32.vlgmr.msra.gmra.mxu0 %vm676_vm1, %v1695_v14 }
 0x1c7   : > { %8495 = vmatpush3.xpose.msk.msra.mxu0 %vm676_vm1, %v1885_v44  ;;  %8498 = vmatprep.mubr.msk.f32.mxu0 %vm676_vm1, %v1879_v17 }
 0x1c9   : > { %v1883_v18 = vpop.permute.xlu0 %1882 }
 0x1ca   : > { %8496 = vmatprep.subr.msk.mxu0 %vm676_vm1, %v1883_v18 }
 0x1cb   : > { %8497 = vmatpush3.xpose.msk.msra.mxu0 %vm676_vm1, %v1883_v18 }
 0x1cd   : > { %v1881_v21 = vpop.permute.xlu0 %1880 }
 0x1ce   : > { %8499 = vmatmul.mubr.msk.f32.vlgmr.msra.gmra.mxu0 %vm676_vm1, %v1881_v21 }
 0x1d1   : > { %v2071_v22 = vpop.permute.xlu0 %2070 }
 0x1d2   : > { %8508 = vmatprep.subr.msk.mxu0 %vm676_vm1, %v2071_v22 }
 0x1d3   : > { %8509 = vmatpush3.xpose.msk.msra.mxu0 %vm676_vm1, %v2071_v22 }
 0x1d5   : > { %v2069_v25 = vpop.permute.xlu0 %2068 }
 0x1d6   : > { %8510 = vmatprep.subr.msk.mxu0 %vm676_vm1, %v2069_v25 }
 0x1d7   : > { %8511 = vmatpush3.xpose.msk.msra.mxu0 %vm676_vm1, %v2069_v25 }
 0x1d8   : > { %8529 = vmatprep.subr.mxu0 %v9244_v52 }
 0x21a   : > { %v9539_v26 = vpop.f32.mrf.mxu1 }
 0x21c   : > { %v9541_v29 = vpop.f32.mrf.mxu1 }
 0x222   : > { %v9543_v37 = vpop.f32.mrf.mxu1 }
 0x224   : > { %v9545_v38 = vpop.f32.mrf.mxu1 }
 0x22a   : > { %v9547_v39 = vpop.f32.mrf.mxu1 }
 0x22b   : > { %v2171_v41 = vsel %vm2155_vm2, %v9547_v39, -inf }
 0x22c   : > { %2172 = vmax.xlane.f32.xlu1 %v2171_v41  ;;  %v9551_v43 = vpop.f32.mrf.mxu1 }
 0x22d   : > { %v2168_v45 = vsel %vm2155_vm2, %v9551_v43, -inf }
 0x22e   : > { %2169 = vmax.xlane.f32.xlu0 %v2168_v45 }
 0x232   : > { %v9555_v47 = vpop.f32.mrf.mxu1 }
 0x234   : > { %v9557_v49 = vpop.f32.mrf.mxu1 }
 0x23a   : > { %v9559_v51 = vpop.f32.mrf.mxu1 }
 0x23b   : > { %v2183_v53 = vsel %vm2155_vm2, %v9559_v51, -inf }
 0x23c   : > { %2184 = vmax.xlane.f32.xlu0 %v2183_v53  ;;  %v9563_v55 = vpop.f32.mrf.mxu1 }
 0x23d   : > { %v2180_v57 = vsel %vm2155_vm2, %v9563_v55, -inf }
 0x23e   : > { %2181 = vmax.xlane.f32.xlu1 %v2180_v57 }
 0x242   : > { %v9567_v59 = vpop.f32.mrf.mxu1 }
 0x244   : > { %v9569_v60 = vpop.f32.mrf.mxu1 }
 0x24a   : > { %v9571_v40 = vpop.f32.mrf.mxu1 }
 0x24b   : > { %v2195_v61 = vsel %vm2155_vm2, %v9571_v40, -inf }
 0x24c   : > { %2196 = vmax.xlane.f32.xlu1 %v2195_v61  ;;  %v9575_v63 = vpop.f32.mrf.mxu1  ;;  %v2156_v61 = vsel %vm2155_vm2, %v9541_v29, -inf }
 0x24d   : > { %v2192_v1 = vsel %vm2155_vm2, %v9575_v63, -inf }
 0x250   : > { %2193 = vmax.xlane.f32.xlu1 %v2192_v1  ;;  %v2162_v1 = vsel %vm2155_vm2, %v9545_v38, -inf }
 0x252   : > { %v9579_v2 = vpop.f32.mrf.mxu1 }
 0x254   : > { %v9581_v5 = vpop.f32.mrf.mxu1 }
 0x25a   : > { %v9583_v6 = vpop.f32.mrf.mxu1 }
 0x25b   : > { %v2207_v9 = vsel %vm2155_vm2, %v9583_v6, -inf }
 0x25c   : > { %2208 = vmax.xlane.f32.xlu0 %v2207_v9  ;;  %v9587_v10 = vpop.f32.mrf.mxu1  ;;  %v2165_v9 = vsel %vm2155_vm2, %v9543_v37, -inf }
 0x25d   : > { %v2204_v42 = vsel %vm2155_vm2, %v9587_v10, -inf }
 0x25e   : > { %2205 = vmax.xlane.f32.xlu1 %v2204_v42  ;;  %v2177_v42 = vsel %vm2155_vm2, %v9555_v47, -inf }
 0x262   : > { %v9591_v13 = vpop.f32.mrf.mxu1 }
 0x263   : > { %v2219_v44 = vsel %vm2155_vm2, %v9591_v13, -inf }
 0x264   : > { %2220 = vmax.xlane.f32.xlu1 %v2219_v44  ;;  %v9595_v14 = vpop.f32.mrf.mxu1  ;;  %v2159_v44 = vsel %vm2155_vm2, %v9539_v26, -inf }
 0x265   : > { %v2216_v17 = vsel %vm2155_vm2, %v9595_v14, -inf }
 0x268   : > { %2217 = vmax.xlane.f32.xlu1 %v2216_v17  ;;  %v2189_v17 = vsel %vm2155_vm2, %v9567_v59, -inf }
 0x26a   : > { %v9599_v18 = vpop.f32.mrf.mxu1 }
 0x26b   : > { %v2231_v21 = vsel %vm2155_vm2, %v9599_v18, -inf }
 0x26c   : > { %2232 = vmax.xlane.f32.xlu0 %v2231_v21  ;;  %v9603_v22 = vpop.f32.mrf.mxu1  ;;  %v2174_v21 = vsel %vm2155_vm2, %v9557_v49, -inf }
 0x26d   : > { %v2228_v25 = vsel %vm2155_vm2, %v9603_v22, -inf }
 0x26e   : > { %2229 = vmax.xlane.f32.xlu1 %v2228_v25 }
 0x272   : > { %v9607_v41 = vpop.f32.mrf.mxu1 }
 0x273   : > { %v2243_v45 = vsel %vm2155_vm2, %v9607_v41, -inf }
 0x274   : > { %2244 = vmax.xlane.f32.xlu1 %v2243_v45  ;;  %v9611_v53 = vpop.f32.mrf.mxu1  ;;  %v2201_v45 = vsel %vm2155_vm2, %v9579_v2, -inf }
 0x275   : > { %v2240_v57 = vsel %vm2155_vm2, %v9611_v53, -inf }
 0x278   : > { %2241 = vmax.xlane.f32.xlu1 %v2240_v57  ;;  %v2186_v57 = vsel %vm2155_vm2, %v9569_v60, -inf }
 0x27a   : > { %v9634_v25 = vpop.f32.mrf.mxu0 }
 0x282   : > { %2066 = vrot.lane.b32.xlu0 %v9438_v48, %s9071_s24 }
 0x289   : > { %2064 = vrot.lane.b32.xlu1 %v9446_v54, %s9071_s24 }
 0x2a1   : > { %2157 = vmax.xlane.f32.xlu0 %v2156_v61  ;;  %v9647_v61 = vpop.f32.mrf.mxu0 }
 0x2a5   : > { %2163 = vmax.xlane.f32.xlu0 %v2162_v1 }
 0x2a9   : > { %2166 = vmax.xlane.f32.xlu0 %v2165_v9  ;;  %v9651_v9 = vpop.f32.mrf.mxu0 }
 0x2ad   : > { %2178 = vmax.xlane.f32.xlu0 %v2177_v42  ;;  %2160 = vmax.xlane.f32.xlu1 %v2159_v44  ;;  %v2198_v44 = vsel %vm2155_vm2, %v9581_v5, -inf }
 0x2b1   : > { %2190 = vmax.xlane.f32.xlu0 %v2189_v17  ;;  %2175 = vmax.xlane.f32.xlu1 %v2174_v21  ;;  %v2213_v17 = vsel %vm2155_vm2, %v9634_v25, -inf  ;;  %v9659_v21 = vpop.f32.mrf.mxu0 }
 0x2b3   : > { %v9665_v54 = vpop.f32.mrf.mxu0 }
 0x2b4   : > { %11374 = vst [vmem:[#allocation15_spill] sm:$0xff] %v9665_v54 }
 0x2b5   : > { %v2173_v1 = vpop.xlane.xlu1 %2172  ;;  %2202 = vmax.xlane.f32.xlu0 %v2201_v45  ;;  %2187 = vmax.xlane.f32.xlu1 %v2186_v57  ;;  %v2210_v45 = vsel %vm2155_vm2, %v9647_v61, -inf  ;;  %v2225_v57 = vsel %vm2155_vm2, %v9651_v9, -inf  ;;  %v9671_v48 = vpop.f32.mrf.mxu0 }
 0x2b6   : > { %7402 = vst.msk [vmem:[%s9641_s28 + $0x28] sm:$0xff] %vm7396_vm3, %v2173_v1  ;;  %11375 = vst [vmem:[#allocation16_spill] sm:$0xff] %v9671_v48  ;;  %v2234_v35 = vsel %vm2155_vm2, %v9671_v48, -inf  ;;  %v2257_v31 = vsub.f32 %v9547_v39, %v2173_v1 }
 0x2b7   : > { %v2170_v42 = vpop.xlane.xlu0 %2169 }
 0x2b8   : > { %7401 = vst.msk [vmem:[%s9641_s28 + $0x20] sm:$0xff] %vm7396_vm3, %v2170_v42  ;;  %v2256_v32 = vsub.f32 %v9551_v43, %v2170_v42  ;;  %v2294_v62 = vmul.f32 1.442695, %v2257_v31 }
 0x2b9   : > { %2199 = vmax.xlane.f32.xlu1 %v2198_v44  ;;  %2214 = vmax.xlane.f32.xlu0 %v2213_v17  ;;  %v2222_v44 = vsel %vm2155_vm2, %v9659_v21, -inf  ;;  %v2237_v17 = vsel %vm2155_vm2, %v9665_v54, -inf }
 0x2ba   : > { %v2292_v12 = vmul.f32 1.442695, %v2256_v32 }
 0x2bc   : > { %8925 = vpow2.f32 %v2292_v12 }
 0x2bd   : > { %2211 = vmax.xlane.f32.xlu1 %v2210_v45  ;;  %2226 = vmax.xlane.f32.xlu0 %v2225_v57  ;;  %8927 = vpow2.f32 %v2294_v62 }
 0x2c1   : > { %2223 = vmax.xlane.f32.xlu1 %v2222_v44  ;;  %2238 = vmax.xlane.f32.xlu0 %v2237_v17 }
 0x2c5   : > { %2235 = vmax.xlane.f32.xlu1 %v2234_v35  ;;  %v2185_v45 = vpop.xlane.xlu0 %2184 }
 0x2c6   : > { %7406 = vst.msk [vmem:[%s9641_s28 + $0x48] sm:$0xff] %vm7396_vm3, %v2185_v45  ;;  %v2261_v48 = vsub.f32 %v9559_v51, %v2185_v45  ;;  %v9053_v45 = vld [vmem:[%s11272_s2 + $0x38] sm:$0xff] }
 0x2c7   : > { %v2182_v57 = vpop.xlane.xlu1 %2181 }
 0x2c8   : > { %7405 = vst.msk [vmem:[%s9641_s28 + $0x40] sm:$0xff] %vm7396_vm3, %v2182_v57  ;;  %v2260_v7 = vsub.f32 %v9563_v55, %v2182_v57  ;;  %v2302_v39 = vmul.f32 1.442695, %v2261_v48  ;;  %v9056_v57 = vld [vmem:[%s11272_s2 + $0x20] sm:$0xff] }
 0x2ca   : > { %v2300_v54 = vmul.f32 1.442695, %v2260_v7 }
 0x2cc   : > { %8929 = vpow2.f32 %v2300_v54 }
 0x2cd   : > { %8931 = vpow2.f32 %v2302_v39  ;;  %v9058_v39 = vld [vmem:[%s11272_s2 + $0x10] sm:$0xff] }
 0x2d5   : > { %v2197_v36 = vpop.xlane.xlu1 %2196 }
 0x2d6   : > { %7410 = vst.msk [vmem:[%s9641_s28 + $0x68] sm:$0xff] %vm7396_vm3, %v2197_v36  ;;  %v2265_v32 = vsub.f32 %v9571_v40, %v2197_v36 }
 0x2d8   : > { %v2310_v31 = vmul.f32 1.442695, %v2265_v32 }
 0x2d9   : > { %v2194_v34 = vpop.xlane.xlu1 %2193 }
 0x2da   : > { %7409 = vst.msk [vmem:[%s9641_s28 + $0x60] sm:$0xff] %vm7396_vm3, %v2194_v34  ;;  %v2264_v43 = vsub.f32 %v9575_v63, %v2194_v34 }
 0x2dc   : > { %v2308_v55 = vmul.f32 1.442695, %v2264_v43 }
 0x2de   : > { %8933 = vpow2.f32 %v2308_v55  ;;  %v9060_v55 = vld [vmem:[%s11272_s2] sm:$0xff] }
 0x2df   : > { %8935 = vpow2.f32 %v2310_v31 }
 0x2e5   : > { %v2209_v44 = vpop.xlane.xlu0 %2208 }
 0x2e6   : > { %7414 = vst.msk [vmem:[%s9641_s28 + $0x88] sm:$0xff] %vm7396_vm3, %v2209_v44  ;;  %v2269_v51 = vsub.f32 %v9583_v6, %v2209_v44  ;;  %v9711_v6 = vpop.eup %8925 }
 0x2e7   : > { %v2206_v17 = vpop.xlane.xlu1 %2205 }
 0x2e8   : > { %7413 = vst.msk [vmem:[%s9641_s28 + $0x80] sm:$0xff] %vm7396_vm3, %v2206_v17  ;;  %v2268_v42 = vsub.f32 %v9587_v10, %v2206_v17  ;;  %v2318_v62 = vmul.f32 1.442695, %v2269_v51  ;;  %v9057_v17 = vld [vmem:[%s11272_s2 + $0x18] sm:$0xff] }
 0x2ea   : > { %v2316_v7 = vmul.f32 1.442695, %v2268_v42  ;;  %v3742_v42 = vld [vmem:[%s9788_s8 + $0x10] sm:$0xff] }
 0x2ec   : > { %8937 = vpow2.f32 %v2316_v7  ;;  %v3744_v7 = vld [vmem:[%s9788_s8 + $0x20] sm:$0xff] }
 0x2ed   : > { %v2221_v35 = vpop.xlane.xlu1 %2220  ;;  %8939 = vpow2.f32 %v2318_v62 }
 0x2ee   : > { %7418 = vst.msk [vmem:[%s9641_s28 + $0xa8] sm:$0xff] %vm7396_vm3, %v2221_v35  ;;  %v2273_v36 = vsub.f32 %v9591_v13, %v2221_v35  ;;  %v9719_v13 = vpop.eup %8927 }
 0x2f1   : > { %v2218_v33 = vpop.xlane.xlu1 %2217 }
 0x2f2   : > { %7417 = vst.msk [vmem:[%s9641_s28 + $0xa0] sm:$0xff] %vm7396_vm3, %v2218_v33  ;;  %v2272_v34 = vsub.f32 %v9595_v14, %v2218_v33  ;;  %v2326_v33 = vmul.f32 1.442695, %v2273_v36 }
 0x2f4   : > { %v2324_v54 = vmul.f32 1.442695, %v2272_v34 }
 0x2f5   : > { %v2233_v15 = vpop.xlane.xlu0 %2232 }
 0x2f6   : > { %7422 = vst.msk [vmem:[%s9641_s28 + $0xc8] sm:$0xff] %vm7396_vm3, %v2233_v15  ;;  %v2277_v10 = vsub.f32 %v9599_v18, %v2233_v15  ;;  %8941 = vpow2.f32 %v2324_v54 }
 0x2f7   : > { %v2230_v4 = vpop.xlane.xlu1 %2229  ;;  %8943 = vpow2.f32 %v2326_v33 }
 0x2f8   : > { %7421 = vst.msk [vmem:[%s9641_s28 + $0xc0] sm:$0xff] %vm7396_vm3, %v2230_v4  ;;  %v2276_v40 = vsub.f32 %v9603_v22, %v2230_v4  ;;  %v9723_v22 = vpop.eup %8929 }
 0x2f9   : > { %v2067_v63 = vpop.permute.xlu0 %2066  ;;  %v9733_v18 = vpop.eup %8931 }
 0x2fa   : > { %v2332_v4 = vmul.f32 1.442695, %v2276_v40 }
 0x2fc   : > { %8945 = vpow2.f32 %v2332_v4 }
 0x2fd   : > { %v2245_v1 = vpop.xlane.xlu1 %2244 }
 0x2fe   : > { %7426 = vst.msk [vmem:[%s9641_s28 + $0xe8] sm:$0xff] %vm7396_vm3, %v2245_v1  ;;  %v2281_v15 = vsub.f32 %v9607_v41, %v2245_v1  ;;  %v3741_v1 = vld [vmem:[%s9788_s8 + $0x8] sm:$0xff] }
 0x301   : > { %v2242_v12 = vpop.xlane.xlu1 %2241 }
 0x302   : > { %7425 = vst.msk [vmem:[%s9641_s28 + $0xe0] sm:$0xff] %vm7396_vm3, %v2242_v12  ;;  %v2280_v14 = vsub.f32 %v9611_v53, %v2242_v12  ;;  %v9736_v53 = vpop.eup %8933  ;;  %v3743_v12 = vld [vmem:[%s9788_s8 + $0x18] sm:$0xff] }
 0x303   : > { %v9745_v41 = vpop.eup %8935 }
 0x305   : > { %v2065_v48 = vpop.permute.xlu1 %2064 }
 0x306   : > { %8512 = vmatprep.mubr.msk.f32.mxu0 %vm676_vm1, %v2065_v48 }
 0x307   : > { %8513 = vmatmul.mubr.msk.f32.vlgmr.msra.gmra.mxu0 %vm676_vm1, %v2067_v63  ;;  %v3746_v63 = vld [vmem:[%s9788_s8 + $0x30] sm:$0xff] }
 0x308   : > { %8530 = vmatpush3.msra.mxu0 %v9244_v52  ;;  %8533 = vmatprep.mubr.msk.f32.mxu0 %vm2155_vm2, %v9711_v6  ;;  %v2334_v52 = vmul.f32 1.442695, %v2277_v10 }
 0x309   : > { %8531 = vmatprep.subr.mxu0 %v9251_v56 }
 0x30a   : > { %8532 = vmatpush3.msra.mxu0 %v9251_v56  ;;  %v2340_v56 = vmul.f32 1.442695, %v2280_v14  ;;  %8947 = vpow2.f32 %v2334_v52 }
 0x30b   : > { %8543 = vmatprep.subr.mxu0 %v9272_v0  ;;  %8534 = vmatmul.mubr.msk.f32.vlgmr.msra.gmra.mxu0 %vm2155_vm2, %v9719_v13 }
 0x30c   : > { %8544 = vmatpush3.msra.mxu0 %v9272_v0  ;;  %8547 = vmatprep.mubr.msk.f32.mxu0 %vm2155_vm2, %v9723_v22  ;;  %v2342_v0 = vmul.f32 1.442695, %v2281_v15  ;;  %8949 = vpow2.f32 %v2340_v56 }
 0x30d   : > { %8545 = vmatprep.subr.mxu0 %v9279_v3 }
 0x30e   : > { %8546 = vmatpush3.msra.mxu0 %v9279_v3  ;;  %v9748_v3 = vpop.eup %8937  ;;  %8951 = vpow2.f32 %v2342_v0 }
 0x30f   : > { %8557 = vmatprep.subr.mxu0 %v9300_v8  ;;  %8548 = vmatmul.mubr.msk.f32.vlgmr.msra.gmra.mxu0 %vm2155_vm2, %v9733_v18 }
 0x310   : > { %8558 = vmatpush3.msra.mxu0 %v9300_v8  ;;  %8561 = vmatprep.mubr.msk.f32.mxu0 %vm2155_vm2, %v9736_v53  ;;  %v9757_v8 = vpop.eup %8939 }
 0x311   : > { %8559 = vmatprep.subr.mxu0 %v9307_v11 }
 0x312   : > { %8560 = vmatpush3.msra.mxu0 %v9307_v11  ;;  %v9760_v11 = vpop.eup %8941 }
 0x313   : > { %8571 = vmatprep.subr.mxu0 %v9328_v16  ;;  %8562 = vmatmul.mubr.msk.f32.vlgmr.msra.gmra.mxu0 %vm2155_vm2, %v9745_v41 }
 0x314   : > { %8572 = vmatpush3.msra.mxu0 %v9328_v16  ;;  %8575 = vmatprep.mubr.msk.f32.mxu0 %vm2155_vm2, %v9748_v3  ;;  %v9769_v16 = vpop.eup %8943 }
 0x315   : > { %8573 = vmatprep.subr.mxu0 %v9335_v19 }
 0x316   : > { %8574 = vmatpush3.msra.mxu0 %v9335_v19  ;;  %v9772_v19 = vpop.eup %8945 }
 0x317   : > { %8585 = vmatprep.subr.mxu0 %v9342_v20  ;;  %8576 = vmatmul.mubr.msk.f32.vlgmr.msra.gmra.mxu0 %vm2155_vm2, %v9757_v8 }
 0x318   : > { %8586 = vmatpush3.msra.mxu0 %v9342_v20  ;;  %8589 = vmatprep.mubr.msk.f32.mxu0 %vm2155_vm2, %v9760_v11  ;;  %v9781_v20 = vpop.eup %8947 }
 0x319   : > { %8587 = vmatprep.subr.mxu0 %v9349_v23 }
 0x31a   : > { %8588 = vmatpush3.msra.mxu0 %v9349_v23  ;;  %v9790_v23 = vpop.eup %8949 }
 0x31b   : > { %8599 = vmatprep.subr.mxu0 %v9356_v24  ;;  %8590 = vmatmul.mubr.msk.f32.vlgmr.msra.gmra.mxu0 %vm2155_vm2, %v9769_v16 }
 0x31c   : > { %8600 = vmatpush3.msra.mxu0 %v9356_v24  ;;  %8603 = vmatprep.mubr.msk.f32.mxu0 %vm2155_vm2, %v9772_v19  ;;  %v3740_v24 = vld [vmem:[%s9788_s8] sm:$0xff] }
 0x31d   : > { %8601 = vmatprep.subr.mxu0 %v9363_v27 }
 0x31e   : > { %8602 = vmatpush3.msra.mxu0 %v9363_v27  ;;  %v9800_v27 = vpop.eup %8951 }
 0x31f   : > { %8613 = vmatprep.subr.mxu0 %v9370_v28  ;;  %8604 = vmatmul.mubr.msk.f32.vlgmr.msra.gmra.mxu0 %vm2155_vm2, %v9781_v20 }
 0x320   : > { %8614 = vmatpush3.msra.mxu0 %v9370_v28  ;;  %8617 = vmatprep.mubr.msk.f32.mxu0 %vm2155_vm2, %v9790_v23  ;;  %v9054_v28 = vld [vmem:[%s11272_s2 + $0x30] sm:$0xff] }
 0x321   : > { %8615 = vmatprep.subr.mxu0 %v9377_v30 }
 0x322   : > { %8616 = vmatpush3.msra.mxu0 %v9377_v30  ;;  %v9055_v30 = vld [vmem:[%s11272_s2 + $0x28] sm:$0xff] }
 0x323   : > { %8627 = vmatprep.subr.mxu0 %v9053_v45  ;;  %8618 = vmatmul.mubr.msk.f32.vlgmr.msra.gmra.mxu0 %vm2155_vm2, %v9800_v27 }
 0x324   : > { %8628 = vmatpush3.msra.mxu0 %v9053_v45  ;;  %8643 = vmatprep.mubr.msk.f32.mxu0 %vm344_vm0, %v3740_v24 }
 0x325   : > { %8629 = vmatprep.subr.mxu0 %v9054_v28 }
 0x326   : > { %8630 = vmatpush3.msra.mxu0 %v9054_v28  ;;  %v3749_v28 = vld [vmem:[%s9788_s8 + $0x48] sm:$0xff] }
 0x327   : > { %8631 = vmatprep.subr.mxu0 %v9055_v30 }
 0x328   : > { %8632 = vmatpush3.msra.mxu0 %v9055_v30 }
 0x329   : > { %8633 = vmatprep.subr.mxu0 %v9056_v57 }
 0x32a   : > { %8634 = vmatpush3.msra.mxu0 %v9056_v57  ;;  %v2158_v44 = vpop.xlane.xlu0 %2157 }
 0x32b   : > { %8635 = vmatprep.subr.mxu0 %v9057_v17  ;;  %v2252_v35 = vsub.f32 %v9541_v29, %v2158_v44  ;;  %7397 = vst.msk [vmem:[%s9641_s28] sm:$0xff] %vm7396_vm3, %v2158_v44  ;;  %v9059_v29 = vld [vmem:[%s11272_s2 + $0x8] sm:$0xff] }
 0x32c   : > { %8636 = vmatpush3.msra.mxu0 %v9057_v17 }
 0x32d   : > { %v2284_v43 = vmul.f32 1.442695, %v2252_v35  ;;  %8637 = vmatprep.subr.mxu0 %v9058_v39 }
 0x32e   : > { %8638 = vmatpush3.msra.mxu0 %v9058_v39  ;;  %v2164_v32 = vpop.xlane.xlu0 %2163 }
 0x32f   : > { %8953 = vpow2.f32 %v2284_v43  ;;  %8639 = vmatprep.subr.mxu0 %v9059_v29  ;;  %7399 = vst.msk [vmem:[%s9641_s28 + $0x10] sm:$0xff] %vm7396_vm3, %v2164_v32  ;;  %v2254_v51 = vsub.f32 %v9545_v38, %v2164_v32  ;;  %v3745_v38 = vld [vmem:[%s9788_s8 + $0x28] sm:$0xff]  ;;  %v3751_v43 = vld [vmem:[%s9788_s8 + $0x58] sm:$0xff]  ;;  %v3752_v32 = vld [vmem:[%s9788_s8 + $0x60] sm:$0xff] }
 0x330   : > { %8640 = vmatpush3.msra.mxu0 %v9059_v29 }
 0x331   : > { %8641 = vmatprep.subr.mxu0 %v9060_v55  ;;  %v2288_v54 = vmul.f32 1.442695, %v2254_v51 }
 0x332   : > { %8642 = vmatpush3.msra.mxu0 %v9060_v55  ;;  %v2167_v31 = vpop.xlane.xlu0 %2166 }
 0x333   : > { %8644 = vmatmul.mubr.msk.f32.vlgmr.msra.gmra.mxu0 %vm344_vm0, %v3741_v1  ;;  %7400 = vst.msk [vmem:[%s9641_s28 + $0x18] sm:$0xff] %vm7396_vm3, %v2167_v31  ;;  %v2255_v34 = vsub.f32 %v9543_v37, %v2167_v31  ;;  %v3753_v31 = vld [vmem:[%s9788_s8 + $0x68] sm:$0xff] }
 0x334   : > { %8646 = vmatprep.mubr.msk.f32.mxu0 %vm344_vm0, %v3742_v42 }
 0x335   : > { %v2290_v37 = vmul.f32 1.442695, %v2255_v34 }
 0x336   : > { %v2161_v62 = vpop.xlane.xlu1 %2160  ;;  %v2179_v36 = vpop.xlane.xlu0 %2178 }
 0x337   : > { %v2253_v48 = vsub.f32 %v9539_v26, %v2161_v62  ;;  %7398 = vst.msk [vmem:[%s9641_s28 + $0x8] sm:$0xff] %vm7396_vm3, %v2161_v62  ;;  %7404 = vst.msk [vmem:[%s9641_s28 + $0x38] sm:$0xff] %vm7396_vm3, %v2179_v36  ;;  %8647 = vmatmul.mubr.msk.f32.gmra.mxu0 %vm344_vm0, %v3743_v12  ;;  %v2259_v33 = vsub.f32 %v9555_v47, %v2179_v36  ;;  %v3747_v47 = vld [vmem:[%s9788_s8 + $0x38] sm:$0xff] }
 0x338   : > { %8649 = vmatprep.mubr.msk.f32.mxu0 %vm344_vm0, %v3744_v7 }
 0x339   : > { %v2286_v40 = vmul.f32 1.442695, %v2253_v48  ;;  %v2298_v15 = vmul.f32 1.442695, %v2259_v33  ;;  %v11377_v33 = vld [vmem:[#allocation16_spill] sm:$0xff] }
 0x33a   : > { %v2176_v10 = vpop.xlane.xlu1 %2175  ;;  %v2191_v26 = vpop.xlane.xlu0 %2190 }
 0x33b   : > { %8955 = vpow2.f32 %v2286_v40  ;;  %v2258_v4 = vsub.f32 %v9557_v49, %v2176_v10  ;;  %7403 = vst.msk [vmem:[%s9641_s28 + $0x30] sm:$0xff] %vm7396_vm3, %v2176_v10  ;;  %7408 = vst.msk [vmem:[%s9641_s28 + $0x58] sm:$0xff] %vm7396_vm3, %v2191_v26  ;;  %8650 = vmatmul.mubr.msk.f32.gmra.mxu0 %vm344_vm0, %v3745_v38  ;;  %v3748_v49 = vld [vmem:[%s9788_s8 + $0x40] sm:$0xff]  ;;  %v2263_v56 = vsub.f32 %v9567_v59, %v2191_v26  ;;  %v3750_v59 = vld [vmem:[%s9788_s8 + $0x50] sm:$0xff] }
 0x33c   : > { %v9861_v14 = vpop.eup %8953  ;;  %8957 = vpow2.f32 %v2288_v54  ;;  %8652 = vmatprep.mubr.msk.f32.mxu0 %vm344_vm0, %v3746_v63  ;;  %v11376_v63 = vld [vmem:[#allocation15_spill] sm:$0xff]  ;;  %v11378_v26 = vld [vmem:[#allocation2_spill] sm:$0xff] }
 0x33d   : > { %v2296_v52 = vmul.f32 1.442695, %v2258_v4  ;;  %8519 = vmatprep.mubr.msk.f32.mxu1 %vm2155_vm2, %v9861_v14  ;;  %8959 = vpow2.f32 %v2290_v37  ;;  %v2306_v57 = vmul.f32 1.442695, %v2263_v56 }
 0x33e   : > { %v2188_v0 = vpop.xlane.xlu1 %2187  ;;  %v2203_v24 = vpop.xlane.xlu0 %2202 }
 0x33f   : > { %8961 = vpow2.f32 %v2296_v52  ;;  %v2262_v45 = vsub.f32 %v9569_v60, %v2188_v0  ;;  %7407 = vst.msk [vmem:[%s9641_s28 + $0x50] sm:$0xff] %vm7396_vm3, %v2188_v0  ;;  %7412 = vst.msk [vmem:[%s9641_s28 + $0x78] sm:$0xff] %vm7396_vm3, %v2203_v24  ;;  %8653 = vmatmul.mubr.msk.f32.gmra.mxu0 %vm344_vm0, %v3747_v47  ;;  %v2267_v44 = vsub.f32 %v9579_v2, %v2203_v24  ;;  %v11379_v52 = vld [vmem:[#allocation3_spill] sm:$0xff]  ;;  %v11380_v0 = vld [vmem:[#allocation4_spill] sm:$0xff] }
 0x340   : > { %8655 = vmatprep.mubr.msk.f32.mxu0 %vm344_vm0, %v3748_v49  ;;  %8963 = vpow2.f32 %v2298_v15  ;;  %v3758_v49 = vld [vmem:[%s9788_s8 + $0x90] sm:$0xff] }
 0x341   : > { %v2304_v30 = vmul.f32 1.442695, %v2262_v45  ;;  %v2314_v2 = vmul.f32 1.442695, %v2267_v44  ;;  %v3759_v45 = vld [vmem:[%s9788_s8 + $0x98] sm:$0xff] }
 0x342   : > { %v2200_v17 = vpop.xlane.xlu1 %2199  ;;  %v2215_v60 = vpop.xlane.xlu0 %2214 }
 0x343   : > { %8965 = vpow2.f32 %v2304_v30  ;;  %v2266_v35 = vsub.f32 %v9581_v5, %v2200_v17  ;;  %7411 = vst.msk [vmem:[%s9641_s28 + $0x70] sm:$0xff] %vm7396_vm3, %v2200_v17  ;;  %7416 = vst.msk [vmem:[%s9641_s28 + $0x98] sm:$0xff] %vm7396_vm3, %v2215_v60  ;;  %8656 = vmatmul.mubr.msk.f32.gmra.mxu0 %vm344_vm0, %v3749_v28  ;;  %v2271_v29 = vsub.f32 %v9634_v25, %v2215_v60  ;;  %v11381_v28 = vld [vmem:[#allocation5_spill] sm:$0xff]  ;;  %v3760_v30 = vld [vmem:[%s9788_s8 + $0xa0] sm:$0xff] }
 0x344   : > { %8658 = vmatprep.mubr.msk.f32.mxu0 %vm344_vm0, %v3750_v59  ;;  %8967 = vpow2.f32 %v2306_v57  ;;  %v11382_v57 = vld [vmem:[#allocation6_spill] sm:$0xff]  ;;  %v3761_v17 = vld [vmem:[%s9788_s8 + $0xa8] sm:$0xff] }
 0x345   : > { %v2312_v39 = vmul.f32 1.442695, %v2266_v35  ;;  %v2322_v12 = vmul.f32 1.442695, %v2271_v29  ;;  %v11383_v60 = vld [vmem:[#allocation7_spill] sm:$0xff]  ;;  %v3762_v35 = vld [vmem:[%s9788_s8 + $0xb0] sm:$0xff] }
 0x346   : > { %v2212_v1 = vpop.xlane.xlu1 %2211  ;;  %v2227_v5 = vpop.xlane.xlu0 %2226  ;;  %v11385_v29 = vld [vmem:[#allocation9_spill] sm:$0xff] }
 0x347   : > { %8969 = vpow2.f32 %v2312_v39  ;;  %v2270_v55 = vsub.f32 %v9647_v61, %v2212_v1  ;;  %7415 = vst.msk [vmem:[%s9641_s28 + $0x90] sm:$0xff] %vm7396_vm3, %v2212_v1  ;;  %7420 = vst.msk [vmem:[%s9641_s28 + $0xb8] sm:$0xff] %vm7396_vm3, %v2227_v5  ;;  %8659 = vmatmul.mubr.msk.f32.gmra.mxu0 %vm344_vm0, %v3751_v43  ;;  %v3754_v61 = vld [vmem:[%s9788_s8 + $0x70] sm:$0xff]  ;;  %v2275_v7 = vsub.f32 %v9651_v9, %v2227_v5  ;;  %v3755_v9 = vld [vmem:[%s9788_s8 + $0x78] sm:$0xff] }
 0x348   : > { %v9895_v42 = vpop.eup %8955  ;;  %8661 = vmatprep.mubr.msk.f32.mxu0 %vm344_vm0, %v3752_v32  ;;  %8971 = vpow2.f32 %v2314_v2  ;;  %v11384_v39 = vld [vmem:[#allocation8_spill] sm:$0xff]  ;;  %v3763_v2 = vld [vmem:[%s9788_s8 + $0xb8] sm:$0xff]  ;;  %v3764_v1 = vld [vmem:[%s9788_s8 + $0xc0] sm:$0xff] }
 0x349   : > { %v9899_v51 = vpop.eup %8957  ;;  %v2320_v25 = vmul.f32 1.442695, %v2270_v55  ;;  %8520 = vmatmul.mubr.msk.f32.vlgmr.msra.gmra.mxu1 %vm2155_vm2, %v9895_v42  ;;  %v2330_v38 = vmul.f32 1.442695, %v2275_v7  ;;  %v11386_v55 = vld [vmem:[#allocation10_spill] sm:$0xff]  ;;  %v11388_v7 = vld [vmem:[#allocation11_spill] sm:$0xff] }
 0x34a   : > { %8523 = vmatpush3.msra.mxu1 %v9230_v46  ;;  %v2224_v34 = vpop.xlane.xlu1 %2223  ;;  %8526 = vmatprep.mubr.msk.f32.mxu1 %vm2155_vm2, %v9899_v51  ;;  %v2239_v62 = vpop.xlane.xlu0 %2238 }
 0x34b   : > { %v9908_v36 = vpop.eup %8959  ;;  %8973 = vpow2.f32 %v2320_v25  ;;  %v2274_v48 = vsub.f32 %v9659_v21, %v2224_v34  ;;  %7419 = vst.msk [vmem:[%s9641_s28 + $0xb0] sm:$0xff] %vm7396_vm3, %v2224_v34  ;;  %8524 = vmatprep.subr.mxu1 %v9237_v50  ;;  %7424 = vst.msk [vmem:[%s9641_s28 + $0xd8] sm:$0xff] %vm7396_vm3, %v2239_v62  ;;  %8662 = vmatmul.mubr.msk.f32.gmra.mxu0 %vm344_vm0, %v3753_v31  ;;  %v3756_v21 = vld [vmem:[%s9788_s8 + $0x80] sm:$0xff]  ;;  %v2279_v37 = vsub.f32 %v11376_v63, %v2239_v62  ;;  %v3765_v25 = vld [vmem:[%s9788_s8 + $0xc8] sm:$0xff] }
 0x34c   : > { %v9917_v46 = vpop.eup %8961  ;;  %8525 = vmatpush3.msra.mxu1 %v9237_v50  ;;  %8664 = vmatprep.mubr.msk.f32.mxu0 %vm344_vm0, %v3754_v61  ;;  %8975 = vpow2.f32 %v2322_v12  ;;  %v11387_v61 = vld [vmem:[#allocation12_spill] sm:$0xff]  ;;  %v3767_v62 = vld [vmem:[%s9788_s8 + $0xd8] sm:$0xff] }
 0x34d   : > { %v2328_v54 = vmul.f32 1.442695, %v2274_v48  ;;  %8536 = vmatprep.subr.mxu1 %v9258_v58  ;;  %8527 = vmatmul.mubr.msk.f32.vlgmr.msra.gmra.mxu1 %vm2155_vm2, %v9908_v36  ;;  %v9929_v50 = vpop.eup %8963  ;;  %v2338_v56 = vmul.f32 1.442695, %v2279_v37  ;;  %v3766_v12 = vld [vmem:[%s9788_s8 + $0xd0] sm:$0xff]  ;;  %v11389_v48 = vld [vmem:[#allocation13_spill] sm:$0xff] }
 0x34e   : > { %8537 = vmatpush3.msra.mxu1 %v9258_v58  ;;  %v2236_v40 = vpop.xlane.xlu1 %2235  ;;  %8540 = vmatprep.mubr.msk.f32.mxu1 %vm2155_vm2, %v9917_v46  ;;  %v3757_v58 = vld [vmem:[%s9788_s8 + $0x88] sm:$0xff] }
 0x34f   : > { %8977 = vpow2.f32 %v2328_v54  ;;  %v2278_v10 = vsub.f32 %v11377_v33, %v2236_v40  ;;  %7423 = vst.msk [vmem:[%s9641_s28 + $0xd0] sm:$0xff] %vm7396_vm3, %v2236_v40  ;;  %8538 = vmatprep.subr.mxu1 %v11378_v26  ;;  %8665 = vmatmul.mubr.msk.f32.gmra.mxu0 %vm344_vm0, %v3755_v9  ;;  %v3768_v9 = vld [vmem:[%s9788_s8 + $0xe0] sm:$0xff]  ;;  %v3771_v40 = vld [vmem:[%s9788_s8 + $0xf8] sm:$0xff] }
 0x350   : > { %v9937_v4 = vpop.eup %8965  ;;  %8539 = vmatpush3.msra.mxu1 %v11378_v26  ;;  %8667 = vmatprep.mubr.msk.f32.mxu0 %vm344_vm0, %v3756_v21  ;;  %8979 = vpow2.f32 %v2330_v38  ;;  %v11390_v54 = vld [vmem:[#allocation14_spill] sm:$0xff]  ;;  %v3769_v21 = vld [vmem:[%s9788_s8 + $0xe8] sm:$0xff]  ;;  %v3770_v38 = vld [vmem:[%s9788_s8 + $0xf0] sm:$0xff] }
 0x351   : > { %v2336_v47 = vmul.f32 1.442695, %v2278_v10  ;;  %8550 = vmatprep.subr.mxu1 %v11379_v52  ;;  %8541 = vmatmul.mubr.msk.f32.vlgmr.msra.gmra.mxu1 %vm2155_vm2, %v9929_v50  ;;  %v9949_v15 = vpop.eup %8967 }
 0x352   : > { %8551 = vmatpush3.msra.mxu1 %v11379_v52  ;;  %8554 = vmatprep.mubr.msk.f32.mxu1 %vm2155_vm2, %v9937_v4 }
 0x353   : > { %8981 = vpow2.f32 %v2336_v47  ;;  %8552 = vmatprep.subr.mxu1 %v11380_v0  ;;  %8668 = vmatmul.mubr.msk.f32.gmra.mxu0 %vm344_vm0, %v3757_v58 }
 0x354   : > { %v9953_v24 = vpop.eup %8969  ;;  %8553 = vmatpush3.msra.mxu1 %v11380_v0  ;;  %8670 = vmatprep.mubr.msk.f32.mxu0 %vm344_vm0, %v3758_v49  ;;  %8983 = vpow2.f32 %v2338_v56 }
 0x355   : > { %8564 = vmatprep.subr.mxu1 %v11381_v28  ;;  %8555 = vmatmul.mubr.msk.f32.vlgmr.msra.gmra.mxu1 %vm2155_vm2, %v9949_v15  ;;  %v9965_v59 = vpop.eup %8971 }
 0x356   : > { %8565 = vmatpush3.msra.mxu1 %v11381_v28  ;;  %8568 = vmatprep.mubr.msk.f32.mxu1 %vm2155_vm2, %v9953_v24 }
 0x357   : > { %8566 = vmatprep.subr.mxu1 %v11382_v57  ;;  %8671 = vmatmul.mubr.msk.f32.gmra.mxu0 %vm344_vm0, %v3759_v45 }
 0x358   : > { %v9969_v44 = vpop.eup %8973  ;;  %8567 = vmatpush3.msra.mxu1 %v11382_v57  ;;  %8673 = vmatprep.mubr.msk.f32.mxu0 %vm344_vm0, %v3760_v30 }
 0x359   : > { %8578 = vmatprep.subr.mxu1 %v11383_v60  ;;  %8569 = vmatmul.mubr.msk.f32.vlgmr.msra.gmra.mxu1 %vm2155_vm2, %v9965_v59  ;;  %v9981_v43 = vpop.eup %8975 }
 0x35a   : > { %8579 = vmatpush3.msra.mxu1 %v11383_v60  ;;  %8582 = vmatprep.mubr.msk.f32.mxu1 %vm2155_vm2, %v9969_v44 }
 0x35b   : > { %8580 = vmatprep.subr.mxu1 %v11384_v39  ;;  %8674 = vmatmul.mubr.msk.f32.gmra.mxu0 %vm344_vm0, %v3761_v17 }
 0x35c   : > { %v9985_v32 = vpop.eup %8977  ;;  %8581 = vmatpush3.msra.mxu1 %v11384_v39  ;;  %8676 = vmatprep.mubr.msk.f32.mxu0 %vm344_vm0, %v3762_v35 }
 0x35d   : > { %8592 = vmatprep.subr.mxu1 %v11385_v29  ;;  %8583 = vmatmul.mubr.msk.f32.vlgmr.msra.gmra.mxu1 %vm2155_vm2, %v9981_v43  ;;  %v9997_v5 = vpop.eup %8979 }
 0x35e   : > { %8593 = vmatpush3.msra.mxu1 %v11385_v29  ;;  %8596 = vmatprep.mubr.msk.f32.mxu1 %vm2155_vm2, %v9985_v32 }
 0x35f   : > { %8594 = vmatprep.subr.mxu1 %v11386_v55  ;;  %8677 = vmatmul.mubr.msk.f32.gmra.mxu0 %vm344_vm0, %v3763_v2  ;;  %v10074_v2 = vld [vmem:[%s11273_s3] ss:$0 sm:$0xff] }
 0x360   : > { %v10001_v31 = vpop.eup %8981  ;;  %8595 = vmatpush3.msra.mxu1 %v11386_v55  ;;  %8679 = vmatprep.mubr.msk.f32.mxu0 %vm344_vm0, %v3764_v1 }
 0x361   : > { %8606 = vmatprep.subr.mxu1 %v11387_v61  ;;  %8597 = vmatmul.mubr.msk.f32.vlgmr.msra.gmra.mxu1 %vm2155_vm2, %v9997_v5  ;;  %v10015_v34 = vpop.eup %8983 }
 0x362   : > { %8607 = vmatpush3.msra.mxu1 %v11387_v61  ;;  %8610 = vmatprep.mubr.msk.f32.mxu1 %vm2155_vm2, %v10001_v31 }
 0x363   : > { %8608 = vmatprep.subr.mxu1 %v11388_v7  ;;  %8680 = vmatmul.mubr.msk.f32.gmra.mxu0 %vm344_vm0, %v3765_v25 }
 0x364   : > { %8609 = vmatpush3.msra.mxu1 %v11388_v7  ;;  %8682 = vmatprep.mubr.msk.f32.mxu0 %vm344_vm0, %v3766_v12 }
 0x365   : > { %8620 = vmatprep.subr.mxu1 %v11389_v48  ;;  %8611 = vmatmul.mubr.msk.f32.vlgmr.msra.gmra.mxu1 %vm2155_vm2, %v10015_v34 }
 0x366   : > { %8621 = vmatpush3.msra.mxu1 %v11389_v48 }
 0x367   : > { %8622 = vmatprep.subr.mxu1 %v11390_v54  ;;  %8683 = vmatmul.mubr.msk.f32.gmra.mxu0 %vm344_vm0, %v3767_v62 }
 0x368   : > { %8623 = vmatpush3.msra.mxu1 %v11390_v54  ;;  %8685 = vmatprep.mubr.msk.f32.mxu0 %vm344_vm0, %v3768_v9 }
 0x36b   : > { %8686 = vmatmul.mubr.msk.f32.gmra.mxu0 %vm344_vm0, %v3769_v21 }
 0x36c   : > { %8688 = vmatprep.mubr.msk.f32.mxu0 %vm344_vm0, %v3770_v38 }
 0x36f   : > { %8689 = vmatmul.mubr.msk.f32.gmra.mxu0 %vm344_vm0, %v3771_v40 }
 0x3c7   : > { %v10035_v63 = vpop.f32.mrf.mxu0 }
 0x3c8   : > { %v2249_v37 = vsel %vm2155_vm2, %v10035_v63, -inf }
 0x3c9   : > { %2250 = vmax.xlane.f32.xlu0 %v2249_v37  ;;  %v10039_v33 = vpop.f32.mrf.mxu0 }
 0x3ca   : > { %v2246_v10 = vsel %vm2155_vm2, %v10039_v33, -inf }
 0x3cb   : > { %v10043_v26 = vpop.f32.mrf.mxu0  ;;  %2247 = vmax.xlane.f32.xlu1 %v2246_v10 }
 0x3cc   : > { %11391 = vst [vmem:[#allocation15_spill] sm:$0xff] %v10043_v26 }
 0x3cd   : > { %v10045_v58 = vpop.f32.mrf.mxu0 }
 0x3ce   : > { %11392 = vst [vmem:[#allocation16_spill] sm:$0xff] %v10045_v58 }
 0x3cf   : > { %v10047_v47 = vpop.f32.mrf.mxu0 }
 0x3d0   : > { %11393 = vst [vmem:[#allocation2_spill] sm:$0xff] %v10047_v47 }
 0x3d1   : > { %v10049_v52 = vpop.f32.mrf.mxu0 }
 0x3d2   : > { %11394 = vst [vmem:[#allocation3_spill] sm:$0xff] %v10049_v52 }
 0x3d3   : > { %v10051_v49 = vpop.f32.mrf.mxu0 }
 0x3d4   : > { %11395 = vst [vmem:[#allocation4_spill] sm:$0xff] %v10051_v49 }
 0x3d5   : > { %v10053_v56 = vpop.f32.mrf.mxu0 }
 0x3d6   : > { %11396 = vst [vmem:[#allocation5_spill] sm:$0xff] %v10053_v56 }
 0x3d7   : > { %v10055_v0 = vpop.f32.mrf.mxu0 }
 0x3d8   : > { %11397 = vst [vmem:[#allocation6_spill] sm:$0xff] %v10055_v0 }
 0x3d9   : > { %v10057_v45 = vpop.f32.mrf.mxu0 }
 0x3da   : > { %11398 = vst [vmem:[#allocation7_spill] sm:$0xff] %v10057_v45 }
 0x3db   : > { %v10059_v28 = vpop.f32.mrf.mxu0 }
 0x3dc   : > { %11399 = vst [vmem:[#allocation8_spill] sm:$0xff] %v10059_v28 }
 0x3dd   : > { %v10061_v30 = vpop.f32.mrf.mxu0 }
 0x3de   : > { %11400 = vst [vmem:[#allocation9_spill] sm:$0xff] %v10061_v30 }
 0x3df   : > { %v10063_v57 = vpop.f32.mrf.mxu0 }
 0x3e0   : > { %11401 = vst [vmem:[#allocation10_spill] sm:$0xff] %v10063_v57 }
 0x3e1   : > { %v10065_v17 = vpop.f32.mrf.mxu0 }
 0x3e2   : > { %11402 = vst [vmem:[#allocation12_spill] sm:$0xff] %v10065_v17 }
 0x3e3   : > { %v10067_v60 = vpop.f32.mrf.mxu0 }
 0x3e4   : > { %11403 = vst [vmem:[#allocation11_spill] sm:$0xff] %v10067_v60 }
 0x3e5   : > { %v10069_v35 = vpop.f32.mrf.mxu0 }
 0x3e6   : > { %11404 = vst [vmem:[#allocation13_spill] sm:$0xff] %v10069_v35 }
 0x3f3   : > { %v8645_v39 = vpop.f32.mrf.mxu0 }
 0x3f4   : > { %v10077_v29 = vadd.f32 %v10074_v2, %v8645_v39 }
 0x3f5   : > { %v3934_v1 = vpop.f32.mrf.mxu0 }
 0x3f6   : > { %4097 = vrot.lane.b32.xlu0 %v10077_v29, %s9071_s24  ;;  %4101 = vrot.lane.b32.xlu1 %v10077_v29, %s9070_s23  ;;  %v10084_v55 = vadd.f32 %v10074_v2, %v3934_v1 }
 0x3f7   : > { %v8648_v25 = vpop.f32.mrf.mxu0 }
 0x3f8   : > { %v10087_v61 = vadd.f32 %v10074_v2, %v8648_v25 }
 0x3f9   : > { %v3944_v12 = vpop.f32.mrf.mxu0 }
 0x3fa   : > { %4099 = vrot.lane.b32.xlu0 %v10084_v55, %s9070_s23  ;;  %4095 = vrot.lane.b32.xlu1 %v10084_v55, %s9071_s24  ;;  %v10098_v7 = vadd.f32 %v10074_v2, %v3944_v12 }
 0x3fb   : > { %v8651_v62 = vpop.f32.mrf.mxu0 }
 0x3fc   : > { %v10101_v48 = vadd.f32 %v10074_v2, %v8651_v62 }
 0x3fd   : > { %v3954_v9 = vpop.f32.mrf.mxu0 }
 0x3fe   : > { %4190 = vrot.lane.b32.xlu0 %v10087_v61, %s9071_s24  ;;  %4194 = vrot.lane.b32.xlu1 %v10087_v61, %s9070_s23  ;;  %v10112_v54 = vadd.f32 %v10074_v2, %v3954_v9 }
 0x3ff   : > { %v8654_v21 = vpop.f32.mrf.mxu0 }
 0x400   : > { %v10115_v38 = vadd.f32 %v10074_v2, %v8654_v21 }
 0x401   : > { %v3964_v40 = vpop.f32.mrf.mxu0 }
 0x402   : > { %4188 = vrot.lane.b32.xlu0 %v10098_v7, %s9071_s24  ;;  %4192 = vrot.lane.b32.xlu1 %v10098_v7, %s9070_s23  ;;  %v10126_v37 = vadd.f32 %v10074_v2, %v3964_v40 }
 0x403   : > { %v8657_v10 = vpop.f32.mrf.mxu0 }
 0x404   : > { %v10129_v39 = vadd.f32 %v10074_v2, %v8657_v10 }
 0x405   : > { %v3974_v1 = vpop.f32.mrf.mxu0 }
 0x406   : > { %4283 = vrot.lane.b32.xlu0 %v10101_v48, %s9071_s24  ;;  %4287 = vrot.lane.b32.xlu1 %v10101_v48, %s9070_s23  ;;  %v10140_v12 = vadd.f32 %v10074_v2, %v3974_v1 }
 0x407   : > { %v8660_v25 = vpop.f32.mrf.mxu0 }
 0x408   : > { %v10143_v62 = vadd.f32 %v10074_v2, %v8660_v25 }
 0x409   : > { %v3984_v9 = vpop.f32.mrf.mxu0 }
 0x40a   : > { %4281 = vrot.lane.b32.xlu0 %v10112_v54, %s9071_s24  ;;  %4285 = vrot.lane.b32.xlu1 %v10112_v54, %s9070_s23  ;;  %v10154_v40 = vadd.f32 %v10074_v2, %v3984_v9 }
 0x40b   : > { %v8663_v21 = vpop.f32.mrf.mxu0 }
 0x40c   : > { %11405 = vst [vmem:[#allocation14_spill] sm:$0xff] %v10154_v40  ;;  %v10157_v1 = vadd.f32 %v10074_v2, %v8663_v21 }
 0x40d   : > { %v3994_v10 = vpop.f32.mrf.mxu0 }
 0x40e   : > { %4376 = vrot.lane.b32.xlu0 %v10115_v38, %s9071_s24  ;;  %4380 = vrot.lane.b32.xlu1 %v10115_v38, %s9070_s23  ;;  %v10168_v9 = vadd.f32 %v10074_v2, %v3994_v10 }
 0x40f   : > { %v8666_v25 = vpop.f32.mrf.mxu0 }
 0x410   : > { %11406 = vst [vmem:[#allocation17_spill] sm:$0xff] %v10168_v9  ;;  %v10171_v21 = vadd.f32 %v10074_v2, %v8666_v25 }
 0x411   : > { %v4004_v35 = vpop.f32.mrf.mxu0 }
 0x412   : > { %4374 = vrot.lane.b32.xlu0 %v10126_v37, %s9071_s24  ;;  %4378 = vrot.lane.b32.xlu1 %v10126_v37, %s9070_s23  ;;  %11407 = vst [vmem:[#allocation18_spill] sm:$0xff] %v10171_v21  ;;  %v10174_v60 = vadd.f32 %v10074_v2, %v4004_v35 }
 0x413   : > { %v8669_v17 = vpop.f32.mrf.mxu0 }
 0x414   : > { %11408 = vst [vmem:[#allocation19_spill] sm:$0xff] %v10174_v60  ;;  %v10181_v57 = vadd.f32 %v10074_v2, %v8669_v17 }
 0x415   : > { %v4014_v10 = vpop.f32.mrf.mxu0 }
 0x416   : > { %4469 = vrot.lane.b32.xlu0 %v10129_v39, %s9071_s24  ;;  %4473 = vrot.lane.b32.xlu1 %v10129_v39, %s9070_s23  ;;  %11409 = vst [vmem:[#allocation20_spill] sm:$0xff] %v10181_v57  ;;  %v10188_v35 = vadd.f32 %v10074_v2, %v4014_v10 }
 0x417   : > { %v8672_v25 = vpop.f32.mrf.mxu0 }
 0x418   : > { %11410 = vst [vmem:[#allocation21_spill] sm:$0xff] %v10188_v35  ;;  %v10199_v30 = vadd.f32 %v10074_v2, %v8672_v25 }
 0x419   : > { %v4024_v17 = vpop.f32.mrf.mxu0 }
 0x41a   : > { %4467 = vrot.lane.b32.xlu0 %v10140_v12, %s9071_s24  ;;  %4471 = vrot.lane.b32.xlu1 %v10140_v12, %s9070_s23  ;;  %11411 = vst [vmem:[#allocation22_spill] sm:$0xff] %v10199_v30  ;;  %v10213_v45 = vadd.f32 %v10074_v2, %v4024_v17 }
 0x41b   : > { %v8675_v10 = vpop.f32.mrf.mxu0 }
 0x41c   : > { %v10210_v28 = vadd.f32 %v10074_v2, %v8675_v10  ;;  %11413 = vst [vmem:[#allocation24_spill] sm:$0xff] %v10213_v45 }
 0x41d   : > { %v4034_v25 = vpop.f32.mrf.mxu0 }
 0x41e   : > { %4562 = vrot.lane.b32.xlu0 %v10143_v62, %s9071_s24  ;;  %4566 = vrot.lane.b32.xlu1 %v10143_v62, %s9070_s23  ;;  %11412 = vst [vmem:[#allocation23_spill] sm:$0xff] %v10210_v28  ;;  %v10227_v17 = vadd.f32 %v10074_v2, %v4034_v25 }
 0x41f   : > { %v8678_v0 = vpop.f32.mrf.mxu0 }
 0x420   : > { %v10224_v10 = vadd.f32 %v10074_v2, %v8678_v0  ;;  %11415 = vst [vmem:[#allocation26_spill] sm:$0xff] %v10227_v17 }
 0x421   : > { %v4044_v56 = vpop.f32.mrf.mxu0 }
 0x422   : > { %4560 = vrot.lane.b32.xlu0 %v10154_v40, %s9071_s24  ;;  %4564 = vrot.lane.b32.xlu1 %v10154_v40, %s9070_s23  ;;  %11414 = vst [vmem:[#allocation25_spill] sm:$0xff] %v10224_v10  ;;  %v10241_v52 = vadd.f32 %v10074_v2, %v4044_v56 }
 0x423   : > { %v8681_v49 = vpop.f32.mrf.mxu0 }
 0x424   : > { %v10238_v0 = vadd.f32 %v10074_v2, %v8681_v49  ;;  %11417 = vst [vmem:[#allocation28_spill] sm:$0xff] %v10241_v52 }
 0x425   : > { %v4054_v25 = vpop.f32.mrf.mxu0 }
 0x426   : > { %4655 = vrot.lane.b32.xlu0 %v10157_v1, %s9071_s24  ;;  %4659 = vrot.lane.b32.xlu1 %v10157_v1, %s9070_s23  ;;  %11416 = vst [vmem:[#allocation27_spill] sm:$0xff] %v10238_v0  ;;  %v10254_v56 = vadd.f32 %v10074_v2, %v4054_v25 }
 0x427   : > { %v8684_v26 = vpop.f32.mrf.mxu0 }
 0x428   : > { %11418 = vst [vmem:[#allocation29_spill] sm:$0xff] %v10254_v56 }
 0x42a   : > { %4653 = vrot.lane.b32.xlu0 %v10168_v9, %s9071_s24  ;;  %4657 = vrot.lane.b32.xlu1 %v10168_v9, %s9070_s23 }
 0x42e   : > { %4746 = vrot.lane.b32.xlu0 %v10174_v60, %s9071_s24  ;;  %4752 = vrot.lane.b32.xlu1 %v10171_v21, %s9070_s23 }
 0x432   : > { %4841 = vrot.lane.b32.xlu0 %v10181_v57, %s9071_s24  ;;  %4748 = vrot.lane.b32.xlu1 %v10171_v21, %s9071_s24 }
 0x436   : > { %4843 = vrot.lane.b32.xlu0 %v10188_v35, %s9070_s23  ;;  %4750 = vrot.lane.b32.xlu1 %v10174_v60, %s9070_s23 }
 0x43a   : > { %4839 = vrot.lane.b32.xlu0 %v10188_v35, %s9071_s24  ;;  %4845 = vrot.lane.b32.xlu1 %v10181_v57, %s9070_s23 }
 0x43e   : > { %4938 = vrot.lane.b32.xlu0 %v10199_v30, %s9070_s23  ;;  %4934 = vrot.lane.b32.xlu1 %v10199_v30, %s9071_s24  ;;  %v4064_v30 = vpop.f32.mrf.mxu0 }
 0x442   : > { %5031 = vrot.lane.b32.xlu0 %v10210_v28, %s9070_s23  ;;  %4936 = vrot.lane.b32.xlu1 %v10213_v45, %s9070_s23 }
 0x446   : > { %5027 = vrot.lane.b32.xlu0 %v10210_v28, %s9071_s24  ;;  %4932 = vrot.lane.b32.xlu1 %v10213_v45, %s9071_s24 }
 0x44a   : > { %5029 = vrot.lane.b32.xlu0 %v10227_v17, %s9070_s23  ;;  %5124 = vrot.lane.b32.xlu1 %v10224_v10, %s9070_s23 }
 0x44e   : > { %5025 = vrot.lane.b32.xlu0 %v10227_v17, %s9071_s24  ;;  %5120 = vrot.lane.b32.xlu1 %v10224_v10, %s9071_s24 }
 0x452   : > { %5217 = vrot.lane.b32.xlu0 %v10238_v0, %s9070_s23  ;;  %5122 = vrot.lane.b32.xlu1 %v10241_v52, %s9070_s23  ;;  %v2251_v47 = vpop.xlane.xlu0 %2250 }
 0x453   : > { %v2283_v58 = vsub.f32 %v10035_v63, %v2251_v47  ;;  %7428 = vst.msk [vmem:[%s9641_s28 + $0xf8] sm:$0xff] %vm7396_vm3, %v2251_v47  ;;  %v10261_v63 = vadd.f32 %v10074_v2, %v8684_v26 }
 0x454   : > { %v2248_v10 = vpop.xlane.xlu1 %2247 }
 0x455   : > { %v2282_v49 = vsub.f32 %v10039_v33, %v2248_v10  ;;  %7427 = vst.msk [vmem:[%s9641_s28 + $0xf0] sm:$0xff] %vm7396_vm3, %v2248_v10  ;;  %v2346_v45 = vmul.f32 1.442695, %v2283_v58  ;;  %11419 = vst [vmem:[#allocation30_spill] sm:$0xff] %v10261_v63  ;;  %v8687_v33 = vpop.f32.mrf.mxu0  ;;  %v10275_v10 = vadd.f32 %v10074_v2, %v4064_v30 }
 0x456   : > { %5213 = vrot.lane.b32.xlu0 %v10238_v0, %s9071_s24  ;;  %5118 = vrot.lane.b32.xlu1 %v10241_v52, %s9071_s24  ;;  %v10272_v26 = vadd.f32 %v10074_v2, %v8687_v33 }
 0x457   : > { %v2344_v47 = vmul.f32 1.442695, %v2282_v49  ;;  %v4074_v58 = vpop.f32.mrf.mxu0  ;;  %11421 = vst [vmem:[#allocation32_spill] sm:$0xff] %v10275_v10 }
 0x458   : > { %11420 = vst [vmem:[#allocation31_spill] sm:$0xff] %v10272_v26 }
 0x459   : > { %8985 = vpow2.f32 %v2344_v47  ;;  %v8690_v25 = vpop.f32.mrf.mxu0 }
 0x45a   : > { %8987 = vpow2.f32 %v2346_v45  ;;  %5215 = vrot.lane.b32.xlu0 %v10254_v56, %s9070_s23  ;;  %5310 = vrot.lane.b32.xlu1 %v10261_v63, %s9070_s23  ;;  %v10282_v45 = vadd.f32 %v10074_v2, %v4074_v58  ;;  %v10291_v30 = vadd.f32 %v10074_v2, %v8690_v25 }
 0x45b   : > { %v4084_v33 = vpop.f32.mrf.mxu0 }
 0x45c   : > { %11422 = vst [vmem:[#allocation33_spill] sm:$0xff] %v10282_v45  ;;  %11423 = vst [vmem:[#allocation34_spill] sm:$0xff] %v10291_v30  ;;  %v10305_v25 = vadd.f32 %v10074_v2, %v4084_v33 }
 0x45e   : > { %5211 = vrot.lane.b32.xlu0 %v10254_v56, %s9071_s24  ;;  %5306 = vrot.lane.b32.xlu1 %v10261_v63, %s9071_s24  ;;  %11425 = vst [vmem:[#allocation36_spill] sm:$0xff] %v10305_v25 }
 0x462   : > { %5403 = vrot.lane.b32.xlu0 %v10272_v26, %s9070_s23  ;;  %5308 = vrot.lane.b32.xlu1 %v10275_v10, %s9070_s23 }
 0x466   : > { %v10284_v49 = vpop.eup %8985  ;;  %5401 = vrot.lane.b32.xlu0 %v10282_v45, %s9070_s23  ;;  %5304 = vrot.lane.b32.xlu1 %v10275_v10, %s9071_s24 }
 0x467   : > { %v10293_v47 = vpop.eup %8987  ;;  %8624 = vmatprep.mubr.msk.f32.mxu1 %vm2155_vm2, %v10284_v49 }
 0x468   : > { %11424 = vst [vmem:[#allocation35_spill] sm:$0xff] %v10293_v47  ;;  %v4102_v58 = vpop.permute.xlu1 %4101  ;;  %v4098_v63 = vpop.permute.xlu0 %4097  ;;  %8625 = vmatmul.mubr.msk.f32.vlgmr.msra.gmra.mxu1 %vm2155_vm2, %v10293_v47 }
 0x469   : > { %8691 = vmatprep.subr.msk.mxu1 %vm676_vm1, %v4102_v58 }
 0x46a   : > { %5397 = vrot.lane.b32.xlu0 %v10282_v45, %s9071_s24  ;;  %5496 = vrot.lane.b32.xlu1 %v10291_v30, %s9070_s23 }
 0x46b   : > { %8692 = vmatpush3.xpose.msk.msra.mxu1 %vm676_vm1, %v4102_v58 }
 0x46c   : > { %v4096_v10 = vpop.permute.xlu1 %4095  ;;  %v4100_v52 = vpop.permute.xlu0 %4099 }
 0x46d   : > { %8693 = vmatprep.subr.msk.mxu1 %vm676_vm1, %v4100_v52  ;;  %8695 = vmatprep.mubr.msk.f32.mxu1 %vm676_vm1, %v4096_v10 }
 0x46e   : > { %5399 = vrot.lane.b32.xlu0 %v10272_v26, %s9071_s24  ;;  %5494 = vrot.lane.b32.xlu1 %v10305_v25, %s9070_s23 }
 0x46f   : > { %8694 = vmatpush3.xpose.msk.msra.mxu1 %vm676_vm1, %v4100_v52 }
 0x470   : > { %v4195_v45 = vpop.permute.xlu1 %4194  ;;  %v4191_v56 = vpop.permute.xlu0 %4190 }
 0x471   : > { %8698 = vmatprep.subr.msk.mxu1 %vm676_vm1, %v4195_v45 }
 0x472   : > { %8696 = vmatmul.mubr.msk.f32.vlgmr.msra.gmra.mxu1 %vm676_vm1, %v4098_v63  ;;  %5490 = vrot.lane.b32.xlu1 %v10305_v25, %s9071_s24 }
 0x473   : > { %8699 = vmatpush3.xpose.msk.msra.mxu1 %vm676_vm1, %v4195_v45 }
 0x474   : > { %v4193_v2 = vpop.permute.xlu1 %4192  ;;  %v4189_v10 = vpop.permute.xlu0 %4188 }
 0x475   : > { %8700 = vmatprep.subr.msk.mxu1 %vm676_vm1, %v4193_v2  ;;  %8702 = vmatprep.mubr.msk.f32.mxu1 %vm676_vm1, %v4189_v10 }
 0x476   : > { %5492 = vrot.lane.b32.xlu1 %v10291_v30, %s9071_s24 }
 0x477   : > { %8701 = vmatpush3.xpose.msk.msra.mxu1 %vm676_vm1, %v4193_v2 }
 0x478   : > { %v4288_v52 = vpop.permute.xlu1 %4287  ;;  %v4284_v33 = vpop.permute.xlu0 %4283 }
 0x479   : > { %8705 = vmatprep.subr.msk.mxu1 %vm676_vm1, %v4288_v52 }
 0x47a   : > { %8703 = vmatmul.mubr.msk.f32.vlgmr.msra.gmra.mxu1 %vm676_vm1, %v4191_v56 }
 0x47b   : > { %8706 = vmatpush3.xpose.msk.msra.mxu1 %vm676_vm1, %v4288_v52 }
 0x47c   : > { %v4286_v63 = vpop.permute.xlu1 %4285  ;;  %v4282_v45 = vpop.permute.xlu0 %4281 }
 0x47d   : > { %8707 = vmatprep.subr.msk.mxu1 %vm676_vm1, %v4286_v63  ;;  %8709 = vmatprep.mubr.msk.f32.mxu1 %vm676_vm1, %v4282_v45 }
 0x47f   : > { %8708 = vmatpush3.xpose.msk.msra.mxu1 %vm676_vm1, %v4286_v63 }
 0x480   : > { %v4381_v58 = vpop.permute.xlu1 %4380  ;;  %v4377_v10 = vpop.permute.xlu0 %4376 }
 0x481   : > { %8712 = vmatprep.subr.msk.mxu1 %vm676_vm1, %v4381_v58 }
 0x482   : > { %8710 = vmatmul.mubr.msk.f32.vlgmr.msra.gmra.mxu1 %vm676_vm1, %v4284_v33 }
 0x483   : > { %8713 = vmatpush3.xpose.msk.msra.mxu1 %vm676_vm1, %v4381_v58 }
 0x484   : > { %v4379_v2 = vpop.permute.xlu1 %4378  ;;  %v4375_v56 = vpop.permute.xlu0 %4374 }
 0x485   : > { %8714 = vmatprep.subr.msk.mxu1 %vm676_vm1, %v4379_v2  ;;  %8716 = vmatprep.mubr.msk.f32.mxu1 %vm676_vm1, %v4375_v56 }
 0x487   : > { %8715 = vmatpush3.xpose.msk.msra.mxu1 %vm676_vm1, %v4379_v2 }
 0x488   : > { %v4474_v52 = vpop.permute.xlu1 %4473  ;;  %v4470_v45 = vpop.permute.xlu0 %4469 }
 0x489   : > { %8719 = vmatprep.subr.msk.mxu1 %vm676_vm1, %v4474_v52 }
 0x48a   : > { %8717 = vmatmul.mubr.msk.f32.vlgmr.msra.gmra.mxu1 %vm676_vm1, %v4377_v10 }
 0x48b   : > { %8720 = vmatpush3.xpose.msk.msra.mxu1 %vm676_vm1, %v4474_v52 }
 0x48c   : > { %v4472_v63 = vpop.permute.xlu1 %4471  ;;  %v4468_v33 = vpop.permute.xlu0 %4467 }
 0x48d   : > { %8721 = vmatprep.subr.msk.mxu1 %vm676_vm1, %v4472_v63  ;;  %8723 = vmatprep.mubr.msk.f32.mxu1 %vm676_vm1, %v4468_v33 }
 0x48f   : > { %8722 = vmatpush3.xpose.msk.msra.mxu1 %vm676_vm1, %v4472_v63 }
 0x490   : > { %v4567_v58 = vpop.permute.xlu1 %4566  ;;  %v4563_v56 = vpop.permute.xlu0 %4562 }
 0x491   : > { %8726 = vmatprep.subr.msk.mxu1 %vm676_vm1, %v4567_v58 }
 0x492   : > { %8724 = vmatmul.mubr.msk.f32.vlgmr.msra.gmra.mxu1 %vm676_vm1, %v4470_v45 }
 0x493   : > { %8727 = vmatpush3.xpose.msk.msra.mxu1 %vm676_vm1, %v4567_v58 }
 0x494   : > { %v4565_v2 = vpop.permute.xlu1 %4564  ;;  %v4561_v10 = vpop.permute.xlu0 %4560 }
 0x495   : > { %8728 = vmatprep.subr.msk.mxu1 %vm676_vm1, %v4565_v2  ;;  %8730 = vmatprep.mubr.msk.f32.mxu1 %vm676_vm1, %v4561_v10 }
 0x497   : > { %8729 = vmatpush3.xpose.msk.msra.mxu1 %vm676_vm1, %v4565_v2 }
 0x498   : > { %v4660_v52 = vpop.permute.xlu1 %4659  ;;  %v4656_v33 = vpop.permute.xlu0 %4655 }
 0x499   : > { %8733 = vmatprep.subr.msk.mxu1 %vm676_vm1, %v4660_v52 }
 0x49a   : > { %8731 = vmatmul.mubr.msk.f32.vlgmr.msra.gmra.mxu1 %vm676_vm1, %v4563_v56 }
 0x49b   : > { %8734 = vmatpush3.xpose.msk.msra.mxu1 %vm676_vm1, %v4660_v52 }
 0x49c   : > { %v4658_v63 = vpop.permute.xlu1 %4657  ;;  %v4654_v45 = vpop.permute.xlu0 %4653 }
 0x49d   : > { %8735 = vmatprep.subr.msk.mxu1 %vm676_vm1, %v4658_v63  ;;  %8737 = vmatprep.mubr.msk.f32.mxu1 %vm676_vm1, %v4654_v45 }
 0x49f   : > { %8736 = vmatpush3.xpose.msk.msra.mxu1 %vm676_vm1, %v4658_v63 }
 0x4a0   : > { %v4753_v58 = vpop.permute.xlu1 %4752  ;;  %v4747_v10 = vpop.permute.xlu0 %4746 }
 0x4a1   : > { %8740 = vmatprep.subr.msk.mxu1 %vm676_vm1, %v4753_v58 }
 0x4a2   : > { %8738 = vmatmul.mubr.msk.f32.vlgmr.msra.gmra.mxu1 %vm676_vm1, %v4656_v33 }
 0x4a3   : > { %8741 = vmatpush3.xpose.msk.msra.mxu1 %vm676_vm1, %v4753_v58  ;;  %8744 = vmatprep.mubr.msk.f32.mxu1 %vm676_vm1, %v4747_v10 }
 0x4a4   : > { %v4749_v56 = vpop.permute.xlu1 %4748  ;;  %v4842_v2 = vpop.permute.xlu0 %4841 }
 0x4a8   : > { %v4751_v52 = vpop.permute.xlu1 %4750  ;;  %v4844_v25 = vpop.permute.xlu0 %4843 }
 0x4a9   : > { %8742 = vmatprep.subr.msk.mxu1 %vm676_vm1, %v4751_v52 }
 0x4aa   : > { %8743 = vmatpush3.xpose.msk.msra.mxu1 %vm676_vm1, %v4751_v52 }
 0x4ac   : > { %v4846_v45 = vpop.permute.xlu1 %4845  ;;  %v4840_v63 = vpop.permute.xlu0 %4839 }
 0x4ad   : > { %8745 = vmatmul.mubr.msk.f32.vlgmr.msra.gmra.mxu1 %vm676_vm1, %v4749_v56  ;;  %8747 = vmatprep.subr.msk.mxu1 %vm676_vm1, %v4846_v45 }
 0x4ae   : > { %8748 = vmatpush3.xpose.msk.msra.mxu1 %vm676_vm1, %v4846_v45  ;;  %8751 = vmatprep.mubr.msk.f32.mxu1 %vm676_vm1, %v4840_v63 }
 0x4af   : > { %8749 = vmatprep.subr.msk.mxu1 %vm676_vm1, %v4844_v25 }
 0x4b0   : > { %v4935_v33 = vpop.permute.xlu1 %4934  ;;  %v4939_v58 = vpop.permute.xlu0 %4938 }
 0x4b1   : > { %8754 = vmatprep.subr.msk.mxu0 %vm676_vm1, %v4939_v58 }
 0x4b2   : > { %8750 = vmatpush3.xpose.msk.msra.mxu1 %vm676_vm1, %v4844_v25  ;;  %8755 = vmatpush3.xpose.msk.msra.mxu0 %vm676_vm1, %v4939_v58 }
 0x4b4   : > { %v4937_v10 = vpop.permute.xlu1 %4936  ;;  %v5032_v52 = vpop.permute.xlu0 %5031 }
 0x4b5   : > { %8752 = vmatmul.mubr.msk.f32.vlgmr.msra.gmra.mxu1 %vm676_vm1, %v4842_v2  ;;  %8756 = vmatprep.subr.msk.mxu0 %vm676_vm1, %v4937_v10 }
 0x4b6   : > { %8757 = vmatpush3.xpose.msk.msra.mxu0 %vm676_vm1, %v4937_v10  ;;  %8761 = vmatprep.subr.msk.mxu1 %vm676_vm1, %v5032_v52 }
 0x4b7   : > { %8762 = vmatpush3.xpose.msk.msra.mxu1 %vm676_vm1, %v5032_v52 }
 0x4b8   : > { %v4933_v56 = vpop.permute.xlu1 %4932  ;;  %v5028_v45 = vpop.permute.xlu0 %5027 }
 0x4b9   : > { %8758 = vmatprep.mubr.msk.f32.mxu0 %vm676_vm1, %v4933_v56 }
 0x4ba   : > { %8759 = vmatmul.mubr.msk.f32.vlgmr.msra.gmra.mxu0 %vm676_vm1, %v4935_v33 }
 0x4bc   : > { %v5125_v25 = vpop.permute.xlu1 %5124  ;;  %v5030_v63 = vpop.permute.xlu0 %5029 }
 0x4bd   : > { %8763 = vmatprep.subr.msk.mxu1 %vm676_vm1, %v5030_v63  ;;  %8768 = vmatprep.subr.msk.mxu0 %vm676_vm1, %v5125_v25 }
 0x4be   : > { %8764 = vmatpush3.xpose.msk.msra.mxu1 %vm676_vm1, %v5030_v63  ;;  %8769 = vmatpush3.xpose.msk.msra.mxu0 %vm676_vm1, %v5125_v25 }
 0x4c0   : > { %v5121_v2 = vpop.permute.xlu1 %5120  ;;  %v5026_v58 = vpop.permute.xlu0 %5025 }
 0x4c1   : > { %8765 = vmatprep.mubr.msk.f32.mxu1 %vm676_vm1, %v5026_v58 }
 0x4c2   : > { %8766 = vmatmul.mubr.msk.f32.vlgmr.msra.gmra.mxu1 %vm676_vm1, %v5028_v45 }
 0x4c4   : > { %v5123_v10 = vpop.permute.xlu1 %5122  ;;  %v5218_v52 = vpop.permute.xlu0 %5217 }
 0x4c5   : > { %8770 = vmatprep.subr.msk.mxu0 %vm676_vm1, %v5123_v10  ;;  %8775 = vmatprep.subr.msk.mxu1 %vm676_vm1, %v5218_v52 }
 0x4c6   : > { %8771 = vmatpush3.xpose.msk.msra.mxu0 %vm676_vm1, %v5123_v10  ;;  %8776 = vmatpush3.xpose.msk.msra.mxu1 %vm676_vm1, %v5218_v52 }
 0x4c8   : > { %v5119_v33 = vpop.permute.xlu1 %5118  ;;  %v5214_v56 = vpop.permute.xlu0 %5213 }
 0x4c9   : > { %8772 = vmatprep.mubr.msk.f32.mxu0 %vm676_vm1, %v5119_v33 }
 0x4ca   : > { %8773 = vmatmul.mubr.msk.f32.vlgmr.msra.gmra.mxu0 %vm676_vm1, %v5121_v2 }
 0x4cc   : > { %v5311_v25 = vpop.permute.xlu1 %5310  ;;  %v5216_v63 = vpop.permute.xlu0 %5215 }
 0x4cd   : > { %8777 = vmatprep.subr.msk.mxu1 %vm676_vm1, %v5216_v63  ;;  %8782 = vmatprep.subr.msk.mxu0 %vm676_vm1, %v5311_v25 }
 0x4ce   : > { %8778 = vmatpush3.xpose.msk.msra.mxu1 %vm676_vm1, %v5216_v63  ;;  %8783 = vmatpush3.xpose.msk.msra.mxu0 %vm676_vm1, %v5311_v25 }
 0x4d0   : > { %v5307_v45 = vpop.permute.xlu1 %5306  ;;  %v5212_v58 = vpop.permute.xlu0 %5211 }
 0x4d1   : > { %8779 = vmatprep.mubr.msk.f32.mxu1 %vm676_vm1, %v5212_v58 }
 0x4d2   : > { %8780 = vmatmul.mubr.msk.f32.vlgmr.msra.gmra.mxu1 %vm676_vm1, %v5214_v56 }
 0x4d4   : > { %v5309_v10 = vpop.permute.xlu1 %5308  ;;  %v5404_v52 = vpop.permute.xlu0 %5403 }
 0x4d5   : > { %8789 = vmatprep.subr.msk.mxu1 %vm676_vm1, %v5404_v52  ;;  %8784 = vmatprep.subr.msk.mxu0 %vm676_vm1, %v5309_v10 }
 0x4d6   : > { %8790 = vmatpush3.xpose.msk.msra.mxu1 %vm676_vm1, %v5404_v52  ;;  %8785 = vmatpush3.xpose.msk.msra.mxu0 %vm676_vm1, %v5309_v10 }
 0x4d8   : > { %v5305_v2 = vpop.permute.xlu1 %5304  ;;  %v5402_v33 = vpop.permute.xlu0 %5401 }
 0x4d9   : > { %8786 = vmatprep.mubr.msk.f32.mxu0 %vm676_vm1, %v5305_v2  ;;  %8791 = vmatprep.subr.msk.mxu1 %vm676_vm1, %v5402_v33 }
 0x4da   : > { %8787 = vmatmul.mubr.msk.f32.vlgmr.msra.gmra.mxu0 %vm676_vm1, %v5307_v45  ;;  %8792 = vmatpush3.xpose.msk.msra.mxu1 %vm676_vm1, %v5402_v33 }
 0x4db   : > { %8803 = vmatprep.subr.mxu1 %v10077_v29 }
 0x4dc   : > { %v5497_v56 = vpop.permute.xlu1 %5496  ;;  %v5398_v25 = vpop.permute.xlu0 %5397 }
 0x4dd   : > { %8796 = vmatprep.subr.msk.mxu0 %vm676_vm1, %v5497_v56  ;;  %8793 = vmatprep.mubr.msk.f32.mxu1 %vm676_vm1, %v5398_v25 }
 0x4de   : > { %8797 = vmatpush3.xpose.msk.msra.mxu0 %vm676_vm1, %v5497_v56 }
 0x4e0   : > { %v5495_v63 = vpop.permute.xlu1 %5494  ;;  %v5400_v58 = vpop.permute.xlu0 %5399 }
 0x4e1   : > { %8794 = vmatmul.mubr.msk.f32.vlgmr.msra.gmra.mxu1 %vm676_vm1, %v5400_v58  ;;  %8798 = vmatprep.subr.msk.mxu0 %vm676_vm1, %v5495_v63 }
 0x4e2   : > { %8804 = vmatpush3.msra.mxu1 %v10077_v29  ;;  %8799 = vmatpush3.xpose.msk.msra.mxu0 %vm676_vm1, %v5495_v63  ;;  %v10420_v29 = vpop.f32.mrf.mxu1 }
 0x4e3   : > { %8805 = vmatprep.subr.mxu1 %v10084_v55  ;;  %8817 = vmatprep.subr.mxu0 %v10101_v48  ;;  %11426 = vst [vmem:[#allocation37_spill] sm:$0xff] %v10420_v29 }
 0x4e4   : > { %8806 = vmatpush3.msra.mxu1 %v10084_v55  ;;  %v5491_v45 = vpop.permute.xlu1 %5490  ;;  %v10422_v52 = vpop.f32.mrf.mxu1 }
 0x4e5   : > { %8810 = vmatprep.subr.mxu1 %v10087_v61  ;;  %8800 = vmatprep.mubr.msk.f32.mxu0 %vm676_vm1, %v5491_v45  ;;  %11427 = vst [vmem:[#allocation38_spill] sm:$0xff] %v10422_v52 }
 0x4e6   : > { %v10424_v55 = vpop.f32.mrf.mxu1 }
 0x4e7   : > { %11428 = vst [vmem:[#allocation39_spill] sm:$0xff] %v10424_v55 }
 0x4e8   : > { %v5493_v10 = vpop.permute.xlu1 %5492  ;;  %v10426_v2 = vpop.f32.mrf.mxu1 }
 0x4e9   : > { %8801 = vmatmul.mubr.msk.f32.vlgmr.msra.gmra.mxu0 %vm676_vm1, %v5493_v10  ;;  %11429 = vst [vmem:[#allocation40_spill] sm:$0xff] %v10426_v2  ;;  %v5581_v2 = vlaneseq }
 0x4ea   : > { %8818 = vmatpush3.msra.mxu0 %v10101_v48  ;;  %v10428_v33 = vpop.f32.mrf.mxu1 }
 0x4eb   : > { %8819 = vmatprep.subr.mxu0 %v10112_v54  ;;  %11430 = vst [vmem:[#allocation41_spill] sm:$0xff] %v10428_v33 }
 0x4ec   : > { %8820 = vmatpush3.msra.mxu0 %v10112_v54  ;;  %v10430_v56 = vpop.f32.mrf.mxu1 }
 0x4ed   : > { %8831 = vmatprep.subr.mxu0 %v10129_v39  ;;  %11431 = vst [vmem:[#allocation42_spill] sm:$0xff] %v10430_v56  ;;  %v5582_v56 = vshrl.u32 %v5581_v2, 7 }
 0x4ee   : > { %v10432_v25 = vpop.f32.mrf.mxu1 }
 0x4ef   : > { %11432 = vst [vmem:[#allocation43_spill] sm:$0xff] %v10432_v25 }
 0x4f0   : > { %v10434_v48 = vpop.f32.mrf.mxu1 }
 0x4f1   : > { %11433 = vst [vmem:[#allocation44_spill] sm:$0xff] %v10434_v48  ;;  %v5583_v48 = vadd.s32 8, %v5582_v56 }
 0x4f2   : > { %v10436_v63 = vpop.f32.mrf.mxu1 }
 0x4f3   : > { %11434 = vst [vmem:[#allocation45_spill] sm:$0xff] %v10436_v63  ;;  %v5585_v63 = vand.u32 127, %v5581_v2 }
 0x4f4   : > { %v10438_v54 = vpop.f32.mrf.mxu1 }
 0x4f5   : > { %11435 = vst [vmem:[#allocation46_spill] sm:$0xff] %v10438_v54  ;;  %vm10456_vm4 = vcmp.eq.s32.totalorder %v5583_v48, %v5585_v63  ;;  %vm10460_vm5 = vcmp.eq.s32.totalorder %v5582_v56, %v5585_v63 }
 0x4f6   : > { %v10440_v58 = vpop.f32.mrf.mxu1 }
 0x4f7   : > { %11436 = vst [vmem:[#allocation47_spill] sm:$0xff] %v10440_v58  ;;  %v2357_v58 = vsel %vm2155_vm2, %v9908_v36, 0.0 }
 0x4f8   : > { %v10442_v45 = vpop.f32.mrf.mxu1 }
 0x4f9   : > { %11437 = vst [vmem:[#allocation48_spill] sm:$0xff] %v10442_v45 }
 0x4fa   : > { %v10444_v10 = vpop.f32.mrf.mxu1 }
 0x4fb   : > { %11438 = vst [vmem:[#allocation49_spill] sm:$0xff] %v10444_v10  ;;  %v2354_v10 = vsel %vm2155_vm2, %v9899_v51, 0.0 }
 0x4fc   : > { %v10446_v55 = vpop.f32.mrf.mxu1 }
 0x4fd   : > { %11439 = vst [vmem:[#allocation50_spill] sm:$0xff] %v10446_v55 }
 0x4fe   : > { %v10448_v33 = vpop.f32.mrf.mxu1 }
 0x4ff   : > { %11440 = vst [vmem:[#allocation51_spill] sm:$0xff] %v10448_v33 }
 0x500   : > { %v10450_v52 = vpop.f32.mrf.mxu1 }
 0x501   : > { %11441 = vst [vmem:[#allocation52_spill] sm:$0xff] %v10450_v52 }
 0x528   : > { %v10452_v25 = vpop.f32.mrf.mxu1 }
 0x529   : > { %11442 = vst [vmem:[#allocation53_spill] sm:$0xff] %v10452_v25 }
 0x52a   : > { %v10454_v29 = vpop.f32.mrf.mxu1 }
 0x52b   : > { %11443 = vst [vmem:[#allocation54_spill] sm:$0xff] %v10454_v29 }
 0x532   : > { %v8697_v45 = vpop.f32.mrf.mxu1 }
 0x533   : > { %v10466_v33 = vsel %vm10456_vm4, -1e+30, %v8697_v45 }
 0x534   : > { %v5623_v25 = vsel %vm2155_vm2, %v10466_v33, -inf  ;;  %v4177_v52 = vpop.f32.mrf.mxu1 }
 0x535   : > { %v10472_v2 = vsel %vm10460_vm5, -1e+30, %v4177_v52  ;;  %5624 = vmax.xlane.f32.xlu1 %v5623_v25 }
 0x536   : > { %v5620_v48 = vsel %vm2155_vm2, %v10472_v2, -inf }
 0x537   : > { %5621 = vmax.xlane.f32.xlu0 %v5620_v48 }
 0x53a   : > { %v8704_v56 = vpop.f32.mrf.mxu1 }
 0x53b   : > { %v10478_v63 = vsel %vm10456_vm4, -1e+30, %v8704_v56 }
 0x53c   : > { %v5629_v45 = vsel %vm2155_vm2, %v10478_v63, -inf  ;;  %v4270_v29 = vpop.f32.mrf.mxu1 }
 0x53d   : > { %v10484_v55 = vsel %vm10460_vm5, -1e+30, %v4270_v29  ;;  %5630 = vmax.xlane.f32.xlu0 %v5629_v45 }
 0x53e   : > { %v5626_v52 = vsel %vm2155_vm2, %v10484_v55, -inf }
 0x541   : > { %5627 = vmax.xlane.f32.xlu0 %v5626_v52 }
 0x542   : > { %v8711_v25 = vpop.f32.mrf.mxu1 }
 0x543   : > { %v10490_v48 = vsel %vm10456_vm4, -1e+30, %v8711_v25 }
 0x544   : > { %v5635_v56 = vsel %vm2155_vm2, %v10490_v48, -inf  ;;  %v4363_v54 = vpop.f32.mrf.mxu1 }
 0x545   : > { %v10496_v30 = vsel %vm10460_vm5, -1e+30, %v4363_v54  ;;  %5636 = vmax.xlane.f32.xlu1 %v5635_v56 }
 0x546   : > { %v5632_v29 = vsel %vm2155_vm2, %v10496_v30, -inf }
 0x549   : > { %5633 = vmax.xlane.f32.xlu1 %v5632_v29 }
 0x54a   : > { %v8718_v45 = vpop.f32.mrf.mxu1 }
 0x54b   : > { %v10502_v52 = vsel %vm10456_vm4, -1e+30, %v8718_v45 }
 0x54c   : > { %v5641_v25 = vsel %vm2155_vm2, %v10502_v52, -inf  ;;  %v4456_v26 = vpop.f32.mrf.mxu1 }
 0x54d   : > { %v10508_v60 = vsel %vm10460_vm5, -1e+30, %v4456_v26  ;;  %5642 = vmax.xlane.f32.xlu0 %v5641_v25 }
 0x54e   : > { %v5638_v54 = vsel %vm2155_vm2, %v10508_v60, -inf }
 0x551   : > { %5639 = vmax.xlane.f32.xlu0 %v5638_v54 }
 0x552   : > { %v8725_v56 = vpop.f32.mrf.mxu1 }
 0x553   : > { %v10514_v29 = vsel %vm10456_vm4, -1e+30, %v8725_v56 }
 0x554   : > { %v5647_v45 = vsel %vm2155_vm2, %v10514_v29, -inf  ;;  %v4549_v0 = vpop.f32.mrf.mxu1 }
 0x555   : > { %v10520_v17 = vsel %vm10460_vm5, -1e+30, %v4549_v0  ;;  %5648 = vmax.xlane.f32.xlu1 %v5647_v45 }
 0x556   : > { %v5644_v26 = vsel %vm2155_vm2, %v10520_v17, -inf }
 0x559   : > { %5645 = vmax.xlane.f32.xlu1 %v5644_v26 }
 0x55a   : > { %v8732_v25 = vpop.f32.mrf.mxu1 }
 0x55c   : > { %v4642_v54 = vpop.f32.mrf.mxu1 }
 0x562   : > { %v8739_v28 = vpop.f32.mrf.mxu1 }
 0x563   : > { %v10526_v56 = vsel %vm10456_vm4, -1e+30, %v8739_v28 }
 0x564   : > { %11448 = vst [vmem:[#allocation55_spill] sm:$0xff] %v10526_v56  ;;  %v5659_v35 = vsel %vm2155_vm2, %v10526_v56, -inf  ;;  %v4735_v57 = vpop.f32.mrf.mxu1 }
 0x565   : > { %v10532_v0 = vsel %vm10460_vm5, -1e+30, %v4735_v57  ;;  %5660 = vmax.xlane.f32.xlu1 %v5659_v35 }
 0x566   : > { %11449 = vst [vmem:[#allocation56_spill] sm:$0xff] %v10532_v0  ;;  %v5656_v45 = vsel %vm2155_vm2, %v10532_v0, -inf }
 0x569   : > { %5657 = vmax.xlane.f32.xlu1 %v5656_v45 }
 0x56d   : > { %v8746_v26 = vpop.f32.mrf.mxu1 }
 0x56f   : > { %v4828_v9 = vpop.f32.mrf.mxu1 }
 0x575   : > { %v8753_v21 = vpop.f32.mrf.mxu1 }
 0x576   : > { %v10538_v28 = vsel %vm10456_vm4, -1e+30, %v8753_v21 }
 0x577   : > { %11450 = vst [vmem:[#allocation57_spill] sm:$0xff] %v10538_v28  ;;  %v5671_v47 = vsel %vm2155_vm2, %v10538_v28, -inf  ;;  %v4921_v40 = vpop.f32.mrf.mxu1 }
 0x578   : > { %v10544_v57 = vsel %vm10460_vm5, -1e+30, %v4921_v40  ;;  %5672 = vmax.xlane.f32.xlu1 %v5671_v47  ;;  %v10562_v47 = vsel %vm10456_vm4, -1e+30, %v8732_v25 }
 0x579   : > { %11451 = vst [vmem:[#allocation58_spill] sm:$0xff] %v10544_v57  ;;  %v5668_v45 = vsel %vm2155_vm2, %v10544_v57, -inf  ;;  %11453 = vst [vmem:[#allocation60_spill] sm:$0xff] %v10562_v47 }
 0x57a   : > { %v8760_v35 = vpop.f32.mrf.mxu0 }
 0x57b   : > { %v10550_v0 = vsel %vm10456_vm4, -1e+30, %v8760_v35 }
 0x57c   : > { %v5677_v21 = vsel %vm2155_vm2, %v10550_v0, -inf  ;;  %5669 = vmax.xlane.f32.xlu1 %v5668_v45  ;;  %v5014_v56 = vpop.f32.mrf.mxu0  ;;  %v5653_v45 = vsel %vm2155_vm2, %v10562_v47, -inf }
 0x57d   : > { %v10556_v28 = vsel %vm10460_vm5, -1e+30, %v5014_v56  ;;  %5678 = vmax.xlane.f32.xlu0 %v5677_v21 }
 0x57e   : > { %11452 = vst [vmem:[#allocation59_spill] sm:$0xff] %v10556_v28  ;;  %v5674_v40 = vsel %vm2155_vm2, %v10556_v28, -inf  ;;  %v10574_v28 = vsel %vm10460_vm5, -1e+30, %v4642_v54 }
 0x57f   : > { %11455 = vst [vmem:[#allocation62_spill] sm:$0xff] %v10574_v28 }
 0x581   : > { %5675 = vmax.xlane.f32.xlu0 %v5674_v40  ;;  %v5650_v40 = vsel %vm2155_vm2, %v10574_v28, -inf }
 0x582   : > { %v8767_v35 = vpop.f32.mrf.mxu1 }
 0x583   : > { %v10566_v57 = vsel %vm10456_vm4, -1e+30, %v8767_v35 }
 0x584   : > { %11454 = vst [vmem:[#allocation61_spill] sm:$0xff] %v10566_v57  ;;  %v5683_v56 = vsel %vm2155_vm2, %v10566_v57, -inf  ;;  %v5107_v21 = vpop.f32.mrf.mxu1 }
 0x585   : > { %5654 = vmax.xlane.f32.xlu0 %v5653_v45  ;;  %5684 = vmax.xlane.f32.xlu1 %v5683_v56  ;;  %v10578_v25 = vsel %vm10460_vm5, -1e+30, %v5107_v21  ;;  %v10592_v56 = vsel %vm10456_vm4, -1e+30, %v8746_v26 }
 0x586   : > { %v5680_v35 = vsel %vm2155_vm2, %v10578_v25, -inf  ;;  %v5665_v21 = vsel %vm2155_vm2, %v10592_v56, -inf }
 0x589   : > { %5651 = vmax.xlane.f32.xlu0 %v5650_v40  ;;  %5681 = vmax.xlane.f32.xlu1 %v5680_v35  ;;  %v10598_v40 = vsel %vm10460_vm5, -1e+30, %v4828_v9 }
 0x58a   : > { %v8774_v47 = vpop.f32.mrf.mxu0  ;;  %11457 = vst [vmem:[#allocation64_spill] sm:$0xff] %v10598_v40 }
 0x58b   : > { %v10614_v9 = vsel %vm10456_vm4, -1e+30, %v8774_v47 }
 0x58c   : > { %v5200_v57 = vpop.f32.mrf.mxu0  ;;  %11459 = vst [vmem:[#allocation66_spill] sm:$0xff] %v10614_v9 }
 0x58d   : > { %v10586_v54 = vsel %vm10460_vm5, -1e+30, %v5200_v57 }
 0x58e   : > { %11456 = vst [vmem:[#allocation63_spill] sm:$0xff] %v10586_v54  ;;  %v5686_v45 = vsel %vm2155_vm2, %v10586_v54, -inf }
 0x58f   : > { %5687 = vmax.xlane.f32.xlu0 %v5686_v45  ;;  %v5662_v45 = vsel %vm2155_vm2, %v10598_v40, -inf }
 0x592   : > { %v8781_v28 = vpop.f32.mrf.mxu1 }
 0x593   : > { %v10602_v57 = vsel %vm10456_vm4, -1e+30, %v8781_v28  ;;  %5666 = vmax.xlane.f32.xlu0 %v5665_v21  ;;  %v5689_v21 = vsel %vm2155_vm2, %v10614_v9, -inf }
 0x594   : > { %11458 = vst [vmem:[#allocation65_spill] sm:$0xff] %v10602_v57  ;;  %v5695_v35 = vsel %vm2155_vm2, %v10602_v57, -inf  ;;  %v5293_v54 = vpop.f32.mrf.mxu1 }
 0x595   : > { %5696 = vmax.xlane.f32.xlu1 %v5695_v35  ;;  %v10608_v26 = vsel %vm10460_vm5, -1e+30, %v5293_v54 }
 0x596   : > { %v5692_v28 = vsel %vm2155_vm2, %v10608_v26, -inf }
 0x597   : > { %5663 = vmax.xlane.f32.xlu0 %v5662_v45 }
 0x599   : > { %5693 = vmax.xlane.f32.xlu1 %v5692_v28 }
 0x59a   : > { %v8788_v35 = vpop.f32.mrf.mxu0 }
 0x59b   : > { %5690 = vmax.xlane.f32.xlu0 %v5689_v21  ;;  %v10628_v47 = vsel %vm10456_vm4, -1e+30, %v8788_v35 }
 0x59c   : > { %v5386_v57 = vpop.f32.mrf.mxu0  ;;  %11461 = vst [vmem:[#allocation68_spill] sm:$0xff] %v10628_v47  ;;  %v5701_v28 = vsel %vm2155_vm2, %v10628_v47, -inf }
 0x59d   : > { %v10622_v54 = vsel %vm10460_vm5, -1e+30, %v5386_v57 }
 0x59e   : > { %11460 = vst [vmem:[#allocation67_spill] sm:$0xff] %v10622_v54  ;;  %v5698_v40 = vsel %vm2155_vm2, %v10622_v54, -inf }
 0x59f   : > { %5699 = vmax.xlane.f32.xlu0 %v5698_v40 }
 0x5a1   : > { %v8795_v45 = vpop.f32.mrf.mxu1 }
 0x5a2   : > { %v10640_v54 = vsel %vm10456_vm4, -1e+30, %v8795_v45 }
 0x5a3   : > { %5702 = vmax.xlane.f32.xlu0 %v5701_v28  ;;  %v5479_v9 = vpop.f32.mrf.mxu1  ;;  %v5707_v40 = vsel %vm2155_vm2, %v10640_v54, -inf }
 0x5a4   : > { %v10634_v21 = vsel %vm10460_vm5, -1e+30, %v5479_v9 }
 0x5a5   : > { %11462 = vst [vmem:[#allocation69_spill] sm:$0xff] %v10634_v21  ;;  %v5704_v57 = vsel %vm2155_vm2, %v10634_v21, -inf  ;;  %v2348_v21 = vsel %vm2155_vm2, %v9861_v14, 0.0  ;;  %v2360_v14 = vsel %vm2155_vm2, %v9711_v6, 0.0  ;;  %v2363_v6 = vsel %vm2155_vm2, %v9719_v13, 0.0 }
 0x5a6   : > { %5705 = vmax.xlane.f32.xlu1 %v5704_v57  ;;  %v2378_v13 = vsel %vm2155_vm2, %v9937_v4, 0.0  ;;  %v2381_v4 = vsel %vm2155_vm2, %v9949_v15, 0.0 }
 0x5a9   : > { %v8802_v35 = vpop.f32.mrf.mxu0 }
 0x5aa   : > { %5708 = vmax.xlane.f32.xlu1 %v5707_v40  ;;  %v10654_v45 = vsel %vm10456_vm4, -1e+30, %v8802_v35  ;;  %v2369_v35 = vsel %vm2155_vm2, %v9929_v50, 0.0 }
 0x5ab   : > { %v5572_v47 = vpop.f32.mrf.mxu0  ;;  %v5713_v57 = vsel %vm2155_vm2, %v10654_v45, -inf }
 0x5ac   : > { %v10646_v28 = vsel %vm10460_vm5, -1e+30, %v5572_v47  ;;  %v2351_v47 = vsel %vm2155_vm2, %v9895_v42, 0.0  ;;  %v2372_v42 = vsel %vm2155_vm2, %v9723_v22, 0.0 }
 0x5ad   : > { %v5710_v9 = vsel %vm2155_vm2, %v10646_v28, -inf }
 0x5ae   : > { %5711 = vmax.xlane.f32.xlu0 %v5710_v9  ;;  %2349 = vadd.xlane.f32.xlu1 %v2348_v21  ;;  %v2366_v21 = vsel %vm2155_vm2, %v9917_v46, 0.0 }
 0x5b2   : > { %5714 = vmax.xlane.f32.xlu0 %v5713_v57  ;;  %2355 = vadd.xlane.f32.xlu1 %v2354_v10  ;;  %v2390_v10 = vsel %vm2155_vm2, %v9953_v24, 0.0 }
 0x5b6   : > { %2352 = vadd.xlane.f32.xlu0 %v2351_v47  ;;  %2361 = vadd.xlane.f32.xlu1 %v2360_v14 }
 0x5ba   : > { %2358 = vadd.xlane.f32.xlu0 %v2357_v58  ;;  %2367 = vadd.xlane.f32.xlu1 %v2366_v21  ;;  %v2387_v58 = vsel %vm2155_vm2, %v9745_v41, 0.0  ;;  %v2402_v21 = vsel %vm2155_vm2, %v9969_v44, 0.0  ;;  %v2399_v44 = vsel %vm2155_vm2, %v9757_v8, 0.0  ;;  %v2405_v8 = vsel %vm2155_vm2, %v9981_v43, 0.0 }
 0x5bb   : > { %v2411_v43 = vsel %vm2155_vm2, %v9769_v16, 0.0  ;;  %v2417_v16 = vsel %vm2155_vm2, %v9997_v5, 0.0  ;;  %v2423_v5 = vsel %vm2155_vm2, %v9781_v20, 0.0  ;;  %v2438_v20 = vsel %vm2155_vm2, %v10284_v49, 0.0 }
 0x5be   : > { %v5625_v51 = vpop.xlane.xlu1 %5624  ;;  %2364 = vadd.xlane.f32.xlu0 %v2363_v6  ;;  %2373 = vadd.xlane.f32.xlu1 %v2372_v42 }
 0x5bf   : > { %v5717_v36 = vsub.f32 %v10466_v33, %v5625_v51  ;;  %7463 = vst.msk [vmem:[%s10673_s11 + $0x8] sm:$0xff] %vm7396_vm3, %v5625_v51  ;;  %v2375_v33 = vsel %vm2155_vm2, %v9733_v18, 0.0 }
 0x5c0   : > { %v5622_v46 = vpop.xlane.xlu0 %5621 }
 0x5c1   : > { %v5716_v40 = vsub.f32 %v10472_v2, %v5622_v46  ;;  %7462 = vst.msk [vmem:[%s10673_s11] sm:$0xff] %vm7396_vm3, %v5622_v46  ;;  %v5750_v22 = vmul.f32 1.442695, %v5717_v36  ;;  %v2384_v2 = vsel %vm2155_vm2, %v9736_v53, 0.0 }
 0x5c2   : > { %2370 = vadd.xlane.f32.xlu0 %v2369_v35  ;;  %2379 = vadd.xlane.f32.xlu1 %v2378_v13 }
 0x5c3   : > { %v5748_v9 = vmul.f32 1.442695, %v5716_v40 }
 0x5c5   : > { %8989 = vpow2.f32 %v5748_v9 }
 0x5c6   : > { %8991 = vpow2.f32 %v5750_v22  ;;  %v5631_v57 = vpop.xlane.xlu0 %5630  ;;  %2376 = vadd.xlane.f32.xlu0 %v2375_v33  ;;  %2385 = vadd.xlane.f32.xlu1 %v2384_v2 }
 0x5c7   : > { %7465 = vst.msk [vmem:[%s10673_s11 + $0x18] sm:$0xff] %vm7396_vm3, %v5631_v57  ;;  %v5719_v50 = vsub.f32 %v10478_v63, %v5631_v57  ;;  %v2396_v63 = vsel %vm2155_vm2, %v9748_v3, 0.0 }
 0x5c9   : > { %v5754_v53 = vmul.f32 1.442695, %v5719_v50  ;;  %v11464_v50 = vld [vmem:[#allocation14_spill] sm:$0xff] }
 0x5ca   : > { %v5628_v47 = vpop.xlane.xlu0 %5627  ;;  %2382 = vadd.xlane.f32.xlu0 %v2381_v4  ;;  %2391 = vadd.xlane.f32.xlu1 %v2390_v10  ;;  %v11466_v10 = vld [vmem:[#allocation18_spill] sm:$0xff] }
 0x5cb   : > { %v5718_v18 = vsub.f32 %v10484_v55, %v5628_v47  ;;  %7464 = vst.msk [vmem:[%s10673_s11 + $0x10] sm:$0xff] %vm7396_vm3, %v5628_v47  ;;  %v2393_v55 = vsel %vm2155_vm2, %v9965_v59, 0.0 }
 0x5cd   : > { %v5752_v14 = vmul.f32 1.442695, %v5718_v18 }
 0x5ce   : > { %v5637_v15 = vpop.xlane.xlu1 %5636  ;;  %2388 = vadd.xlane.f32.xlu0 %v2387_v58  ;;  %2397 = vadd.xlane.f32.xlu1 %v2396_v63 }
 0x5cf   : > { %8993 = vpow2.f32 %v5752_v14  ;;  %7467 = vst.msk [vmem:[%s10673_s11 + $0x28] sm:$0xff] %vm7396_vm3, %v5637_v15  ;;  %v5721_v24 = vsub.f32 %v10490_v48, %v5637_v15 }
 0x5d0   : > { %8995 = vpow2.f32 %v5754_v53  ;;  %v11467_v53 = vld [vmem:[#allocation56_spill] sm:$0xff] }
 0x5d1   : > { %v5758_v48 = vmul.f32 1.442695, %v5721_v24 }
 0x5d2   : > { %v10714_v41 = vpop.eup %8989  ;;  %v5634_v6 = vpop.xlane.xlu1 %5633  ;;  %2394 = vadd.xlane.f32.xlu0 %v2393_v55  ;;  %2403 = vadd.xlane.f32.xlu1 %v2402_v21  ;;  %v11468_v21 = vld [vmem:[#allocation17_spill] sm:$0xff] }
 0x5d3   : > { %v10716_v3 = vpop.eup %8991  ;;  %v5720_v42 = vsub.f32 %v10496_v30, %v5634_v6  ;;  %7466 = vst.msk [vmem:[%s10673_s11 + $0x20] sm:$0xff] %vm7396_vm3, %v5634_v6  ;;  %8807 = vmatprep.mubr.msk.f32.mxu1 %vm2155_vm2, %v10714_v41  ;;  %v2408_v30 = vsel %vm2155_vm2, %v9760_v11, 0.0  ;;  %v2414_v11 = vsel %vm2155_vm2, %v9985_v32, 0.0  ;;  %v2420_v32 = vsel %vm2155_vm2, %v9772_v19, 0.0  ;;  %v11469_v6 = vld [vmem:[#allocation20_spill] sm:$0xff] }
 0x5d4   : > { %8808 = vmatmul.mubr.msk.f32.vlgmr.msra.gmra.mxu1 %vm2155_vm2, %v10716_v3  ;;  %v2426_v19 = vsel %vm2155_vm2, %v10001_v31, 0.0  ;;  %v2432_v31 = vsel %vm2155_vm2, %v9790_v23, 0.0  ;;  %v5815_v24 = vsel %vm2155_vm2, %v10716_v3, 0.0 }
 0x5d5   : > { %v5756_v59 = vmul.f32 1.442695, %v5720_v42  ;;  %8811 = vmatpush3.msra.mxu1 %v10087_v61 }
 0x5d6   : > { %8812 = vmatprep.subr.mxu1 %v10098_v7  ;;  %v5643_v51 = vpop.xlane.xlu0 %5642  ;;  %2400 = vadd.xlane.f32.xlu0 %v2399_v44  ;;  %v11470_v44 = vld [vmem:[#allocation57_spill] sm:$0xff] }
 0x5d7   : > { %8997 = vpow2.f32 %v5756_v59  ;;  %8813 = vmatpush3.msra.mxu1 %v10098_v7  ;;  %7469 = vst.msk [vmem:[%s10673_s11 + $0x38] sm:$0xff] %vm7396_vm3, %v5643_v51  ;;  %2409 = vadd.xlane.f32.xlu1 %v2408_v30  ;;  %v5723_v61 = vsub.f32 %v10502_v52, %v5643_v51 }
 0x5d8   : > { %8999 = vpow2.f32 %v5758_v48  ;;  %8824 = vmatprep.subr.mxu1 %v10115_v38 }
 0x5d9   : > { %v5762_v40 = vmul.f32 1.442695, %v5723_v61 }
 0x5da   : > { %v5640_v36 = vpop.xlane.xlu0 %5639  ;;  %2406 = vadd.xlane.f32.xlu0 %v2405_v8 }
 0x5db   : > { %v5722_v46 = vsub.f32 %v10508_v60, %v5640_v36  ;;  %7468 = vst.msk [vmem:[%s10673_s11 + $0x30] sm:$0xff] %vm7396_vm3, %v5640_v36  ;;  %2415 = vadd.xlane.f32.xlu1 %v2414_v11 }
 0x5dc   : > { %v10743_v7 = vpop.eup %8993 }
 0x5dd   : > { %v10745_v52 = vpop.eup %8995  ;;  %v5760_v35 = vmul.f32 1.442695, %v5722_v46  ;;  %8814 = vmatprep.mubr.msk.f32.mxu1 %vm2155_vm2, %v10743_v7  ;;  %v5818_v18 = vsel %vm2155_vm2, %v10743_v7, 0.0  ;;  %v11471_v46 = vld [vmem:[#allocation58_spill] sm:$0xff] }
 0x5de   : > { %v5649_v13 = vpop.xlane.xlu1 %5648  ;;  %8815 = vmatmul.mubr.msk.f32.vlgmr.msra.gmra.mxu1 %vm2155_vm2, %v10745_v52  ;;  %2412 = vadd.xlane.f32.xlu0 %v2411_v43  ;;  %v11472_v43 = vld [vmem:[#allocation21_spill] sm:$0xff] }
 0x5df   : > { %9001 = vpow2.f32 %v5760_v35  ;;  %7471 = vst.msk [vmem:[%s10673_s11 + $0x48] sm:$0xff] %vm7396_vm3, %v5649_v13  ;;  %8825 = vmatpush3.msra.mxu1 %v10115_v38  ;;  %2421 = vadd.xlane.f32.xlu1 %v2420_v32  ;;  %v5725_v60 = vsub.f32 %v10514_v29, %v5649_v13  ;;  %v11473_v32 = vld [vmem:[#allocation23_spill] sm:$0xff] }
 0x5e0   : > { %9003 = vpow2.f32 %v5762_v40  ;;  %8826 = vmatprep.subr.mxu1 %v10126_v37 }
 0x5e1   : > { %8827 = vmatpush3.msra.mxu1 %v10126_v37  ;;  %v5766_v9 = vmul.f32 1.442695, %v5725_v60  ;;  %v2429_v37 = vsel %vm2155_vm2, %v10015_v34, 0.0  ;;  %v5812_v34 = vsel %vm2155_vm2, %v10714_v41, 0.0  ;;  %v5821_v41 = vsel %vm2155_vm2, %v10745_v52, 0.0 }
 0x5e2   : > { %8838 = vmatprep.subr.mxu1 %v10143_v62  ;;  %v5646_v22 = vpop.xlane.xlu1 %5645  ;;  %2418 = vadd.xlane.f32.xlu0 %v2417_v16  ;;  %v11474_v16 = vld [vmem:[#allocation59_spill] sm:$0xff] }
 0x5e3   : > { %v5724_v38 = vsub.f32 %v10520_v17, %v5646_v22  ;;  %7470 = vst.msk [vmem:[%s10673_s11 + $0x40] sm:$0xff] %vm7396_vm3, %v5646_v22  ;;  %2427 = vadd.xlane.f32.xlu1 %v2426_v19 }
 0x5e4   : > { %v8998_v29 = vpop.eup %8997 }
 0x5e5   : > { %v9000_v33 = vpop.eup %8999  ;;  %v5764_v2 = vmul.f32 1.442695, %v5724_v38  ;;  %8821 = vmatprep.mubr.msk.f32.mxu0 %vm2155_vm2, %v8998_v29  ;;  %v5824_v55 = vsel %vm2155_vm2, %v8998_v29, 0.0  ;;  %v11475_v29 = vld [vmem:[#allocation61_spill] sm:$0xff] }
 0x5e6   : > { %8822 = vmatmul.mubr.msk.f32.vlgmr.msra.gmra.mxu0 %vm2155_vm2, %v9000_v33  ;;  %2424 = vadd.xlane.f32.xlu0 %v2423_v5  ;;  %v5827_v42 = vsel %vm2155_vm2, %v9000_v33, 0.0  ;;  %v11476_v33 = vld [vmem:[#allocation60_spill] sm:$0xff] }
 0x5e7   : > { %9005 = vpow2.f32 %v5764_v2  ;;  %8832 = vmatpush3.msra.mxu0 %v10129_v39  ;;  %2433 = vadd.xlane.f32.xlu1 %v2432_v31  ;;  %v2435_v39 = vsel %vm2155_vm2, %v9800_v27, 0.0  ;;  %v11465_v27 = vld [vmem:[#allocation35_spill] sm:$0xff] }
 0x5e8   : > { %9007 = vpow2.f32 %v5766_v9  ;;  %8833 = vmatprep.subr.mxu0 %v10140_v12  ;;  %v2441_v4 = vsel %vm2155_vm2, %v11465_v27, 0.0  ;;  %v11478_v27 = vld [vmem:[#allocation63_spill] sm:$0xff] }
 0x5e9   : > { %8834 = vmatpush3.msra.mxu0 %v10140_v12  ;;  %v11463_v12 = vld [vmem:[#allocation55_spill] sm:$0xff] }
 0x5ea   : > { %8845 = vmatprep.subr.mxu0 %v10157_v1  ;;  %2430 = vadd.xlane.f32.xlu0 %v2429_v37 }
 0x5eb   : > { %2439 = vadd.xlane.f32.xlu1 %v2438_v20 }
 0x5ec   : > { %v9002_v23 = vpop.eup %9001 }
 0x5ed   : > { %v9004_v17 = vpop.eup %9003  ;;  %8828 = vmatprep.mubr.msk.f32.mxu1 %vm2155_vm2, %v9002_v23  ;;  %v5830_v3 = vsel %vm2155_vm2, %v9002_v23, 0.0 }
 0x5ee   : > { %v5661_v57 = vpop.xlane.xlu1 %5660  ;;  %8829 = vmatmul.mubr.msk.f32.vlgmr.msra.gmra.mxu1 %vm2155_vm2, %v9004_v17  ;;  %2436 = vadd.xlane.f32.xlu0 %v2435_v39  ;;  %v5833_v59 = vsel %vm2155_vm2, %v9004_v17, 0.0  ;;  %v11477_v17 = vld [vmem:[#allocation62_spill] sm:$0xff] }
 0x5ef   : > { %7475 = vst.msk [vmem:[%s10673_s11 + $0x68] sm:$0xff] %vm7396_vm3, %v5661_v57  ;;  %8839 = vmatpush3.msra.mxu1 %v10143_v62  ;;  %5813 = vadd.xlane.f32.xlu1 %v5812_v34  ;;  %v5729_v49 = vsub.f32 %v11463_v12, %v5661_v57 }
 0x5f0   : > { %8840 = vmatprep.subr.mxu1 %v11464_v50 }
 0x5f1   : > { %8841 = vmatpush3.msra.mxu1 %v11464_v50  ;;  %v5774_v58 = vmul.f32 1.442695, %v5729_v49 }
 0x5f2   : > { %8852 = vmatprep.subr.mxu1 %v11466_v10  ;;  %v5658_v47 = vpop.xlane.xlu1 %5657  ;;  %2442 = vadd.xlane.f32.xlu0 %v2441_v4 }
 0x5f3   : > { %v5728_v14 = vsub.f32 %v11467_v53, %v5658_v47  ;;  %7474 = vst.msk [vmem:[%s10673_s11 + $0x60] sm:$0xff] %vm7396_vm3, %v5658_v47  ;;  %5819 = vadd.xlane.f32.xlu1 %v5818_v18  ;;  %v11479_v53 = vld [vmem:[#allocation26_spill] sm:$0xff] }
 0x5f4   : > { %v9006_v62 = vpop.eup %9005 }
 0x5f5   : > { %v9008_v63 = vpop.eup %9007  ;;  %v5772_v15 = vmul.f32 1.442695, %v5728_v14  ;;  %8835 = vmatprep.mubr.msk.f32.mxu0 %vm2155_vm2, %v9006_v62 }
 0x5f6   : > { %8836 = vmatmul.mubr.msk.f32.vlgmr.msra.gmra.mxu0 %vm2155_vm2, %v9008_v63  ;;  %5816 = vadd.xlane.f32.xlu0 %v5815_v24  ;;  %v5839_v11 = vsel %vm2155_vm2, %v9008_v63, 0.0 }
 0x5f7   : > { %9009 = vpow2.f32 %v5772_v15  ;;  %8846 = vmatpush3.msra.mxu0 %v10157_v1  ;;  %5825 = vadd.xlane.f32.xlu1 %v5824_v55  ;;  %v5836_v1 = vsel %vm2155_vm2, %v9006_v62, 0.0  ;;  %v11481_v55 = vld [vmem:[#allocation65_spill] sm:$0xff] }
 0x5f8   : > { %9011 = vpow2.f32 %v5774_v58  ;;  %8847 = vmatprep.subr.mxu0 %v11468_v21  ;;  %v11480_v58 = vld [vmem:[#allocation27_spill] sm:$0xff] }
 0x5f9   : > { %8848 = vmatpush3.msra.mxu0 %v11468_v21 }
 0x5fa   : > { %8859 = vmatprep.subr.mxu0 %v11469_v6  ;;  %5822 = vadd.xlane.f32.xlu0 %v5821_v41 }
 0x5fb   : > { %5831 = vadd.xlane.f32.xlu1 %v5830_v3  ;;  %v11482_v3 = vld [vmem:[#allocation64_spill] sm:$0xff] }
 0x5fe   : > { %5828 = vadd.xlane.f32.xlu0 %v5827_v42 }
 0x5ff   : > { %5837 = vadd.xlane.f32.xlu1 %v5836_v1 }
 0x601   : > { %v5673_v48 = vpop.xlane.xlu1 %5672 }
 0x602   : > { %v5733_v51 = vsub.f32 %v11470_v44, %v5673_v48  ;;  %7479 = vst.msk [vmem:[%s10673_s11 + $0x88] sm:$0xff] %vm7396_vm3, %v5673_v48  ;;  %5834 = vadd.xlane.f32.xlu0 %v5833_v59 }
 0x604   : > { %v10821_v30 = vpop.eup %9009  ;;  %v5782_v8 = vmul.f32 1.442695, %v5733_v51 }
 0x605   : > { %v10823_v61 = vpop.eup %9011  ;;  %8849 = vmatprep.mubr.msk.f32.mxu0 %vm2155_vm2, %v10821_v30  ;;  %v5670_v36 = vpop.xlane.xlu1 %5669 }
 0x606   : > { %v5732_v7 = vsub.f32 %v11471_v46, %v5670_v36  ;;  %7478 = vst.msk [vmem:[%s10673_s11 + $0x80] sm:$0xff] %vm7396_vm3, %v5670_v36  ;;  %8850 = vmatmul.mubr.msk.f32.vlgmr.msra.gmra.mxu0 %vm2155_vm2, %v10823_v61  ;;  %5840 = vadd.xlane.f32.xlu0 %v5839_v11  ;;  %v5679_v40 = vpop.xlane.xlu0 %5678  ;;  %9013 = vpow2.f32 %v5782_v8 }
 0x607   : > { %8860 = vmatpush3.msra.mxu0 %v11469_v6  ;;  %v5735_v52 = vsub.f32 %v10550_v0, %v5679_v40  ;;  %7481 = vst.msk [vmem:[%s10673_s11 + $0x98] sm:$0xff] %vm7396_vm3, %v5679_v40  ;;  %v11483_v40 = vld [vmem:[#allocation66_spill] sm:$0xff] }
 0x608   : > { %v5780_v35 = vmul.f32 1.442695, %v5732_v7  ;;  %8861 = vmatprep.subr.mxu0 %v11472_v43 }
 0x609   : > { %v5786_v13 = vmul.f32 1.442695, %v5735_v52  ;;  %8862 = vmatpush3.msra.mxu0 %v11472_v43 }
 0x60a   : > { %9015 = vpow2.f32 %v5780_v35  ;;  %8873 = vmatprep.subr.mxu0 %v11473_v32  ;;  %v5676_v60 = vpop.xlane.xlu0 %5675 }
 0x60b   : > { %9017 = vpow2.f32 %v5786_v13  ;;  %v5734_v22 = vsub.f32 %v11474_v16, %v5676_v60  ;;  %7480 = vst.msk [vmem:[%s10673_s11 + $0x90] sm:$0xff] %vm7396_vm3, %v5676_v60  ;;  %v11484_v13 = vld [vmem:[#allocation19_spill] sm:$0xff] }
 0x60c   : > { %v11486_v60 = vld [vmem:[#allocation67_spill] sm:$0xff] }
 0x60d   : > { %v5784_v0 = vmul.f32 1.442695, %v5734_v22 }
 0x60e   : > { %v5685_v19 = vpop.xlane.xlu1 %5684  ;;  %v5655_v38 = vpop.xlane.xlu0 %5654 }
 0x60f   : > { %9019 = vpow2.f32 %v5784_v0  ;;  %v5737_v9 = vsub.f32 %v11475_v29, %v5685_v19  ;;  %7483 = vst.msk [vmem:[%s10673_s11 + $0xa8] sm:$0xff] %vm7396_vm3, %v5685_v19  ;;  %v5727_v2 = vsub.f32 %v11476_v33, %v5655_v38  ;;  %7473 = vst.msk [vmem:[%s10673_s11 + $0x58] sm:$0xff] %vm7396_vm3, %v5655_v38  ;;  %v11488_v19 = vld [vmem:[#allocation31_spill] sm:$0xff] }
 0x611   : > { %v5770_v5 = vmul.f32 1.442695, %v5727_v2  ;;  %v5790_v31 = vmul.f32 1.442695, %v5737_v9  ;;  %v11489_v9 = vld [vmem:[#allocation68_spill] sm:$0xff] }
 0x612   : > { %v5682_v37 = vpop.xlane.xlu1 %5681  ;;  %v5652_v20 = vpop.xlane.xlu0 %5651 }
 0x613   : > { %v5736_v23 = vsub.f32 %v10578_v25, %v5682_v37  ;;  %7482 = vst.msk [vmem:[%s10673_s11 + $0xa0] sm:$0xff] %vm7396_vm3, %v5682_v37  ;;  %v5726_v39 = vsub.f32 %v11477_v17, %v5652_v20  ;;  %7472 = vst.msk [vmem:[%s10673_s11 + $0x50] sm:$0xff] %vm7396_vm3, %v5652_v20  ;;  %9021 = vpow2.f32 %v5770_v5  ;;  %v10855_v12 = vpop.eup %9013  ;;  %v11490_v37 = vld [vmem:[#allocation69_spill] sm:$0xff] }
 0x614   : > { %9023 = vpow2.f32 %v5790_v31  ;;  %v5848_v31 = vsel %vm2155_vm2, %v10821_v30, 0.0 }
 0x615   : > { %v5788_v57 = vmul.f32 1.442695, %v5736_v23  ;;  %v5768_v34 = vmul.f32 1.442695, %v5726_v39 }
 0x617   : > { %v10857_v49 = vpop.eup %9015  ;;  %9025 = vpow2.f32 %v5788_v57 }
 0x618   : > { %v10859_v50 = vpop.eup %9017  ;;  %9027 = vpow2.f32 %v5768_v34  ;;  %8863 = vmatprep.mubr.msk.f32.mxu0 %vm2155_vm2, %v10857_v49  ;;  %v5688_v25 = vpop.xlane.xlu0 %5687 }
 0x619   : > { %v5738_v4 = vsub.f32 %v11478_v27, %v5688_v25  ;;  %7484 = vst.msk [vmem:[%s10673_s11 + $0xb0] sm:$0xff] %vm7396_vm3, %v5688_v25  ;;  %8864 = vmatmul.mubr.msk.f32.vlgmr.msra.gmra.mxu0 %vm2155_vm2, %v10855_v12  ;;  %v5869_v47 = vsel %vm2155_vm2, %v10859_v50, 0.0 }
 0x61a   : > { %8874 = vmatpush3.msra.mxu0 %v11473_v32  ;;  %5870 = vadd.xlane.f32.xlu0 %v5869_v47  ;;  %v11485_v32 = vld [vmem:[#allocation29_spill] sm:$0xff]  ;;  %v11491_v47 = vld [vmem:[#allocation24_spill] sm:$0xff] }
 0x61b   : > { %v5792_v18 = vmul.f32 1.442695, %v5738_v4  ;;  %8875 = vmatprep.subr.mxu0 %v11479_v53 }
 0x61c   : > { %v10872_v14 = vpop.eup %9019  ;;  %8876 = vmatpush3.msra.mxu0 %v11479_v53  ;;  %v5667_v62 = vpop.xlane.xlu0 %5666  ;;  %v11492_v53 = vld [vmem:[#allocation25_spill] sm:$0xff] }
 0x61d   : > { %9029 = vpow2.f32 %v5792_v18  ;;  %8887 = vmatprep.subr.mxu0 %v11480_v58  ;;  %7477 = vst.msk [vmem:[%s10673_s11 + $0x78] sm:$0xff] %vm7396_vm3, %v5667_v62  ;;  %v5866_v63 = vsel %vm2155_vm2, %v10872_v14, 0.0  ;;  %v5731_v15 = vsub.f32 %v10592_v56, %v5667_v62 }
 0x61e   : > { %v5697_v24 = vpop.xlane.xlu1 %5696  ;;  %5867 = vadd.xlane.f32.xlu1 %v5866_v63 }
 0x61f   : > { %7487 = vst.msk [vmem:[%s10673_s11 + $0xc8] sm:$0xff] %vm7396_vm3, %v5697_v24  ;;  %v5741_v21 = vsub.f32 %v11481_v55, %v5697_v24  ;;  %v5778_v1 = vmul.f32 1.442695, %v5731_v15  ;;  %v11494_v24 = vld [vmem:[#allocation28_spill] sm:$0xff] }
 0x620   : > { %v5664_v41 = vpop.xlane.xlu0 %5663  ;;  %v9022_v6 = vpop.eup %9021 }
 0x621   : > { %v5730_v42 = vsub.f32 %v11482_v3, %v5664_v41  ;;  %7476 = vst.msk [vmem:[%s10673_s11 + $0x70] sm:$0xff] %vm7396_vm3, %v5664_v41  ;;  %v5845_v59 = vsel %vm2155_vm2, %v9022_v6, 0.0  ;;  %v10888_v44 = vpop.eup %9023  ;;  %v5798_v36 = vmul.f32 1.442695, %v5741_v21  ;;  %v11495_v41 = vld [vmem:[#allocation30_spill] sm:$0xff] }
 0x622   : > { %v5694_v48 = vpop.xlane.xlu1 %5693  ;;  %5846 = vadd.xlane.f32.xlu0 %v5845_v59 }
 0x623   : > { %v5776_v56 = vmul.f32 1.442695, %v5730_v42  ;;  %v5740_v51 = vsub.f32 %v10608_v26, %v5694_v48  ;;  %7486 = vst.msk [vmem:[%s10673_s11 + $0xc0] sm:$0xff] %vm7396_vm3, %v5694_v48  ;;  %v5851_v42 = vsel %vm2155_vm2, %v10823_v61, 0.0 }
 0x624   : > { %v10893_v8 = vpop.eup %9025  ;;  %v5691_v11 = vpop.xlane.xlu0 %5690 }
 0x625   : > { %v9028_v46 = vpop.eup %9027  ;;  %9031 = vpow2.f32 %v5776_v56  ;;  %v5796_v7 = vmul.f32 1.442695, %v5740_v51  ;;  %v5739_v52 = vsub.f32 %v11483_v40, %v5691_v11  ;;  %7485 = vst.msk [vmem:[%s10673_s11 + $0xb8] sm:$0xff] %vm7396_vm3, %v5691_v11  ;;  %8877 = vmatprep.mubr.msk.f32.mxu0 %vm2155_vm2, %v10893_v8  ;;  %v11497_v56 = vld [vmem:[#allocation34_spill] sm:$0xff] }
 0x626   : > { %9033 = vpow2.f32 %v5778_v1  ;;  %8842 = vmatprep.mubr.msk.f32.mxu1 %vm2155_vm2, %v9028_v46  ;;  %8878 = vmatmul.mubr.msk.f32.vlgmr.msra.gmra.mxu0 %vm2155_vm2, %v10888_v44  ;;  %v5842_v26 = vsel %vm2155_vm2, %v9028_v46, 0.0  ;;  %v11496_v1 = vld [vmem:[#allocation32_spill] sm:$0xff] }
 0x627   : > { %9035 = vpow2.f32 %v5796_v7  ;;  %v5794_v35 = vmul.f32 1.442695, %v5739_v52  ;;  %8843 = vmatmul.mubr.msk.f32.vlgmr.msra.gmra.mxu1 %vm2155_vm2, %v9022_v6  ;;  %8888 = vmatpush3.msra.mxu0 %v11480_v58  ;;  %v11493_v58 = vld [vmem:[#allocation33_spill] sm:$0xff] }
 0x628   : > { %9037 = vpow2.f32 %v5798_v36  ;;  %8853 = vmatpush3.msra.mxu1 %v11466_v10  ;;  %5843 = vadd.xlane.f32.xlu1 %v5842_v26  ;;  %v5700_v43 = vpop.xlane.xlu0 %5699  ;;  %v11487_v10 = vld [vmem:[#allocation22_spill] sm:$0xff]  ;;  %v11498_v36 = vld [vmem:[#allocation36_spill] sm:$0xff] }
 0x629   : > { %9039 = vpow2.f32 %v5794_v35  ;;  %8854 = vmatprep.subr.mxu1 %v11484_v13  ;;  %8889 = vmatprep.subr.mxu0 %v11485_v32  ;;  %v5742_v16 = vsub.f32 %v11486_v60, %v5700_v43  ;;  %7488 = vst.msk [vmem:[%s10673_s11 + $0xd0] sm:$0xff] %vm7396_vm3, %v5700_v43 }
 0x62a   : > { %v9030_v22 = vpop.eup %9029  ;;  %8855 = vmatpush3.msra.mxu1 %v11484_v13  ;;  %8890 = vmatpush3.msra.mxu0 %v11485_v32 }
 0x62b   : > { %v5800_v0 = vmul.f32 1.442695, %v5742_v16  ;;  %8866 = vmatprep.subr.mxu1 %v11487_v10  ;;  %8901 = vmatprep.subr.mxu0 %v11488_v19  ;;  %v5878_v38 = vsel %vm2155_vm2, %v9030_v22, 0.0  ;;  %v5860_v16 = vsel %vm2155_vm2, %v10857_v49, 0.0 }
 0x62c   : > { %5879 = vadd.xlane.f32.xlu1 %v5878_v38  ;;  %v5703_v29 = vpop.xlane.xlu0 %5702  ;;  %v5863_v38 = vsel %vm2155_vm2, %v10855_v12, 0.0 }
 0x62d   : > { %9041 = vpow2.f32 %v5800_v0  ;;  %v5743_v33 = vsub.f32 %v11489_v9, %v5703_v29  ;;  %7489 = vst.msk [vmem:[%s10673_s11 + $0xd8] sm:$0xff] %vm7396_vm3, %v5703_v29 }
 0x62f   : > { %v5802_v2 = vmul.f32 1.442695, %v5743_v33  ;;  %v5706_v5 = vpop.xlane.xlu1 %5705  ;;  %v5875_v33 = vsel %vm2155_vm2, %v10888_v44, 0.0 }
 0x630   : > { %v5744_v20 = vsub.f32 %v11490_v37, %v5706_v5  ;;  %7490 = vst.msk [vmem:[%s10673_s11 + $0xe0] sm:$0xff] %vm7396_vm3, %v5706_v5  ;;  %5849 = vadd.xlane.f32.xlu1 %v5848_v31 }
 0x631   : > { %9043 = vpow2.f32 %v5802_v2 }
 0x632   : > { %v10925_v23 = vpop.eup %9031  ;;  %v5804_v17 = vmul.f32 1.442695, %v5744_v20 }
 0x633   : > { %v10927_v39 = vpop.eup %9033  ;;  %v5709_v57 = vpop.xlane.xlu1 %5708  ;;  %8856 = vmatprep.mubr.msk.f32.mxu1 %vm2155_vm2, %v10925_v23  ;;  %v5854_v51 = vsel %vm2155_vm2, %v10925_v23, 0.0 }
 0x634   : > { %v10931_v34 = vpop.eup %9035  ;;  %9045 = vpow2.f32 %v5804_v17  ;;  %v5745_v30 = vsub.f32 %v10640_v54, %v5709_v57  ;;  %7491 = vst.msk [vmem:[%s10673_s11 + $0xe8] sm:$0xff] %vm7396_vm3, %v5709_v57  ;;  %8857 = vmatmul.mubr.msk.f32.vlgmr.msra.gmra.mxu1 %vm2155_vm2, %v10927_v39  ;;  %v5857_v40 = vsel %vm2155_vm2, %v10927_v39, 0.0 }
 0x635   : > { %v10938_v25 = vpop.eup %9037  ;;  %8867 = vmatpush3.msra.mxu1 %v11487_v10  ;;  %8870 = vmatprep.mubr.msk.f32.mxu1 %vm2155_vm2, %v10872_v14  ;;  %v5884_v9 = vsel %vm2155_vm2, %v10931_v34, 0.0 }
 0x636   : > { %v9040_v27 = vpop.eup %9039  ;;  %v5806_v4 = vmul.f32 1.442695, %v5745_v30  ;;  %8868 = vmatprep.subr.mxu1 %v11491_v47  ;;  %8891 = vmatprep.mubr.msk.f32.mxu0 %vm2155_vm2, %v10931_v34  ;;  %v5887_v5 = vsel %vm2155_vm2, %v10938_v25, 0.0 }
 0x637   : > { %8869 = vmatpush3.msra.mxu1 %v11491_v47  ;;  %8892 = vmatmul.mubr.msk.f32.vlgmr.msra.gmra.mxu0 %vm2155_vm2, %v10938_v25  ;;  %v2350_v54 = vpop.xlane.xlu1 %2349  ;;  %v5712_v18 = vpop.xlane.xlu0 %5711  ;;  %v5881_v62 = vsel %vm2155_vm2, %v9040_v27, 0.0 }
 0x638   : > { %9047 = vpow2.f32 %v5806_v4  ;;  %8902 = vmatpush3.msra.mxu0 %v11488_v19  ;;  %7932 = vst.msk [vmem:[%s9641_s28 + $0x100] sm:$0xff] %vm7396_vm3, %v2350_v54  ;;  %8880 = vmatprep.subr.mxu1 %v11492_v53  ;;  %v5746_v14 = vsub.f32 %v10646_v28, %v5712_v18  ;;  %7492 = vst.msk [vmem:[%s10673_s11 + $0xf0] sm:$0xff] %vm7396_vm3, %v5712_v18  ;;  %v5872_v19 = vsel %vm2155_vm2, %v10893_v8, 0.0 }
 0x639   : > { %8903 = vmatprep.subr.mxu0 %v11493_v58  ;;  %8871 = vmatmul.mubr.msk.f32.vlgmr.msra.gmra.mxu1 %vm2155_vm2, %v10859_v50 }
 0x63a   : > { %v9042_v63 = vpop.eup %9041  ;;  %v5808_v15 = vmul.f32 1.442695, %v5746_v14  ;;  %8881 = vmatpush3.msra.mxu1 %v11492_v53  ;;  %8904 = vmatpush3.msra.mxu0 %v11493_v58 }
 0x63b   : > { %5882 = vadd.xlane.f32.xlu0 %v5881_v62  ;;  %8882 = vmatprep.subr.mxu1 %v11494_v24  ;;  %v2356_v28 = vpop.xlane.xlu1 %2355  ;;  %v5715_v55 = vpop.xlane.xlu0 %5714  ;;  %v5890_v21 = vsel %vm2155_vm2, %v9042_v63, 0.0 }
 0x63c   : > { %9049 = vpow2.f32 %v5808_v15  ;;  %8884 = vmatprep.mubr.msk.f32.mxu1 %vm2155_vm2, %v9030_v22  ;;  %8883 = vmatpush3.msra.mxu1 %v11494_v24  ;;  %7934 = vst.msk [vmem:[%s9641_s28 + $0x110] sm:$0xff] %vm7396_vm3, %v2356_v28  ;;  %v5747_v50 = vsub.f32 %v10654_v45, %v5715_v55  ;;  %7493 = vst.msk [vmem:[%s10673_s11 + $0xf8] sm:$0xff] %vm7396_vm3, %v5715_v55 }
 0x63d   : > { %8894 = vmatprep.subr.mxu1 %v11495_v41  ;;  %8885 = vmatmul.mubr.msk.f32.vlgmr.msra.gmra.mxu1 %vm2155_vm2, %v9040_v27 }
 0x63e   : > { %v9044_v6 = vpop.eup %9043  ;;  %v5810_v3 = vmul.f32 1.442695, %v5747_v50  ;;  %8895 = vmatpush3.msra.mxu1 %v11495_v41  ;;  %5891 = vadd.xlane.f32.xlu1 %v5890_v21 }
 0x63f   : > { %5852 = vadd.xlane.f32.xlu0 %v5851_v42  ;;  %8896 = vmatprep.subr.mxu1 %v11496_v1  ;;  %v2362_v45 = vpop.xlane.xlu1 %2361  ;;  %v2353_v48 = vpop.xlane.xlu0 %2352  ;;  %v5893_v59 = vsel %vm2155_vm2, %v9044_v6, 0.0 }
 0x640   : > { %9051 = vpow2.f32 %v5810_v3  ;;  %8898 = vmatprep.mubr.msk.f32.mxu1 %vm2155_vm2, %v9042_v63  ;;  %8897 = vmatpush3.msra.mxu1 %v11496_v1  ;;  %7936 = vst.msk [vmem:[%s9641_s28 + $0x120] sm:$0xff] %vm7396_vm3, %v2362_v45  ;;  %7933 = vst.msk [vmem:[%s9641_s28 + $0x108] sm:$0xff] %vm7396_vm3, %v2353_v48 }
 0x641   : > { %v9046_v61 = vpop.eup %9045  ;;  %8908 = vmatprep.subr.mxu1 %v11497_v56  ;;  %8899 = vmatmul.mubr.msk.f32.vlgmr.msra.gmra.mxu1 %vm2155_vm2, %v9044_v6 }
 0x642   : > { %5855 = vadd.xlane.f32.xlu1 %v5854_v51  ;;  %8909 = vmatpush3.msra.mxu1 %v11497_v56  ;;  %v5896_v2 = vsel %vm2155_vm2, %v9046_v61, 0.0 }
 0x643   : > { %5894 = vadd.xlane.f32.xlu0 %v5893_v59  ;;  %8910 = vmatprep.subr.mxu1 %v11498_v36  ;;  %v2368_v11 = vpop.xlane.xlu1 %2367  ;;  %v2359_v46 = vpop.xlane.xlu0 %2358 }
 0x644   : > { %8905 = vmatprep.mubr.msk.f32.mxu0 %vm2155_vm2, %v9046_v61  ;;  %8911 = vmatpush3.msra.mxu1 %v11498_v36  ;;  %7938 = vst.msk [vmem:[%s9641_s28 + $0x130] sm:$0xff] %vm7396_vm3, %v2368_v11  ;;  %7935 = vst.msk [vmem:[%s9641_s28 + $0x118] sm:$0xff] %vm7396_vm3, %v2359_v46 }
 0x645   : > { %v9048_v7 = vpop.eup %9047 }
 0x646   : > { %8906 = vmatmul.mubr.msk.f32.vlgmr.msra.gmra.mxu0 %vm2155_vm2, %v9048_v7  ;;  %v5899_v37 = vsel %vm2155_vm2, %v9048_v7, 0.0 }
 0x647   : > { %5858 = vadd.xlane.f32.xlu0 %v5857_v40  ;;  %v2374_v52 = vpop.xlane.xlu1 %2373  ;;  %v2365_v26 = vpop.xlane.xlu0 %2364 }
 0x648   : > { %7940 = vst.msk [vmem:[%s9641_s28 + $0x140] sm:$0xff] %vm7396_vm3, %v2374_v52  ;;  %7937 = vst.msk [vmem:[%s9641_s28 + $0x128] sm:$0xff] %vm7396_vm3, %v2365_v26 }
 0x649   : > { %v9050_v35 = vpop.eup %9049 }
 0x64a   : > { %8912 = vmatprep.mubr.msk.f32.mxu1 %vm2155_vm2, %v9050_v35  ;;  %v5902_v43 = vsel %vm2155_vm2, %v9050_v35, 0.0 }
 0x64b   : > { %v2380_v13 = vpop.xlane.xlu1 %2379  ;;  %5903 = vadd.xlane.f32.xlu1 %v5902_v43  ;;  %v2371_v32 = vpop.xlane.xlu0 %2370 }
 0x64c   : > { %7942 = vst.msk [vmem:[%s9641_s28 + $0x150] sm:$0xff] %vm7396_vm3, %v2380_v13  ;;  %7939 = vst.msk [vmem:[%s9641_s28 + $0x138] sm:$0xff] %vm7396_vm3, %v2371_v32 }
 0x64d   : > { %v9052_v60 = vpop.eup %9051 }
 0x64e   : > { %8913 = vmatmul.mubr.msk.f32.vlgmr.msra.gmra.mxu1 %vm2155_vm2, %v9052_v60  ;;  %v5905_v22 = vsel %vm2155_vm2, %v9052_v60, 0.0 }
 0x64f   : > { %v2386_v0 = vpop.xlane.xlu1 %2385  ;;  %5861 = vadd.xlane.f32.xlu1 %v5860_v16  ;;  %5906 = vadd.xlane.f32.xlu0 %v5905_v22  ;;  %v2377_v10 = vpop.xlane.xlu0 %2376 }
 0x650   : > { %7944 = vst.msk [vmem:[%s9641_s28 + $0x160] sm:$0xff] %vm7396_vm3, %v2386_v0  ;;  %7941 = vst.msk [vmem:[%s9641_s28 + $0x148] sm:$0xff] %vm7396_vm3, %v2377_v10 }
 0x653   : > { %v2392_v29 = vpop.xlane.xlu1 %2391  ;;  %5873 = vadd.xlane.f32.xlu1 %v5872_v19  ;;  %5864 = vadd.xlane.f32.xlu0 %v5863_v38  ;;  %v2383_v49 = vpop.xlane.xlu0 %2382 }
 0x654   : > { %7946 = vst.msk [vmem:[%s9641_s28 + $0x170] sm:$0xff] %vm7396_vm3, %v2392_v29  ;;  %7943 = vst.msk [vmem:[%s9641_s28 + $0x158] sm:$0xff] %vm7396_vm3, %v2383_v49 }
 0x657   : > { %v2398_v8 = vpop.xlane.xlu1 %2397  ;;  %5885 = vadd.xlane.f32.xlu1 %v5884_v9  ;;  %5876 = vadd.xlane.f32.xlu0 %v5875_v33  ;;  %v2389_v12 = vpop.xlane.xlu0 %2388 }
 0x658   : > { %7948 = vst.msk [vmem:[%s9641_s28 + $0x180] sm:$0xff] %vm7396_vm3, %v2398_v8  ;;  %7945 = vst.msk [vmem:[%s9641_s28 + $0x168] sm:$0xff] %vm7396_vm3, %v2389_v12 }
 0x65b   : > { %v2404_v31 = vpop.xlane.xlu1 %2403  ;;  %5897 = vadd.xlane.f32.xlu1 %v5896_v2  ;;  %5888 = vadd.xlane.f32.xlu0 %v5887_v5  ;;  %v2395_v44 = vpop.xlane.xlu0 %2394 }
 0x65c   : > { %7950 = vst.msk [vmem:[%s9641_s28 + $0x190] sm:$0xff] %vm7396_vm3, %v2404_v31  ;;  %7947 = vst.msk [vmem:[%s9641_s28 + $0x178] sm:$0xff] %vm7396_vm3, %v2395_v44 }
 0x65f   : > { %5900 = vadd.xlane.f32.xlu0 %v5899_v37  ;;  %v2401_v20 = vpop.xlane.xlu0 %2400 }
 0x660   : > { %v2410_v23 = vpop.xlane.xlu1 %2409  ;;  %7949 = vst.msk [vmem:[%s9641_s28 + $0x188] sm:$0xff] %vm7396_vm3, %v2401_v20 }
 0x661   : > { %7952 = vst.msk [vmem:[%s9641_s28 + $0x1a0] sm:$0xff] %vm7396_vm3, %v2410_v23 }
 0x663   : > { %v2407_v17 = vpop.xlane.xlu0 %2406 }
 0x664   : > { %v2416_v39 = vpop.xlane.xlu1 %2415  ;;  %7951 = vst.msk [vmem:[%s9641_s28 + $0x198] sm:$0xff] %vm7396_vm3, %v2407_v17 }
 0x665   : > { %7954 = vst.msk [vmem:[%s9641_s28 + $0x1b0] sm:$0xff] %vm7396_vm3, %v2416_v39 }
 0x667   : > { %v2413_v57 = vpop.xlane.xlu0 %2412 }
 0x668   : > { %v2422_v34 = vpop.xlane.xlu1 %2421  ;;  %7953 = vst.msk [vmem:[%s9641_s28 + $0x1a8] sm:$0xff] %vm7396_vm3, %v2413_v57 }
 0x669   : > { %7956 = vst.msk [vmem:[%s9641_s28 + $0x1c0] sm:$0xff] %vm7396_vm3, %v2422_v34 }
 0x66b   : > { %v2419_v30 = vpop.xlane.xlu0 %2418 }
 0x66c   : > { %v2428_v25 = vpop.xlane.xlu1 %2427  ;;  %7955 = vst.msk [vmem:[%s9641_s28 + $0x1b8] sm:$0xff] %vm7396_vm3, %v2419_v30 }
 0x66d   : > { %7958 = vst.msk [vmem:[%s9641_s28 + $0x1d0] sm:$0xff] %vm7396_vm3, %v2428_v25 }
 0x66f   : > { %v2425_v27 = vpop.xlane.xlu0 %2424 }
 0x670   : > { %v2434_v4 = vpop.xlane.xlu1 %2433  ;;  %7957 = vst.msk [vmem:[%s9641_s28 + $0x1c8] sm:$0xff] %vm7396_vm3, %v2425_v27 }
 0x671   : > { %7960 = vst.msk [vmem:[%s9641_s28 + $0x1e0] sm:$0xff] %vm7396_vm3, %v2434_v4  ;;  %v11499_v4 = vld [vmem:[#allocation37_spill] sm:$0xff] }
 0x673   : > { %v2431_v47 = vpop.xlane.xlu0 %2430 }
 0x674   : > { %v2440_v54 = vpop.xlane.xlu1 %2439  ;;  %7959 = vst.msk [vmem:[%s9641_s28 + $0x1d8] sm:$0xff] %vm7396_vm3, %v2431_v47 }
 0x675   : > { %7962 = vst.msk [vmem:[%s9641_s28 + $0x1f0] sm:$0xff] %vm7396_vm3, %v2440_v54 }
 0x677   : > { %v2437_v18 = vpop.xlane.xlu0 %2436 }
 0x678   : > { %v5814_v53 = vpop.xlane.xlu1 %5813  ;;  %7961 = vst.msk [vmem:[%s9641_s28 + $0x1e8] sm:$0xff] %vm7396_vm3, %v2437_v18 }
 0x679   : > { %7964 = vst.msk [vmem:[%s10673_s11 + $0x100] sm:$0xff] %vm7396_vm3, %v5814_v53  ;;  %v11500_v53 = vld [vmem:[#allocation38_spill] sm:$0xff] }
 0x67b   : > { %v2443_v14 = vpop.xlane.xlu0 %2442 }
 0x67c   : > { %v5820_v62 = vpop.xlane.xlu1 %5819  ;;  %7963 = vst.msk [vmem:[%s9641_s28 + $0x1f8] sm:$0xff] %vm7396_vm3, %v2443_v14  ;;  %s11160_s28 = scalar_lea.vmem %s11274_s4, %s9130_s7 }
 0x67d   : > { %7966 = vst.msk [vmem:[%s10673_s11 + $0x110] sm:$0xff] %vm7396_vm3, %v5820_v62 }
 0x67f   : > { %v5817_v58 = vpop.xlane.xlu0 %5816 }
 0x680   : > { %v5826_v63 = vpop.xlane.xlu1 %5825  ;;  %7965 = vst.msk [vmem:[%s10673_s11 + $0x108] sm:$0xff] %vm7396_vm3, %v5817_v58 }
 0x681   : > { %7968 = vst.msk [vmem:[%s10673_s11 + $0x120] sm:$0xff] %vm7396_vm3, %v5826_v63 }
 0x683   : > { %v5823_v15 = vpop.xlane.xlu0 %5822 }
 0x684   : > { %v5832_v24 = vpop.xlane.xlu1 %5831  ;;  %7967 = vst.msk [vmem:[%s10673_s11 + $0x118] sm:$0xff] %vm7396_vm3, %v5823_v15  ;;  %v11501_v15 = vld [vmem:[#allocation39_spill] sm:$0xff] }
 0x685   : > { %7970 = vst.msk [vmem:[%s10673_s11 + $0x130] sm:$0xff] %vm7396_vm3, %v5832_v24 }
 0x687   : > { %v5829_v28 = vpop.xlane.xlu0 %5828 }
 0x688   : > { %v5838_v55 = vpop.xlane.xlu1 %5837  ;;  %7969 = vst.msk [vmem:[%s10673_s11 + $0x128] sm:$0xff] %vm7396_vm3, %v5829_v28 }
 0x689   : > { %7972 = vst.msk [vmem:[%s10673_s11 + $0x140] sm:$0xff] %vm7396_vm3, %v5838_v55 }
 0x68b   : > { %v5835_v21 = vpop.xlane.xlu0 %5834 }
 0x68c   : > { %7971 = vst.msk [vmem:[%s10673_s11 + $0x138] sm:$0xff] %vm7396_vm3, %v5835_v21 }
 0x68f   : > { %v5841_v50 = vpop.xlane.xlu0 %5840 }
 0x690   : > { %7973 = vst.msk [vmem:[%s10673_s11 + $0x148] sm:$0xff] %vm7396_vm3, %v5841_v50  ;;  %v11502_v50 = vld [vmem:[#allocation40_spill] sm:$0xff] }
 0x694   : > { %v8809_v41 = vpop.f32.mrf.mxu1 }
 0x695   : > { %7238 = vrot.lane.b32.xlu0 %v8809_v41, %s9071_s24 }
 0x696   : > { %v5980_v6 = vpop.f32.mrf.mxu1 }
 0x697   : > { %7236 = vrot.lane.b32.xlu1 %v5980_v6, %s9071_s24 }
 0x69e   : > { %v8816_v3 = vpop.f32.mrf.mxu1 }
 0x69f   : > { %7242 = vrot.lane.b32.xlu1 %v8816_v3, %s9071_s24 }
 0x6a0   : > { %v6061_v42 = vpop.f32.mrf.mxu1 }
 0x6a3   : > { %7240 = vrot.lane.b32.xlu1 %v6061_v42, %s9071_s24  ;;  %v5871_v1 = vpop.xlane.xlu0 %5870  ;;  %v11503_v42 = vld [vmem:[#allocation15_spill] sm:$0xff] }
 0x6a4   : > { %7983 = vst.msk [vmem:[%s10673_s11 + $0x198] sm:$0xff] %vm7396_vm3, %v5871_v1 }
 0x6a6   : > { %v8823_v45 = vpop.f32.mrf.mxu0 }
 0x6a7   : > { %7246 = vrot.lane.b32.xlu1 %v8823_v45, %s9071_s24  ;;  %v5868_v48 = vpop.xlane.xlu1 %5867 }
 0x6a8   : > { %v6142_v59 = vpop.f32.mrf.mxu0  ;;  %7982 = vst.msk [vmem:[%s10673_s11 + $0x190] sm:$0xff] %vm7396_vm3, %v5868_v48  ;;  %v11504_v48 = vld [vmem:[#allocation16_spill] sm:$0xff] }
 0x6a9   : > { %7244 = vrot.lane.b32.xlu0 %v6142_v59, %s9071_s24 }
 0x6ab   : > { %v5847_v61 = vpop.xlane.xlu0 %5846 }
 0x6ac   : > { %7975 = vst.msk [vmem:[%s10673_s11 + $0x158] sm:$0xff] %vm7396_vm3, %v5847_v61 }
 0x6ae   : > { %v8830_v56 = vpop.f32.mrf.mxu1 }
 0x6af   : > { %7250 = vrot.lane.b32.xlu1 %v8830_v56, %s9071_s24  ;;  %v11505_v56 = vld [vmem:[#allocation41_spill] sm:$0xff] }
 0x6b0   : > { %v6223_v51 = vpop.f32.mrf.mxu1 }
 0x6b1   : > { %v5844_v36 = vpop.xlane.xlu1 %5843  ;;  %7248 = vrot.lane.b32.xlu0 %v6223_v51, %s9071_s24 }
 0x6b2   : > { %7974 = vst.msk [vmem:[%s10673_s11 + $0x150] sm:$0xff] %vm7396_vm3, %v5844_v36 }
 0x6b5   : > { %v5880_v11 = vpop.xlane.xlu1 %5879 }
 0x6b6   : > { %v8837_v46 = vpop.f32.mrf.mxu0  ;;  %7986 = vst.msk [vmem:[%s10673_s11 + $0x1b0] sm:$0xff] %vm7396_vm3, %v5880_v11  ;;  %v11506_v11 = vld [vmem:[#allocation42_spill] sm:$0xff] }
 0x6b7   : > { %7254 = vrot.lane.b32.xlu1 %v8837_v46, %s9071_s24 }
 0x6b8   : > { %v6304_v7 = vpop.f32.mrf.mxu0 }
 0x6b9   : > { %7252 = vrot.lane.b32.xlu0 %v6304_v7, %s9071_s24  ;;  %v5850_v40 = vpop.xlane.xlu1 %5849 }
 0x6ba   : > { %7976 = vst.msk [vmem:[%s10673_s11 + $0x160] sm:$0xff] %vm7396_vm3, %v5850_v40  ;;  %v11507_v40 = vld [vmem:[#allocation2_spill] sm:$0xff] }
 0x6c4   : > { %v5883_v52 = vpop.xlane.xlu0 %5882 }
 0x6c5   : > { %7987 = vst.msk [vmem:[%s10673_s11 + $0x1b8] sm:$0xff] %vm7396_vm3, %v5883_v52 }
 0x6c6   : > { %v8851_v8 = vpop.f32.mrf.mxu0 }
 0x6c7   : > { %v5892_v26 = vpop.xlane.xlu1 %5891 }
 0x6c8   : > { %7990 = vst.msk [vmem:[%s10673_s11 + $0x1d0] sm:$0xff] %vm7396_vm3, %v5892_v26  ;;  %v5853_v35 = vpop.xlane.xlu0 %5852  ;;  %v6466_v2 = vpop.f32.mrf.mxu0 }
 0x6c9   : > { %7977 = vst.msk [vmem:[%s10673_s11 + $0x168] sm:$0xff] %vm7396_vm3, %v5853_v35  ;;  %v11508_v35 = vld [vmem:[#allocation3_spill] sm:$0xff] }
 0x6cb   : > { %v5856_v43 = vpop.xlane.xlu1 %5855 }
 0x6cc   : > { %7978 = vst.msk [vmem:[%s10673_s11 + $0x170] sm:$0xff] %vm7396_vm3, %v5856_v43  ;;  %v5895_v13 = vpop.xlane.xlu0 %5894 }
 0x6cd   : > { %7991 = vst.msk [vmem:[%s10673_s11 + $0x1d8] sm:$0xff] %vm7396_vm3, %v5895_v13 }
 0x6d0   : > { %v5859_v32 = vpop.xlane.xlu0 %5858 }
 0x6d1   : > { %7979 = vst.msk [vmem:[%s10673_s11 + $0x178] sm:$0xff] %vm7396_vm3, %v5859_v32  ;;  %v11509_v32 = vld [vmem:[#allocation43_spill] sm:$0xff] }
 0x6d4   : > { %v5904_v60 = vpop.xlane.xlu1 %5903 }
 0x6d5   : > { %7994 = vst.msk [vmem:[%s10673_s11 + $0x1f0] sm:$0xff] %vm7396_vm3, %v5904_v60 }
 0x6d8   : > { %v5862_v16 = vpop.xlane.xlu1 %5861  ;;  %v5907_v22 = vpop.xlane.xlu0 %5906 }
 0x6d9   : > { %7980 = vst.msk [vmem:[%s10673_s11 + $0x180] sm:$0xff] %vm7396_vm3, %v5862_v16  ;;  %7995 = vst.msk [vmem:[%s10673_s11 + $0x1f8] sm:$0xff] %vm7396_vm3, %v5907_v22  ;;  %v8865_v37 = vpop.f32.mrf.mxu0  ;;  %v11510_v22 = vld [vmem:[#allocation44_spill] sm:$0xff] }
 0x6db   : > { %v6628_v17 = vpop.f32.mrf.mxu0 }
 0x6dc   : > { %v5874_v0 = vpop.xlane.xlu1 %5873  ;;  %v5865_v10 = vpop.xlane.xlu0 %5864 }
 0x6dd   : > { %7984 = vst.msk [vmem:[%s10673_s11 + $0x1a0] sm:$0xff] %vm7396_vm3, %v5874_v0  ;;  %7981 = vst.msk [vmem:[%s10673_s11 + $0x188] sm:$0xff] %vm7396_vm3, %v5865_v10 }
 0x6e0   : > { %v5886_v19 = vpop.xlane.xlu1 %5885  ;;  %v5877_v38 = vpop.xlane.xlu0 %5876 }
 0x6e1   : > { %7988 = vst.msk [vmem:[%s10673_s11 + $0x1c0] sm:$0xff] %vm7396_vm3, %v5886_v19  ;;  %7985 = vst.msk [vmem:[%s10673_s11 + $0x1a8] sm:$0xff] %vm7396_vm3, %v5877_v38  ;;  %v11511_v19 = vld [vmem:[#allocation4_spill] sm:$0xff] }
 0x6e4   : > { %v5898_v29 = vpop.xlane.xlu1 %5897  ;;  %v5889_v49 = vpop.xlane.xlu0 %5888 }
 0x6e5   : > { %7992 = vst.msk [vmem:[%s10673_s11 + $0x1e0] sm:$0xff] %vm7396_vm3, %v5898_v29  ;;  %7989 = vst.msk [vmem:[%s10673_s11 + $0x1c8] sm:$0xff] %vm7396_vm3, %v5889_v49  ;;  %v11512_v49 = vld [vmem:[#allocation5_spill] sm:$0xff] }
 0x6e6   : > { %v8879_v57 = vpop.f32.mrf.mxu0 }
 0x6e7   : > { %v8844_v9 = vpop.f32.mrf.mxu1 }
 0x6e8   : > { %7258 = vrot.lane.b32.xlu1 %v8844_v9, %s9071_s24  ;;  %v5901_v33 = vpop.xlane.xlu0 %5900  ;;  %v6790_v30 = vpop.f32.mrf.mxu0 }
 0x6e9   : > { %v6385_v12 = vpop.f32.mrf.mxu1  ;;  %7993 = vst.msk [vmem:[%s10673_s11 + $0x1e8] sm:$0xff] %vm7396_vm3, %v5901_v33 }
 0x6ea   : > { %7256 = vrot.lane.b32.xlu0 %v6385_v12, %s9071_s24 }
 0x6ec   : > { %7262 = vrot.lane.b32.xlu1 %v8851_v8, %s9071_s24  ;;  %v11513_v8 = vld [vmem:[#allocation45_spill] sm:$0xff] }
 0x6ee   : > { %7260 = vrot.lane.b32.xlu0 %v6466_v2, %s9071_s24 }
 0x6f4   : > { %v8858_v5 = vpop.f32.mrf.mxu1 }
 0x6f5   : > { %7266 = vrot.lane.b32.xlu1 %v8858_v5, %s9071_s24  ;;  %v11514_v5 = vld [vmem:[#allocation46_spill] sm:$0xff] }
 0x6f6   : > { %v6547_v31 = vpop.f32.mrf.mxu1 }
 0x6f7   : > { %7264 = vrot.lane.b32.xlu0 %v6547_v31, %s9071_s24  ;;  %v8893_v54 = vpop.f32.mrf.mxu0 }
 0x6f9   : > { %v8872_v44 = vpop.f32.mrf.mxu1  ;;  %v6952_v62 = vpop.f32.mrf.mxu0 }
 0x6fa   : > { %7274 = vrot.lane.b32.xlu1 %v8872_v44, %s9071_s24 }
 0x6fb   : > { %v6709_v20 = vpop.f32.mrf.mxu1 }
 0x6fc   : > { %7272 = vrot.lane.b32.xlu0 %v6709_v20, %s9071_s24 }
 0x6fd   : > { %v8886_v23 = vpop.f32.mrf.mxu1 }
 0x6fe   : > { %7270 = vrot.lane.b32.xlu1 %v8865_v37, %s9071_s24  ;;  %v11515_v37 = vld [vmem:[#allocation47_spill] sm:$0xff] }
 0x6ff   : > { %v6871_v39 = vpop.f32.mrf.mxu1 }
 0x700   : > { %7268 = vrot.lane.b32.xlu0 %v6628_v17, %s9071_s24  ;;  %v11516_v17 = vld [vmem:[#allocation48_spill] sm:$0xff] }
 0x701   : > { %v8900_v34 = vpop.f32.mrf.mxu1 }
 0x702   : > { %7282 = vrot.lane.b32.xlu1 %v8886_v23, %s9071_s24 }
 0x703   : > { %v7033_v25 = vpop.f32.mrf.mxu1 }
 0x704   : > { %7280 = vrot.lane.b32.xlu0 %v6871_v39, %s9071_s24 }
 0x706   : > { %7290 = vrot.lane.b32.xlu1 %v8900_v34, %s9071_s24  ;;  %v8907_v58 = vpop.f32.mrf.mxu0  ;;  %v11517_v34 = vld [vmem:[#allocation6_spill] sm:$0xff] }
 0x707   : > { %v7239_v27 = vpop.permute.xlu0 %7238 }
 0x708   : > { %v7333_v47 = vsel %vm344_vm0, %v11499_v4, %v7239_v27  ;;  %7288 = vrot.lane.b32.xlu0 %v7033_v25, %s9071_s24  ;;  %v7114_v28 = vpop.f32.mrf.mxu0  ;;  %v11518_v27 = vld [vmem:[#allocation7_spill] sm:$0xff] }
 0x709   : > { %7365 = vst [vmem:[%s11160_s28 + $0x8] sm:$0xff] %v7333_v47  ;;  %v7237_v18 = vpop.permute.xlu1 %7236 }
 0x70a   : > { %v7332_v14 = vsel %vm344_vm0, %v11500_v53, %v7237_v18  ;;  %7278 = vrot.lane.b32.xlu1 %v8879_v57, %s9071_s24 }
 0x70b   : > { %7364 = vst [vmem:[%s11160_s28] sm:$0xff] %v7332_v14  ;;  %v11520_v14 = vld [vmem:[#allocation50_spill] sm:$0xff] }
 0x70c   : > { %7276 = vrot.lane.b32.xlu0 %v6790_v30, %s9071_s24 }
 0x70e   : > { %7286 = vrot.lane.b32.xlu1 %v8893_v54, %s9071_s24  ;;  %v8914_v55 = vpop.f32.mrf.mxu1  ;;  %v11519_v54 = vld [vmem:[#allocation49_spill] sm:$0xff] }
 0x710   : > { %7284 = vrot.lane.b32.xlu0 %v6952_v62, %s9071_s24  ;;  %v7195_v6 = vpop.f32.mrf.mxu1 }
 0x711   : > { %v7243_v63 = vpop.permute.xlu1 %7242 }
 0x712   : > { %v7335_v24 = vsel %vm344_vm0, %v11501_v15, %v7243_v63  ;;  %7294 = vrot.lane.b32.xlu1 %v8907_v58, %s9071_s24  ;;  %v11521_v63 = vld [vmem:[#allocation51_spill] sm:$0xff] }
 0x713   : > { %7367 = vst [vmem:[%s11160_s28 + $0x18] sm:$0xff] %v7335_v24 }
 0x714   : > { %7292 = vrot.lane.b32.xlu0 %v7114_v28, %s9071_s24  ;;  %v11522_v28 = vld [vmem:[#allocation52_spill] sm:$0xff] }
 0x715   : > { %v7241_v21 = vpop.permute.xlu1 %7240 }
 0x716   : > { %v7334_v41 = vsel %vm344_vm0, %v11502_v50, %v7241_v21  ;;  %7298 = vrot.lane.b32.xlu1 %v8914_v55, %s9071_s24  ;;  %v11523_v50 = vld [vmem:[#allocation8_spill] sm:$0xff] }
 0x717   : > { %7366 = vst [vmem:[%s11160_s28 + $0x10] sm:$0xff] %v7334_v41 }
 0x718   : > { %7296 = vrot.lane.b32.xlu0 %v7195_v6, %s9071_s24 }
 0x719   : > { %v7247_v3 = vpop.permute.xlu1 %7246 }
 0x71a   : > { %v7337_v1 = vsel %vm344_vm0, %v11503_v42, %v7247_v3  ;;  %v11524_v3 = vld [vmem:[#allocation9_spill] sm:$0xff] }
 0x71b   : > { %7369 = vst [vmem:[%s11160_s28 + $0x28] sm:$0xff] %v7337_v1  ;;  %v7245_v45 = vpop.permute.xlu0 %7244 }
 0x71c   : > { %v7336_v59 = vsel %vm344_vm0, %v11504_v48, %v7245_v45  ;;  %v11525_v45 = vld [vmem:[#allocation10_spill] sm:$0xff] }
 0x71d   : > { %7368 = vst [vmem:[%s11160_s28 + $0x20] sm:$0xff] %v7336_v59 }
 0x721   : > { %v7251_v61 = vpop.permute.xlu1 %7250 }
 0x722   : > { %v7339_v51 = vsel %vm344_vm0, %v11505_v56, %v7251_v61  ;;  %v11526_v61 = vld [vmem:[#allocation12_spill] sm:$0xff] }
 0x723   : > { %7371 = vst [vmem:[%s11160_s28 + $0x38] sm:$0xff] %v7339_v51  ;;  %v7249_v36 = vpop.permute.xlu0 %7248 }
 0x724   : > { %v7338_v46 = vsel %vm344_vm0, %v11506_v11, %v7249_v36  ;;  %v11527_v36 = vld [vmem:[#allocation11_spill] sm:$0xff] }
 0x725   : > { %7370 = vst [vmem:[%s11160_s28 + $0x30] sm:$0xff] %v7338_v46 }
 0x729   : > { %v7255_v7 = vpop.permute.xlu1 %7254 }
 0x72a   : > { %v7341_v52 = vsel %vm344_vm0, %v11507_v40, %v7255_v7  ;;  %v11528_v7 = vld [vmem:[#allocation13_spill] sm:$0xff] }
 0x72b   : > { %7373 = vst [vmem:[%s11160_s28 + $0x48] sm:$0xff] %v7341_v52  ;;  %v7253_v26 = vpop.permute.xlu0 %7252 }
 0x72c   : > { %v7340_v43 = vsel %vm344_vm0, %v11508_v35, %v7253_v26  ;;  %v11529_v26 = vld [vmem:[#allocation53_spill] sm:$0xff] }
 0x72d   : > { %7372 = vst [vmem:[%s11160_s28 + $0x40] sm:$0xff] %v7340_v43 }
 0x75a   : > { %v7259_v13 = vpop.permute.xlu1 %7258 }
 0x75b   : > { %v7343_v60 = vsel %vm344_vm0, %v11509_v32, %v7259_v13  ;;  %v11530_v13 = vld [vmem:[#allocation54_spill] sm:$0xff] }
 0x75c   : > { %7375 = vst [vmem:[%s11160_s28 + $0x58] sm:$0xff] %v7343_v60  ;;  %v7257_v16 = vpop.permute.xlu0 %7256 }
 0x75d   : > { %v7342_v0 = vsel %vm344_vm0, %v11510_v22, %v7257_v16 }
 0x75e   : > { %7374 = vst [vmem:[%s11160_s28 + $0x50] sm:$0xff] %v7342_v0  ;;  %v7263_v10 = vpop.permute.xlu1 %7262 }
 0x75f   : > { %v7345_v38 = vsel %vm344_vm0, %v11511_v19, %v7263_v10 }
 0x760   : > { %7377 = vst [vmem:[%s11160_s28 + $0x68] sm:$0xff] %v7345_v38  ;;  %v7261_v29 = vpop.permute.xlu0 %7260 }
 0x761   : > { %v7344_v9 = vsel %vm344_vm0, %v11512_v49, %v7261_v29 }
 0x762   : > { %7376 = vst [vmem:[%s11160_s28 + $0x60] sm:$0xff] %v7344_v9 }
 0x767   : > { %v7267_v33 = vpop.permute.xlu1 %7266 }
 0x768   : > { %v7347_v12 = vsel %vm344_vm0, %v11513_v8, %v7267_v33 }
 0x769   : > { %7379 = vst [vmem:[%s11160_s28 + $0x78] sm:$0xff] %v7347_v12  ;;  %v7265_v2 = vpop.permute.xlu0 %7264 }
 0x76a   : > { %v7346_v31 = vsel %vm344_vm0, %v11514_v5, %v7265_v2 }
 0x76b   : > { %7378 = vst [vmem:[%s11160_s28 + $0x70] sm:$0xff] %v7346_v31 }
 0x76c   : > { %v7275_v44 = vpop.permute.xlu1 %7274 }
 0x76d   : > { %v7351_v20 = vsel %vm344_vm0, %v11515_v37, %v7275_v44 }
 0x76e   : > { %7383 = vst [vmem:[%s11160_s28 + $0x98] sm:$0xff] %v7351_v20  ;;  %v7273_v23 = vpop.permute.xlu0 %7272 }
 0x76f   : > { %v7350_v39 = vsel %vm344_vm0, %v11516_v17, %v7273_v23 }
 0x770   : > { %7382 = vst [vmem:[%s11160_s28 + $0x90] sm:$0xff] %v7350_v39  ;;  %v7271_v57 = vpop.permute.xlu1 %7270 }
 0x771   : > { %v7349_v30 = vsel %vm344_vm0, %v11517_v34, %v7271_v57 }
 0x772   : > { %7381 = vst [vmem:[%s11160_s28 + $0x88] sm:$0xff] %v7349_v30  ;;  %v7269_v25 = vpop.permute.xlu0 %7268 }
 0x773   : > { %v7348_v4 = vsel %vm344_vm0, %v11518_v27, %v7269_v25 }
 0x774   : > { %7380 = vst [vmem:[%s11160_s28 + $0x80] sm:$0xff] %v7348_v4  ;;  %v7283_v47 = vpop.permute.xlu1 %7282 }
 0x775   : > { %v7355_v18 = vsel %vm344_vm0, %v11519_v54, %v7283_v47 }
 0x776   : > { %7387 = vst [vmem:[%s11160_s28 + $0xb8] sm:$0xff] %v7355_v18  ;;  %v7281_v53 = vpop.permute.xlu0 %7280 }
 0x777   : > { %v7354_v62 = vsel %vm344_vm0, %v11520_v14, %v7281_v53 }
 0x778   : > { %7386 = vst [vmem:[%s11160_s28 + $0xb0] sm:$0xff] %v7354_v62  ;;  %v7291_v58 = vpop.permute.xlu1 %7290 }
 0x779   : > { %v7359_v15 = vsel %vm344_vm0, %v11521_v63, %v7291_v58 }
 0x77a   : > { %7391 = vst [vmem:[%s11160_s28 + $0xd8] sm:$0xff] %v7359_v15  ;;  %v7289_v24 = vpop.permute.xlu0 %7288 }
 0x77b   : > { %v7358_v55 = vsel %vm344_vm0, %v11522_v28, %v7289_v24 }
 0x77c   : > { %7390 = vst [vmem:[%s11160_s28 + $0xd0] sm:$0xff] %v7358_v55  ;;  %v7279_v21 = vpop.permute.xlu1 %7278 }
 0x77d   : > { %v7353_v41 = vsel %vm344_vm0, %v11523_v50, %v7279_v21 }
 0x77e   : > { %7385 = vst [vmem:[%s11160_s28 + $0xa8] sm:$0xff] %v7353_v41  ;;  %v7277_v6 = vpop.permute.xlu0 %7276 }
 0x77f   : > { %v7352_v42 = vsel %vm344_vm0, %v11524_v3, %v7277_v6 }
 0x780   : > { %7384 = vst [vmem:[%s11160_s28 + $0xa0] sm:$0xff] %v7352_v42  ;;  %v7287_v1 = vpop.permute.xlu1 %7286 }
 0x781   : > { %v7357_v48 = vsel %vm344_vm0, %v11525_v45, %v7287_v1 }
 0x782   : > { %7389 = vst [vmem:[%s11160_s28 + $0xc8] sm:$0xff] %v7357_v48  ;;  %v7285_v59 = vpop.permute.xlu0 %7284 }
 0x783   : > { %v7356_v56 = vsel %vm344_vm0, %v11526_v61, %v7285_v59 }
 0x784   : > { %7388 = vst [vmem:[%s11160_s28 + $0xc0] sm:$0xff] %v7356_v56  ;;  %v7295_v51 = vpop.permute.xlu1 %7294 }
 0x785   : > { %v7361_v11 = vsel %vm344_vm0, %v11527_v36, %v7295_v51 }
 0x786   : > { %7393 = vst [vmem:[%s11160_s28 + $0xe8] sm:$0xff] %v7361_v11  ;;  %v7293_v46 = vpop.permute.xlu0 %7292 }
 0x787   : > { %v7360_v40 = vsel %vm344_vm0, %v11528_v7, %v7293_v46 }
 0x788   : > { %7392 = vst [vmem:[%s11160_s28 + $0xe0] sm:$0xff] %v7360_v40  ;;  %v7299_v52 = vpop.permute.xlu1 %7298 }
 0x789   : > { %v7363_v35 = vsel %vm344_vm0, %v11529_v26, %v7299_v52 }
 0x78a   : > { %7395 = vst [vmem:[%s11160_s28 + $0xf8] sm:$0xff] %v7363_v35  ;;  %v7297_v43 = vpop.permute.xlu0 %7296 }
 0x78b   : > { %v7362_v32 = vsel %vm344_vm0, %v11530_v13, %v7297_v43 }
 0x78c   : > { %7394 = vst [vmem:[%s11160_s28 + $0xf0] sm:$0xff] %v7362_v32 }
 0x78d PF: > { %s17_s21 = sadd.s32 1, %s9068_s21  }
 0x78e   : > { %p14_p4 = scmp.ge.s32.totalorder %s17_s21, 4  }
 0x790   :  { %16 = sbr.rel (!%p14_p4) target bundleno = 1 (0x1), region = 95 }

</bundles_post_ra>
